<compile_context>
chip_gen: v7x
topology: tpu7x:2x2x1
jax: 0.10.0
libtpu: 0.0.40
codegen_flags: <defaults>
</compile_context>

<pallas_src>
import functools

import jax
import jax.numpy as jnp
from jax.experimental import pallas as pl
from jax.experimental.pallas import tpu as pltpu


def _convblock_kernel(x_ref, w1_ref, b1_ref, w2_ref, b2_ref, out_ref,
                      xf_ref, hpad_ref, *, H, W, images_per_step):
    """Fused [conv3x3+BN -> ReLU] x2 on a group of zero-padded, flattened images.

    x_ref   : (Bt, PR, C_in) bf16   padded-flat images; row q = padded pixel (q//(W+2), q%(W+2))
    w1_ref  : (9*C_in,  C_mid) bf16  im2col weight, BN1 folded in (row = (3*dy+dx)*C_in + c_in)
    w2_ref  : (9*C_mid, C_out) bf16  im2col weight, BN2 folded in
    b1_ref  : (1, C_mid) f32,  b2_ref: (1, C_out) f32
    out_ref : (Bt, L, C_out)         L = H*(W+2) output "strip" per image
    xf_ref  : (PR, C_in)  f32 scratch (widened staging of the current image)
    hpad_ref: (PR, C_mid) f32 scratch (re-padded intermediate activation)
    """
    Wp = W + 2
    L = H * Wp                       # strip row p <-> padded-column pixel (p // Wp, p % Wp)
    off0 = Wp + 1                    # where strip row 0 lands inside the padded grid
    PR = xf_ref.shape[0]
    C_mid = hpad_ref.shape[1]
    tail = PR - (off0 + L)
    offs = [dy * Wp + dx for dy in range(3) for dx in range(3)]   # tap k = 3*dy + dx

    # Zero only the two small border row ranges of hpad (never written by the strip
    # store below) instead of memsetting the whole buffer.
    hpad_ref[pl.ds(0, off0), :] = jnp.zeros((off0, C_mid), jnp.float32)
    hpad_ref[pl.ds(off0 + L, tail), :] = jnp.zeros((tail, C_mid), jnp.float32)

    zero2 = jnp.zeros((2, C_mid), jnp.float32)

    for img in range(images_per_step):           # unrolled: amortizes grid-step overhead
        # Widen the bf16 image once; all tap slicing happens on this 32-bit ref.
        xf_ref[...] = x_ref[img].astype(jnp.float32)

        # ---------------- layer 1: im2col + ONE matmul (K = 9*C_in) ----------------
        xcol = jnp.concatenate([xf_ref[pl.ds(o, L), :] for o in offs], axis=1)  # (L, 9*C_in)
        acc = jnp.dot(xcol.astype(w1_ref.dtype), w1_ref[...],
                      preferred_element_type=jnp.float32)                       # (L, C_mid)
        h = jnp.maximum(acc + b1_ref[...], 0.0)

        # Re-pad: drop the strip into the zero-bordered (H+2, W+2) grid...
        hpad_ref[pl.ds(off0, L), :] = h
        # ...then zero the two pad columns inside each padded row.  Strip rows with
        # (p % Wp) in {W, W+1} are exactly the right/left zero-pad positions of the
        # padded intermediate, so these H tiny stores reproduce conv zero padding
        # without any DMA'd mask or per-element select.
        for r in range(H):
            hpad_ref[pl.ds(off0 + r * Wp + W, 2), :] = zero2

        # ---------------- layer 2: im2col + ONE matmul (K = 9*C_mid) ----------------
        hcol = jnp.concatenate([hpad_ref[pl.ds(o, L), :] for o in offs], axis=1)  # (L, 9*C_mid)
        acc2 = jnp.dot(hcol.astype(w2_ref.dtype), w2_ref[...],
                       preferred_element_type=jnp.float32)                        # (L, C_out)
        out = jnp.maximum(acc2 + b2_ref[...], 0.0)
        out_ref[img] = out.astype(out_ref.dtype)


def _pick_images_per_step(B):
    """Largest group size that still leaves >= 2 grid steps (keeps megacore busy)."""
    for bt in (8, 4, 2):
        if B % bt == 0 and B // bt >= 2:
            return bt
    return 1


def conv_block_forward(x, layer1, layer2, *, eps=1e-5, mxu_dtype=jnp.bfloat16,
                       images_per_step=None):
    """ConvBlock forward (inference): [Conv2d(3x3, pad=1) -> BN -> ReLU] x 2.

    x: (B, C_in, H, W) NCHW.
    layer{1,2}: dict with PyTorch-layout params:
        'w' (C_out, C_in, 3, 3), 'b' (C_out,),
        'gamma', 'beta', 'mean', 'var' (C_out,)   # BatchNorm affine + running stats
    """
    B, C_in, H, W = x.shape
    Hp, Wp = H + 2, W + 2
    L = H * Wp                                   # output strip length per image
    PR = ((Hp * Wp + 2 + 7) // 8) * 8            # padded-flat rows (covers max tap offset)

    bt = images_per_step if images_per_step is not None else _pick_images_per_step(B)
    assert B % bt == 0, (B, bt)

    def fold(p):
        w, b = p["w"], p["b"]
        cout, cin = w.shape[0], w.shape[1]
        scale = p["gamma"] / jnp.sqrt(p["var"] + eps)               # (C_out,)
        w_f = w * scale[:, None, None, None]                        # (C_out, C_in, 3, 3)
        b_f = (b - p["mean"]) * scale + p["beta"]                   # (C_out,)
        # (C_out, C_in, 3, 3) -> (3, 3, C_in, C_out) -> (9*C_in, C_out);
        # row index = (3*dy + dx)*C_in + c_in, matching the in-kernel lane concat order.
        wk = jnp.transpose(w_f, (2, 3, 1, 0)).reshape(9 * cin, cout)
        return wk.astype(mxu_dtype), b_f.reshape(1, -1).astype(jnp.float32)

    w1, b1 = fold(layer1)
    w2, b2 = fold(layer2)
    C_mid, C_out = w1.shape[1], w2.shape[1]

    # NCHW -> (B, padded flat spatial, C), bf16 over HBM (halves the activation stream).
    x_nhwc = jnp.transpose(x, (0, 2, 3, 1))                         # (B, H, W, C_in)
    x_pad = jnp.pad(x_nhwc, ((0, 0), (1, 1), (1, 1), (0, 0)))       # (B, Hp, Wp, C_in)
    x_flat = x_pad.reshape(B, Hp * Wp, C_in)
    x_flat = jnp.pad(x_flat, ((0, 0), (0, PR - Hp * Wp), (0, 0)))   # (B, PR, C_in)
    x_flat = x_flat.astype(mxu_dtype)

    kernel = functools.partial(_convblock_kernel, H=H, W=W, images_per_step=bt)

    out_flat = pl.pallas_call(
        kernel,
        out_shape=jax.ShapeDtypeStruct((B, L, C_out), x.dtype),
        grid_spec=pltpu.PrefetchScalarGridSpec(
            num_scalar_prefetch=0,
            grid=(B // bt,),
            in_specs=[
                pl.BlockSpec((bt, PR, C_in), lambda b: (b, 0, 0)),        # images
                pl.BlockSpec((9 * C_in, C_mid), lambda b: (0, 0)),        # w1 (constant)
                pl.BlockSpec((1, C_mid), lambda b: (0, 0)),               # b1 (constant)
                pl.BlockSpec((9 * C_mid, C_out), lambda b: (0, 0)),       # w2 (constant)
                pl.BlockSpec((1, C_out), lambda b: (0, 0)),               # b2 (constant)
            ],
            out_specs=pl.BlockSpec((bt, L, C_out), lambda b: (b, 0, 0)),
            scratch_shapes=[
                pltpu.VMEM((PR, C_in), jnp.float32),    # widened image staging
                pltpu.VMEM((PR, C_mid), jnp.float32),   # re-padded intermediate
            ],
        ),
        compiler_params=pltpu.CompilerParams(
            dimension_semantics=("parallel",)),
    )(x_flat, w1, b1, w2, b2)

    # (B, L = H*Wp, C_out) -> drop the 2 pad columns per row -> NCHW
    out = out_flat.reshape(B, H, Wp, C_out)[:, :, :W, :]
    return jnp.transpose(out, (0, 3, 1, 2))


def _reference(x, layer1, layer2, eps=1e-5):
    """Pure-JAX f32 reference of the PyTorch forward pass (eval-mode BN, no dropout)."""
    def layer(h, p):
        h = jax.lax.conv_general_dilated(
            h, p["w"].astype(jnp.float32), window_strides=(1, 1),
            padding=((1, 1), (1, 1)),
            dimension_numbers=("NCHW", "OIHW", "NCHW"))
        h = h + p["b"][None, :, None, None]
        scale = (p["gamma"] / jnp.sqrt(p["var"] + eps))[None, :, None, None]
        h = (h - p["mean"][None, :, None, None]) * scale + p["beta"][None, :, None, None]
        return jnp.maximum(h, 0.0)

    h = layer(x.astype(jnp.float32), layer1)
    return layer(h, layer2)


if __name__ == "__main__":
    # ConvBlock(in_channels=4, out_channels=8, mid_channels=8, kernel_size=3, use_3D=False)
    B, C_in, C_mid, C_out, H, W = 2, 4, 8, 8, 16, 16

    key = jax.random.PRNGKey(0)
    keys = jax.random.split(key, 13)
    x = jax.random.normal(keys[0], (B, C_in, H, W), dtype=jnp.float32)

    def make_layer(ks, cin, cout):
        k = 1.0 / jnp.sqrt(jnp.float32(cin * 9))   # ~ PyTorch Conv2d default init bound
        return {
            "w":     jax.random.uniform(ks[0], (cout, cin, 3, 3), jnp.float32, -k, k),
            "b":     jax.random.uniform(ks[1], (cout,), jnp.float32, -k, k),
            "gamma": jax.random.uniform(ks[2], (cout,), jnp.float32, 0.8, 1.2),
            "beta":  jax.random.uniform(ks[3], (cout,), jnp.float32, -0.1, 0.1),
            "mean":  jax.random.uniform(ks[4], (cout,), jnp.float32, -0.1, 0.1),
            "var":   jax.random.uniform(ks[5], (cout,), jnp.float32, 0.8, 1.2),
        }

    layer1 = make_layer(keys[1:7], C_in, C_mid)
    layer2 = make_layer(keys[7:13], C_mid, C_out)

    out = conv_block_forward(x, layer1, layer2)
    out = jax.block_until_ready(out)

    ref = _reference(x, layer1, layer2)
    assert out.shape == (B, C_out, H, W), out.shape
    max_err = float(jnp.max(jnp.abs(out - ref)))
    # bf16 MXU operands (weights + im2col activations) with f32 accumulation -> small
    # rounding vs the f32 reference.
    assert jnp.allclose(out, ref, atol=5e-2, rtol=5e-2), f"mismatch vs reference (max abs err {max_err})"

    print("KERNEL_OK")
</pallas_src>

<mosaic_0001>
module attributes {stable_mosaic.version = 11 : i64} {
  func.func @_convblock_kernel(%arg0: i32, %arg1: memref<1x328x4xbf16, #tpu.memory_space<vmem>>, %arg2: memref<36x8xbf16, #tpu.memory_space<vmem>>, %arg3: memref<1x8xf32, #tpu.memory_space<vmem>>, %arg4: memref<72x8xbf16, #tpu.memory_space<vmem>>, %arg5: memref<1x8xf32, #tpu.memory_space<vmem>>, %arg6: memref<1x288x8xf32, #tpu.memory_space<vmem>>, %arg7: memref<328x4xf32, #tpu.memory_space<vmem>>, %arg8: memref<328x8xf32, #tpu.memory_space<vmem>>) attributes {dimension_semantics = [#tpu.dimension_semantics<parallel>], iteration_bounds = array<i64: 2>, scalar_prefetch = 0 : i64, scratch_operands = 2 : i64, tpu.core_type = #tpu.core_type<tc>, window_params = [{transform_indices = @transform_0, window_bounds = array<i64: 1, 328, 4>}, {pipeline_mode = #tpu.pipeline_mode<synchronous>, transform_indices = @transform_1, window_bounds = array<i64: 36, 8>}, {pipeline_mode = #tpu.pipeline_mode<synchronous>, transform_indices = @transform_2, window_bounds = array<i64: 1, 8>}, {pipeline_mode = #tpu.pipeline_mode<synchronous>, transform_indices = @transform_3, window_bounds = array<i64: 72, 8>}, {pipeline_mode = #tpu.pipeline_mode<synchronous>, transform_indices = @transform_4, window_bounds = array<i64: 1, 8>}, {transform_indices = @transform_5, window_bounds = array<i64: 1, 288, 8>}]} {
    %cst = arith.constant 0.000000e+00 : f32
    %0 = vector.broadcast %cst : f32 to vector<19x8xf32>
    %c0 = arith.constant 0 : index
    %c0_0 = arith.constant 0 : index
    %1 = vector.load %arg8[%c0, %c0_0] : memref<328x8xf32, #tpu.memory_space<vmem>>, vector<19x8xf32>
    tpu.vector_store %arg8[%c0, %c0_0], %0 {strides = array<i32>} : memref<328x8xf32, #tpu.memory_space<vmem>>, vector<19x8xf32>,
    %cst_1 = arith.constant 0.000000e+00 : f32
    %2 = vector.broadcast %cst_1 : f32 to vector<21x8xf32>
    %c307 = arith.constant 307 : index
    %c0_2 = arith.constant 0 : index
    %3 = vector.load %arg8[%c307, %c0_2] : memref<328x8xf32, #tpu.memory_space<vmem>>, vector<21x8xf32>
    tpu.vector_store %arg8[%c307, %c0_2], %2 {strides = array<i32>} : memref<328x8xf32, #tpu.memory_space<vmem>>, vector<21x8xf32>,
    %cst_3 = arith.constant 0.000000e+00 : f32
    %4 = vector.broadcast %cst_3 : f32 to vector<2x8xf32>
    %c0_4 = arith.constant 0 : index
    %c0_5 = arith.constant 0 : index
    %c0_6 = arith.constant 0 : index
    %5 = vector.load %arg1[%c0_4, %c0_5, %c0_6] : memref<1x328x4xbf16, #tpu.memory_space<vmem>>, vector<1x328x4xbf16>
    %6 = vector.shape_cast %5 : vector<1x328x4xbf16> to vector<328x4xbf16>
    %7 = arith.extf %6 : vector<328x4xbf16> to vector<328x4xf32>
    %c0_7 = arith.constant 0 : index
    %c0_8 = arith.constant 0 : index
    %8 = vector.load %arg7[%c0_7, %c0_8] : memref<328x4xf32, #tpu.memory_space<vmem>>, vector<328x4xf32>
    tpu.vector_store %arg7[%c0_7, %c0_8], %7 {strides = array<i32>} : memref<328x4xf32, #tpu.memory_space<vmem>>, vector<328x4xf32>,
    %c0_9 = arith.constant 0 : index
    %c0_10 = arith.constant 0 : index
    %9 = vector.load %arg7[%c0_9, %c0_10] : memref<328x4xf32, #tpu.memory_space<vmem>>, vector<288x4xf32>
    %c1 = arith.constant 1 : index
    %c0_11 = arith.constant 0 : index
    %10 = vector.load %arg7[%c1, %c0_11] : memref<328x4xf32, #tpu.memory_space<vmem>>, vector<288x4xf32>
    %c2 = arith.constant 2 : index
    %c0_12 = arith.constant 0 : index
    %11 = vector.load %arg7[%c2, %c0_12] : memref<328x4xf32, #tpu.memory_space<vmem>>, vector<288x4xf32>
    %c18 = arith.constant 18 : index
    %c0_13 = arith.constant 0 : index
    %12 = vector.load %arg7[%c18, %c0_13] : memref<328x4xf32, #tpu.memory_space<vmem>>, vector<288x4xf32>
    %c19 = arith.constant 19 : index
    %c0_14 = arith.constant 0 : index
    %13 = vector.load %arg7[%c19, %c0_14] : memref<328x4xf32, #tpu.memory_space<vmem>>, vector<288x4xf32>
    %c20 = arith.constant 20 : index
    %c0_15 = arith.constant 0 : index
    %14 = vector.load %arg7[%c20, %c0_15] : memref<328x4xf32, #tpu.memory_space<vmem>>, vector<288x4xf32>
    %c36 = arith.constant 36 : index
    %c0_16 = arith.constant 0 : index
    %15 = vector.load %arg7[%c36, %c0_16] : memref<328x4xf32, #tpu.memory_space<vmem>>, vector<288x4xf32>
    %c37 = arith.constant 37 : index
    %c0_17 = arith.constant 0 : index
    %16 = vector.load %arg7[%c37, %c0_17] : memref<328x4xf32, #tpu.memory_space<vmem>>, vector<288x4xf32>
    %c38 = arith.constant 38 : index
    %c0_18 = arith.constant 0 : index
    %17 = vector.load %arg7[%c38, %c0_18] : memref<328x4xf32, #tpu.memory_space<vmem>>, vector<288x4xf32>
    %18 = tpu.concatenate %9, %10, %11, %12, %13, %14, %15, %16, %17 in 1 : vector<288x4xf32>, vector<288x4xf32>, vector<288x4xf32>, vector<288x4xf32>, vector<288x4xf32>, vector<288x4xf32>, vector<288x4xf32>, vector<288x4xf32>, vector<288x4xf32> -> vector<288x36xf32>
    %19 = arith.truncf %18 : vector<288x36xf32> to vector<288x36xbf16>
    %c0_19 = arith.constant 0 : index
    %c0_20 = arith.constant 0 : index
    %20 = vector.load %arg2[%c0_19, %c0_20] : memref<36x8xbf16, #tpu.memory_space<vmem>>, vector<36x8xbf16>
    %cst_21 = arith.constant dense<0.000000e+00> : vector<288x8xf32>
    %21 = tpu.matmul %19, %20, %cst_21 {dimension_numbers = #tpu.dot_dimension_numbers<[1], [0], [0], [1], [0, 0, 1, 1], [], []>} : vector<288x36xbf16>, vector<36x8xbf16>, vector<288x8xf32> -> vector<288x8xf32>
    %c0_22 = arith.constant 0 : index
    %c0_23 = arith.constant 0 : index
    %22 = vector.load %arg3[%c0_22, %c0_23] : memref<1x8xf32, #tpu.memory_space<vmem>>, vector<1x8xf32>
    %23 = vector.broadcast %22 : vector<1x8xf32> to vector<288x8xf32>
    %24 = arith.addf %21, %23 : vector<288x8xf32>
    %cst_24 = arith.constant 0.000000e+00 : f32
    %25 = vector.broadcast %cst_24 : f32 to vector<288x8xf32>
    %26 = arith.maximumf %24, %25 : vector<288x8xf32>
    %c19_25 = arith.constant 19 : index
    %c0_26 = arith.constant 0 : index
    %27 = vector.load %arg8[%c19_25, %c0_26] : memref<328x8xf32, #tpu.memory_space<vmem>>, vector<288x8xf32>
    tpu.vector_store %arg8[%c19_25, %c0_26], %26 {strides = array<i32>} : memref<328x8xf32, #tpu.memory_space<vmem>>, vector<288x8xf32>,
    %c35 = arith.constant 35 : index
    %c0_27 = arith.constant 0 : index
    %28 = vector.load %arg8[%c35, %c0_27] : memref<328x8xf32, #tpu.memory_space<vmem>>, vector<2x8xf32>
    tpu.vector_store %arg8[%c35, %c0_27], %4 {strides = array<i32>} : memref<328x8xf32, #tpu.memory_space<vmem>>, vector<2x8xf32>,
    %c53 = arith.constant 53 : index
    %c0_28 = arith.constant 0 : index
    %29 = vector.load %arg8[%c53, %c0_28] : memref<328x8xf32, #tpu.memory_space<vmem>>, vector<2x8xf32>
    tpu.vector_store %arg8[%c53, %c0_28], %4 {strides = array<i32>} : memref<328x8xf32, #tpu.memory_space<vmem>>, vector<2x8xf32>,
    %c71 = arith.constant 71 : index
    %c0_29 = arith.constant 0 : index
    %30 = vector.load %arg8[%c71, %c0_29] : memref<328x8xf32, #tpu.memory_space<vmem>>, vector<2x8xf32>
    tpu.vector_store %arg8[%c71, %c0_29], %4 {strides = array<i32>} : memref<328x8xf32, #tpu.memory_space<vmem>>, vector<2x8xf32>,
    %c89 = arith.constant 89 : index
    %c0_30 = arith.constant 0 : index
    %31 = vector.load %arg8[%c89, %c0_30] : memref<328x8xf32, #tpu.memory_space<vmem>>, vector<2x8xf32>
    tpu.vector_store %arg8[%c89, %c0_30], %4 {strides = array<i32>} : memref<328x8xf32, #tpu.memory_space<vmem>>, vector<2x8xf32>,
    %c107 = arith.constant 107 : index
    %c0_31 = arith.constant 0 : index
    %32 = vector.load %arg8[%c107, %c0_31] : memref<328x8xf32, #tpu.memory_space<vmem>>, vector<2x8xf32>
    tpu.vector_store %arg8[%c107, %c0_31], %4 {strides = array<i32>} : memref<328x8xf32, #tpu.memory_space<vmem>>, vector<2x8xf32>,
    %c125 = arith.constant 125 : index
    %c0_32 = arith.constant 0 : index
    %33 = vector.load %arg8[%c125, %c0_32] : memref<328x8xf32, #tpu.memory_space<vmem>>, vector<2x8xf32>
    tpu.vector_store %arg8[%c125, %c0_32], %4 {strides = array<i32>} : memref<328x8xf32, #tpu.memory_space<vmem>>, vector<2x8xf32>,
    %c143 = arith.constant 143 : index
    %c0_33 = arith.constant 0 : index
    %34 = vector.load %arg8[%c143, %c0_33] : memref<328x8xf32, #tpu.memory_space<vmem>>, vector<2x8xf32>
    tpu.vector_store %arg8[%c143, %c0_33], %4 {strides = array<i32>} : memref<328x8xf32, #tpu.memory_space<vmem>>, vector<2x8xf32>,
    %c161 = arith.constant 161 : index
    %c0_34 = arith.constant 0 : index
    %35 = vector.load %arg8[%c161, %c0_34] : memref<328x8xf32, #tpu.memory_space<vmem>>, vector<2x8xf32>
    tpu.vector_store %arg8[%c161, %c0_34], %4 {strides = array<i32>} : memref<328x8xf32, #tpu.memory_space<vmem>>, vector<2x8xf32>,
    %c179 = arith.constant 179 : index
    %c0_35 = arith.constant 0 : index
    %36 = vector.load %arg8[%c179, %c0_35] : memref<328x8xf32, #tpu.memory_space<vmem>>, vector<2x8xf32>
    tpu.vector_store %arg8[%c179, %c0_35], %4 {strides = array<i32>} : memref<328x8xf32, #tpu.memory_space<vmem>>, vector<2x8xf32>,
    %c197 = arith.constant 197 : index
    %c0_36 = arith.constant 0 : index
    %37 = vector.load %arg8[%c197, %c0_36] : memref<328x8xf32, #tpu.memory_space<vmem>>, vector<2x8xf32>
    tpu.vector_store %arg8[%c197, %c0_36], %4 {strides = array<i32>} : memref<328x8xf32, #tpu.memory_space<vmem>>, vector<2x8xf32>,
    %c215 = arith.constant 215 : index
    %c0_37 = arith.constant 0 : index
    %38 = vector.load %arg8[%c215, %c0_37] : memref<328x8xf32, #tpu.memory_space<vmem>>, vector<2x8xf32>
    tpu.vector_store %arg8[%c215, %c0_37], %4 {strides = array<i32>} : memref<328x8xf32, #tpu.memory_space<vmem>>, vector<2x8xf32>,
    %c233 = arith.constant 233 : index
    %c0_38 = arith.constant 0 : index
    %39 = vector.load %arg8[%c233, %c0_38] : memref<328x8xf32, #tpu.memory_space<vmem>>, vector<2x8xf32>
    tpu.vector_store %arg8[%c233, %c0_38], %4 {strides = array<i32>} : memref<328x8xf32, #tpu.memory_space<vmem>>, vector<2x8xf32>,
    %c251 = arith.constant 251 : index
    %c0_39 = arith.constant 0 : index
    %40 = vector.load %arg8[%c251, %c0_39] : memref<328x8xf32, #tpu.memory_space<vmem>>, vector<2x8xf32>
    tpu.vector_store %arg8[%c251, %c0_39], %4 {strides = array<i32>} : memref<328x8xf32, #tpu.memory_space<vmem>>, vector<2x8xf32>,
    %c269 = arith.constant 269 : index
    %c0_40 = arith.constant 0 : index
    %41 = vector.load %arg8[%c269, %c0_40] : memref<328x8xf32, #tpu.memory_space<vmem>>, vector<2x8xf32>
    tpu.vector_store %arg8[%c269, %c0_40], %4 {strides = array<i32>} : memref<328x8xf32, #tpu.memory_space<vmem>>, vector<2x8xf32>,
    %c287 = arith.constant 287 : index
    %c0_41 = arith.constant 0 : index
    %42 = vector.load %arg8[%c287, %c0_41] : memref<328x8xf32, #tpu.memory_space<vmem>>, vector<2x8xf32>
    tpu.vector_store %arg8[%c287, %c0_41], %4 {strides = array<i32>} : memref<328x8xf32, #tpu.memory_space<vmem>>, vector<2x8xf32>,
    %c305 = arith.constant 305 : index
    %c0_42 = arith.constant 0 : index
    %43 = vector.load %arg8[%c305, %c0_42] : memref<328x8xf32, #tpu.memory_space<vmem>>, vector<2x8xf32>
    tpu.vector_store %arg8[%c305, %c0_42], %4 {strides = array<i32>} : memref<328x8xf32, #tpu.memory_space<vmem>>, vector<2x8xf32>,
    %c0_43 = arith.constant 0 : index
    %c0_44 = arith.constant 0 : index
    %44 = vector.load %arg8[%c0_43, %c0_44] : memref<328x8xf32, #tpu.memory_space<vmem>>, vector<288x8xf32>
    %c1_45 = arith.constant 1 : index
    %c0_46 = arith.constant 0 : index
    %45 = vector.load %arg8[%c1_45, %c0_46] : memref<328x8xf32, #tpu.memory_space<vmem>>, vector<288x8xf32>
    %c2_47 = arith.constant 2 : index
    %c0_48 = arith.constant 0 : index
    %46 = vector.load %arg8[%c2_47, %c0_48] : memref<328x8xf32, #tpu.memory_space<vmem>>, vector<288x8xf32>
    %c18_49 = arith.constant 18 : index
    %c0_50 = arith.constant 0 : index
    %47 = vector.load %arg8[%c18_49, %c0_50] : memref<328x8xf32, #tpu.memory_space<vmem>>, vector<288x8xf32>
    %c19_51 = arith.constant 19 : index
    %c0_52 = arith.constant 0 : index
    %48 = vector.load %arg8[%c19_51, %c0_52] : memref<328x8xf32, #tpu.memory_space<vmem>>, vector<288x8xf32>
    %c20_53 = arith.constant 20 : index
    %c0_54 = arith.constant 0 : index
    %49 = vector.load %arg8[%c20_53, %c0_54] : memref<328x8xf32, #tpu.memory_space<vmem>>, vector<288x8xf32>
    %c36_55 = arith.constant 36 : index
    %c0_56 = arith.constant 0 : index
    %50 = vector.load %arg8[%c36_55, %c0_56] : memref<328x8xf32, #tpu.memory_space<vmem>>, vector<288x8xf32>
    %c37_57 = arith.constant 37 : index
    %c0_58 = arith.constant 0 : index
    %51 = vector.load %arg8[%c37_57, %c0_58] : memref<328x8xf32, #tpu.memory_space<vmem>>, vector<288x8xf32>
    %c38_59 = arith.constant 38 : index
    %c0_60 = arith.constant 0 : index
    %52 = vector.load %arg8[%c38_59, %c0_60] : memref<328x8xf32, #tpu.memory_space<vmem>>, vector<288x8xf32>
    %53 = tpu.concatenate %44, %45, %46, %47, %48, %49, %50, %51, %52 in 1 : vector<288x8xf32>, vector<288x8xf32>, vector<288x8xf32>, vector<288x8xf32>, vector<288x8xf32>, vector<288x8xf32>, vector<288x8xf32>, vector<288x8xf32>, vector<288x8xf32> -> vector<288x72xf32>
    %54 = arith.truncf %53 : vector<288x72xf32> to vector<288x72xbf16>
    %c0_61 = arith.constant 0 : index
    %c0_62 = arith.constant 0 : index
    %55 = vector.load %arg4[%c0_61, %c0_62] : memref<72x8xbf16, #tpu.memory_space<vmem>>, vector<72x8xbf16>
    %cst_63 = arith.constant dense<0.000000e+00> : vector<288x8xf32>
    %56 = tpu.matmul %54, %55, %cst_63 {dimension_numbers = #tpu.dot_dimension_numbers<[1], [0], [0], [1], [0, 0, 1, 1], [], []>} : vector<288x72xbf16>, vector<72x8xbf16>, vector<288x8xf32> -> vector<288x8xf32>
    %c0_64 = arith.constant 0 : index
    %c0_65 = arith.constant 0 : index
    %57 = vector.load %arg5[%c0_64, %c0_65] : memref<1x8xf32, #tpu.memory_space<vmem>>, vector<1x8xf32>
    %58 = vector.broadcast %57 : vector<1x8xf32> to vector<288x8xf32>
    %59 = arith.addf %56, %58 : vector<288x8xf32>
    %cst_66 = arith.constant 0.000000e+00 : f32
    %60 = vector.broadcast %cst_66 : f32 to vector<288x8xf32>
    %61 = arith.maximumf %59, %60 : vector<288x8xf32>
    %c0_67 = arith.constant 0 : index
    %c0_68 = arith.constant 0 : index
    %c0_69 = arith.constant 0 : index
    %62 = vector.load %arg6[%c0_67, %c0_68, %c0_69] : memref<1x288x8xf32, #tpu.memory_space<vmem>>, vector<1x288x8xf32>
    %63 = vector.shape_cast %62 : vector<1x288x8xf32> to vector<288x8xf32>
    %64 = vector.shape_cast %61 : vector<288x8xf32> to vector<1x288x8xf32>
    tpu.vector_store %arg6[%c0_67, %c0_68, %c0_69], %64 {strides = array<i32>} : memref<1x288x8xf32, #tpu.memory_space<vmem>>, vector<1x288x8xf32>,
    return
  }
  func.func @transform_0(%arg0: i32) -> (i32, i32, i32) {
    %c0_i32 = arith.constant 0 : i32
    %c0_i32_0 = arith.constant 0 : i32
    %c0_i32_1 = arith.constant 0 : i32
    return %arg0, %c0_i32, %c0_i32_0 : i32, i32, i32
  }
  func.func @transform_1(%arg0: i32) -> (i32, i32) {
    %c0_i32 = arith.constant 0 : i32
    %c0_i32_0 = arith.constant 0 : i32
    %c0_i32_1 = arith.constant 0 : i32
    return %c0_i32, %c0_i32_0 : i32, i32
  }
  func.func @transform_2(%arg0: i32) -> (i32, i32) {
    %c0_i32 = arith.constant 0 : i32
    %c0_i32_0 = arith.constant 0 : i32
    %c0_i32_1 = arith.constant 0 : i32
    return %c0_i32, %c0_i32_0 : i32, i32
  }
  func.func @transform_3(%arg0: i32) -> (i32, i32) {
    %c0_i32 = arith.constant 0 : i32
    %c0_i32_0 = arith.constant 0 : i32
    %c0_i32_1 = arith.constant 0 : i32
    return %c0_i32, %c0_i32_0 : i32, i32
  }
  func.func @transform_4(%arg0: i32) -> (i32, i32) {
    %c0_i32 = arith.constant 0 : i32
    %c0_i32_0 = arith.constant 0 : i32
    %c0_i32_1 = arith.constant 0 : i32
    return %c0_i32, %c0_i32_0 : i32, i32
  }
  func.func @transform_5(%arg0: i32) -> (i32, i32, i32) {
    %c0_i32 = arith.constant 0 : i32
    %c0_i32_0 = arith.constant 0 : i32
    %c0_i32_1 = arith.constant 0 : i32
    return %arg0, %c0_i32, %c0_i32_0 : i32, i32, i32
  }
}

</mosaic_0001>

<bundles_post_ra>
// kernel: tpu_custom_call.1
= control target key start
LH: loop header
LB: loop body
LE: loop exit
PB: predicated region body
PF: predicated region fallthrough
CT: control target
= control target key end

     0   :  { %s6229_s18 = smov 0   ;;  %s8772_s0 = inlined_call_operand.vmem [shape: bf16[2,328,4], index: 0, kind: input, shape index: {}]   ;;  %s8773_s1 = inlined_call_operand.vmem [shape: bf16[36,8], index: 1, kind: input, shape index: {}]   ;;  %s8774_s2 = inlined_call_operand.vmem [shape: f32[1,8], index: 2, kind: input, shape index: {}]   ;;  %s8775_s3 = inlined_call_operand.vmem [shape: bf16[72,8], index: 3, kind: input, shape index: {}]   ;;  %s8776_s4 = inlined_call_operand.vmem [shape: f32[1,8], index: 4, kind: input, shape index: {}]   ;;  %s8777_s5 = inlined_call_operand.vmem [shape: f32[2,288,8], index: 5, kind: output, shape index: {}]  }
   0x1 LB: > { %s4419_s19 = sadd.s32 4294967295, %s6184_s18   ;;  %p4423_p0 = scmp.ge.s32.totalorder %s6184_s18, 1  ;;  %s6184_s18 = sphi %s6229_s18, %s15_s18  }
   0x2   : > { %p187_p1 = scmp.lt.s32.totalorder %s6184_s18, 3 }
   0x4   : > { %p188_p2 = pnand %p4423_p0, %p187_p1 }
   0x6   : > { %191 = sbr.rel (%p188_p2) target bundleno = 1260 (0x4ec), region = 40 }
   0xd   : > { %p215_p3 = scmp.lt.s32.totalorder %s4419_s19, 1  ;;  %vm317_vm0 = vcmask 31744   ;;  %s6186_s24 = smov 4   ;;  %vm2093_vm1 = vcmask 1041408   ;;  %vm226_vm2 = vcmask 64512   ;;  %vm1771_vm3 = vcmask 97280  }
   0xe   : > { %s6187_s25 = smov 8   ;;  %s6188_s26 = smov 12   ;;  %vm1808_vm4 = vcmask 130048   ;;  %vm1845_vm5 = vcmask 162816   ;;  %vm1882_vm6 = vcmask 195584   ;;  %vm1919_vm7 = vcmask 228352  }
   0xf   : > { %s9037_s19 = smov (!%p215_p3, %s4419_s19), 1  ;;  %s6189_s27 = smov 16   ;;  %vm1956_vm8 = vcmask 261120   ;;  %vm2038_vm9 = vcmask 293888   ;;  %vm229_vm10 = vcmask 59392   ;;  %vm2346_vm11 = vcmask 58368  }
  0x10   : > { %s4707_s20 = smul.u32 164, %s9037_s19  ;;  %s6190_s28 = smov 20   ;;  %vm4111_vm12 = vcmask 1043456   ;;  %vm3847_vm13 = vcmask 326656   ;;  %vm3884_vm14 = vcmask 392192   ;;  %vm3921_vm15 = vcmask 457728  }
  0x11   : > { %s6191_s29 = smov 24   ;;  %s6192_s30 = smov 28  }
  0x12   : > { %s6243_s23 = scalar_lea.vmem %s8772_s0, %s4707_s20  ;;  %s6193_s12 = smov 32  }
  0x13   : > { %v4555_v0 = vld [vmem:[%s6243_s23 + $0x10] sm:$0xff]   ;;  %v4556_v1 = vld [vmem:[%s6243_s23 + $0x18] sm:$0xff]   ;;  %v4475_v2 = vld [vmem:[%s6243_s23] sm:$0xff]   ;;  %s6195_s15 = smov 40   ;;  %s6196_s20 = smov 48  }
  0x14   : > { %v4484_v3 = vunpack.c.l.bf16 %v4555_v0  ;;  %v4485_v4 = vunpack.c.h.bf16 %v4555_v0  ;;  %v4488_v5 = vunpack.c.l.bf16 %v4556_v1  ;;  %v4489_v6 = vunpack.c.h.bf16 %v4556_v1  ;;  %v4554_v7 = vld [vmem:[%s6243_s23 + $0x8] sm:$0xff]   ;;  %v4557_v8 = vld [vmem:[%s6243_s23 + $0x20] sm:$0xff]   ;;  %v4559_v14 = vld [vmem:[%s6243_s23 + $0x30] sm:$0xff]   ;;  %s6197_s21 = smov 56  }
  0x15   : > { %v4558_v9 = vld [vmem:[%s6243_s23 + $0x28] sm:$0xff]   ;;  %v4476_v10 = vunpack.c.l.bf16 %v4475_v2  ;;  %v4477_v11 = vunpack.c.h.bf16 %v4475_v2  ;;  %v4480_v12 = vunpack.c.l.bf16 %v4554_v7  ;;  %v4481_v13 = vunpack.c.h.bf16 %v4554_v7  ;;  %v4560_v15 = vld [vmem:[%s6243_s23 + $0x38] sm:$0xff]   ;;  %v4561_v16 = vld [vmem:[%s6243_s23 + $0x40] sm:$0xff]  }
  0x16   : > { %322 = vst.msk [vmem:[#allocation2 + $0x20] sm:$0xff] %vm317_vm0, %v4484_v3  ;;  %323 = vst.msk [vmem:[#allocation2 + $0x28] sm:$0xff] %vm317_vm0, %v4485_v4  ;;  %v4492_v17 = vunpack.c.l.bf16 %v4557_v8  ;;  %v4496_v18 = vunpack.c.l.bf16 %v4558_v9  ;;  %v4497_v19 = vunpack.c.h.bf16 %v4558_v9  ;;  %v4500_v20 = vunpack.c.l.bf16 %v4559_v14  ;;  %v4562_v21 = vld [vmem:[%s6243_s23 + $0x48] sm:$0xff]   ;;  %v4563_v22 = vld [vmem:[%s6243_s23 + $0x50] sm:$0xff]  }
  0x17   : > { %324 = vst.msk [vmem:[#allocation2 + $0x30] sm:$0xff] %vm317_vm0, %v4488_v5  ;;  %325 = vst.msk [vmem:[#allocation2 + $0x38] sm:$0xff] %vm317_vm0, %v4489_v6  ;;  %v4564_v23 = vld [vmem:[%s6243_s23 + $0x58] sm:$0xff]   ;;  %v4493_v24 = vunpack.c.h.bf16 %v4557_v8  ;;  %v4504_v25 = vunpack.c.l.bf16 %v4560_v15  ;;  %v4505_v26 = vunpack.c.h.bf16 %v4560_v15  ;;  %v4508_v27 = vunpack.c.l.bf16 %v4561_v16  ;;  %v4565_v28 = vld [vmem:[%s6243_s23 + $0x60] sm:$0xff]  }
  0x18   : > { %318 = vst.msk [vmem:[#allocation2] sm:$0xff] %vm317_vm0, %v4476_v10  ;;  %319 = vst.msk [vmem:[#allocation2 + $0x8] sm:$0xff] %vm317_vm0, %v4477_v11  ;;  %v4566_v29 = vld [vmem:[%s6243_s23 + $0x68] sm:$0xff]   ;;  %v4567_v30 = vld [vmem:[%s6243_s23 + $0x70] sm:$0xff]   ;;  %v4501_v31 = vunpack.c.h.bf16 %v4559_v14  ;;  %v4512_v32 = vunpack.c.l.bf16 %v4562_v21  ;;  %v4513_v33 = vunpack.c.h.bf16 %v4562_v21  ;;  %v4516_v34 = vunpack.c.l.bf16 %v4563_v22 }
  0x19   : > { %320 = vst.msk [vmem:[#allocation2 + $0x10] sm:$0xff] %vm317_vm0, %v4480_v12  ;;  %321 = vst.msk [vmem:[#allocation2 + $0x18] sm:$0xff] %vm317_vm0, %v4481_v13  ;;  %v4568_v35 = vld [vmem:[%s6243_s23 + $0x78] sm:$0xff]   ;;  %v4569_v36 = vld [vmem:[%s6243_s23 + $0x80] sm:$0xff]   ;;  %v4509_v37 = vunpack.c.h.bf16 %v4561_v16  ;;  %v4520_v38 = vunpack.c.l.bf16 %v4564_v23  ;;  %v4521_v39 = vunpack.c.h.bf16 %v4564_v23  ;;  %v4524_v40 = vunpack.c.l.bf16 %v4565_v28 }
  0x1a   : > { %326 = vst.msk [vmem:[#allocation2 + $0x40] sm:$0xff] %vm317_vm0, %v4492_v17  ;;  %328 = vst.msk [vmem:[#allocation2 + $0x50] sm:$0xff] %vm317_vm0, %v4496_v18  ;;  %v4570_v41 = vld [vmem:[%s6243_s23 + $0x88] sm:$0xff]   ;;  %v4571_v42 = vld [vmem:[%s6243_s23 + $0x90] sm:$0xff]   ;;  %v4517_v43 = vunpack.c.h.bf16 %v4563_v22  ;;  %v4528_v44 = vunpack.c.l.bf16 %v4566_v29  ;;  %v4529_v45 = vunpack.c.h.bf16 %v4566_v29  ;;  %v4532_v46 = vunpack.c.l.bf16 %v4567_v30 }
  0x1b   : > { %329 = vst.msk [vmem:[#allocation2 + $0x58] sm:$0xff] %vm317_vm0, %v4497_v19  ;;  %330 = vst.msk [vmem:[#allocation2 + $0x60] sm:$0xff] %vm317_vm0, %v4500_v20  ;;  %v4572_v47 = vld [vmem:[%s6243_s23 + $0x98] sm:$0xff]   ;;  %v4525_v48 = vunpack.c.h.bf16 %v4565_v28  ;;  %v4536_v49 = vunpack.c.l.bf16 %v4568_v35  ;;  %v4537_v50 = vunpack.c.h.bf16 %v4568_v35  ;;  %v4540_v51 = vunpack.c.l.bf16 %v4569_v36 }
  0x1c   : > { %327 = vst.msk [vmem:[#allocation2 + $0x48] sm:$0xff] %vm317_vm0, %v4493_v24  ;;  %332 = vst.msk [vmem:[#allocation2 + $0x70] sm:$0xff] %vm317_vm0, %v4504_v25  ;;  %v4533_v52 = vunpack.c.h.bf16 %v4567_v30  ;;  %v4544_v53 = vunpack.c.l.bf16 %v4570_v41  ;;  %v4545_v54 = vunpack.c.h.bf16 %v4570_v41  ;;  %v4548_v55 = vunpack.c.l.bf16 %v4571_v42 }
  0x1d   : > { %333 = vst.msk [vmem:[#allocation2 + $0x78] sm:$0xff] %vm317_vm0, %v4505_v26  ;;  %334 = vst.msk [vmem:[#allocation2 + $0x80] sm:$0xff] %vm317_vm0, %v4508_v27  ;;  %v399_v56 = vld [vmem:[#allocation2 + $0x21] sm:$0xff]  ;;  %v4541_v59 = vunpack.c.h.bf16 %v4569_v36  ;;  %v4549_v60 = vunpack.c.h.bf16 %v4571_v42  ;;  %v4552_v61 = vunpack.c.l.bf16 %v4572_v47  ;;  %v4553_v62 = vunpack.c.h.bf16 %v4572_v47 }
  0x1e   : > { %331 = vst.msk [vmem:[#allocation2 + $0x68] sm:$0xff] %vm317_vm0, %v4501_v31  ;;  %336 = vst.msk [vmem:[#allocation2 + $0x90] sm:$0xff] %vm317_vm0, %v4512_v32  ;;  %v400_v57 = vld [vmem:[#allocation2 + $0x29] sm:$0xff]  ;;  %v401_v58 = vld [vmem:[#allocation2 + $0x31] sm:$0xff] }
  0x1f   : > { %337 = vst.msk [vmem:[#allocation2 + $0x98] sm:$0xff] %vm317_vm0, %v4513_v33  ;;  %338 = vst.msk [vmem:[#allocation2 + $0xa0] sm:$0xff] %vm317_vm0, %v4516_v34  ;;  %v4740_v63 = vpack.i.bf16 %v400_v57, %v399_v56  ;;  %v395_v0 = vld [vmem:[#allocation2 + $0x1] sm:$0xff]  ;;  %v437_v56 = vld [vmem:[#allocation2 + $0x32] sm:$0xff] }
  0x20   : > { %335 = vst.msk [vmem:[#allocation2 + $0x88] sm:$0xff] %vm317_vm0, %v4509_v37  ;;  %340 = vst.msk [vmem:[#allocation2 + $0xb0] sm:$0xff] %vm317_vm0, %v4520_v38  ;;  %v396_v1 = vld [vmem:[#allocation2 + $0x9] sm:$0xff]  ;;  %v397_v2 = vld [vmem:[#allocation2 + $0x11] sm:$0xff] }
  0x21   : > { %341 = vst.msk [vmem:[#allocation2 + $0xb8] sm:$0xff] %vm317_vm0, %v4521_v39  ;;  %342 = vst.msk [vmem:[#allocation2 + $0xc0] sm:$0xff] %vm317_vm0, %v4524_v40  ;;  %v4730_v3 = vpack.i.bf16 %v396_v1, %v395_v0  ;;  %v402_v4 = vld [vmem:[#allocation2 + $0x39] sm:$0xff]  ;;  %4741 = vrot.lane.b32.xlu1 %v4740_v63, %s6186_s24 }
  0x22   : > { %339 = vst.msk [vmem:[#allocation2 + $0xa8] sm:$0xff] %vm317_vm0, %v4517_v43  ;;  %344 = vst.msk [vmem:[#allocation2 + $0xd0] sm:$0xff] %vm317_vm0, %v4528_v44  ;;  %v398_v5 = vld [vmem:[#allocation2 + $0x19] sm:$0xff]  ;;  %v4745_v6 = vpack.i.bf16 %v402_v4, %v401_v58  ;;  %v405_v8 = vld [vmem:[#allocation2 + $0x51] sm:$0xff] }
  0x23   : > { %345 = vst.msk [vmem:[#allocation2 + $0xd8] sm:$0xff] %vm317_vm0, %v4529_v45  ;;  %346 = vst.msk [vmem:[#allocation2 + $0xe0] sm:$0xff] %vm317_vm0, %v4532_v46  ;;  %4731 = vrot.lane.b32.xlu0 %v4730_v3, %s6186_s24  ;;  %v4735_v7 = vpack.i.bf16 %v398_v5, %v397_v2  ;;  %v406_v9 = vld [vmem:[#allocation2 + $0x59] sm:$0xff]  ;;  %v403_v10 = vld [vmem:[#allocation2 + $0x41] sm:$0xff] }
  0x24   : > { %343 = vst.msk [vmem:[#allocation2 + $0xc8] sm:$0xff] %vm317_vm0, %v4525_v48  ;;  %348 = vst.msk [vmem:[#allocation2 + $0xf0] sm:$0xff] %vm317_vm0, %v4536_v49  ;;  %v404_v11 = vld [vmem:[#allocation2 + $0x49] sm:$0xff]  ;;  %v4755_v12 = vpack.i.bf16 %v406_v9, %v405_v8  ;;  %v409_v14 = vld [vmem:[#allocation2 + $0x71] sm:$0xff] }
  0x25   : > { %349 = vst.msk [vmem:[#allocation2 + $0xf8] sm:$0xff] %vm317_vm0, %v4537_v50  ;;  %350 = vst.msk [vmem:[#allocation2 + $0x100] sm:$0xff] %vm317_vm0, %v4540_v51  ;;  %4746 = vrot.lane.b32.xlu1 %v4745_v6, %s6186_s24  ;;  %v4750_v13 = vpack.i.bf16 %v404_v11, %v403_v10  ;;  %v410_v15 = vld [vmem:[#allocation2 + $0x79] sm:$0xff]  ;;  %v407_v16 = vld [vmem:[#allocation2 + $0x61] sm:$0xff] }
  0x26   : > { %347 = vst.msk [vmem:[#allocation2 + $0xe8] sm:$0xff] %vm317_vm0, %v4533_v52  ;;  %352 = vst.msk [vmem:[#allocation2 + $0x110] sm:$0xff] %vm317_vm0, %v4544_v53  ;;  %v408_v17 = vld [vmem:[#allocation2 + $0x69] sm:$0xff]  ;;  %v4765_v18 = vpack.i.bf16 %v410_v15, %v409_v14  ;;  %v413_v20 = vld [vmem:[#allocation2 + $0x91] sm:$0xff] }
  0x27   : > { %353 = vst.msk [vmem:[#allocation2 + $0x118] sm:$0xff] %vm317_vm0, %v4545_v54  ;;  %354 = vst.msk [vmem:[#allocation2 + $0x120] sm:$0xff] %vm317_vm0, %v4548_v55  ;;  %4736 = vrot.lane.b32.xlu0 %v4735_v7, %s6186_s24  ;;  %v4760_v19 = vpack.i.bf16 %v408_v17, %v407_v16  ;;  %v414_v21 = vld [vmem:[#allocation2 + $0x99] sm:$0xff]  ;;  %v411_v22 = vld [vmem:[#allocation2 + $0x81] sm:$0xff] }
  0x28   : > { %351 = vst.msk [vmem:[#allocation2 + $0x108] sm:$0xff] %vm317_vm0, %v4541_v59  ;;  %355 = vst.msk [vmem:[#allocation2 + $0x128] sm:$0xff] %vm317_vm0, %v4549_v60  ;;  %v412_v23 = vld [vmem:[#allocation2 + $0x89] sm:$0xff]  ;;  %v4775_v24 = vpack.i.bf16 %v414_v21, %v413_v20  ;;  %v417_v26 = vld [vmem:[#allocation2 + $0xb1] sm:$0xff] }
  0x29   : > { %356 = vst.msk [vmem:[#allocation2 + $0x130] sm:$0xff] %vm317_vm0, %v4552_v61  ;;  %357 = vst.msk [vmem:[#allocation2 + $0x138] sm:$0xff] %vm317_vm0, %v4553_v62  ;;  %4756 = vrot.lane.b32.xlu1 %v4755_v12, %s6186_s24  ;;  %v4770_v25 = vpack.i.bf16 %v412_v23, %v411_v22  ;;  %v418_v27 = vld [vmem:[#allocation2 + $0xb9] sm:$0xff]  ;;  %v415_v28 = vld [vmem:[#allocation2 + $0xa1] sm:$0xff] }
  0x2a   : > { %v416_v29 = vld [vmem:[#allocation2 + $0xa9] sm:$0xff]  ;;  %v4785_v30 = vpack.i.bf16 %v418_v27, %v417_v26  ;;  %v421_v32 = vld [vmem:[#allocation2 + $0xd1] sm:$0xff]  ;;  %v422_v33 = vld [vmem:[#allocation2 + $0xd9] sm:$0xff] }
  0x2b   : > { %4751 = vrot.lane.b32.xlu0 %v4750_v13, %s6186_s24  ;;  %v4780_v31 = vpack.i.bf16 %v416_v29, %v415_v28  ;;  %v419_v34 = vld [vmem:[#allocation2 + $0xc1] sm:$0xff]  ;;  %v420_v35 = vld [vmem:[#allocation2 + $0xc9] sm:$0xff]  ;;  %v4795_v36 = vpack.i.bf16 %v422_v33, %v421_v32  ;;  %v433_v50 = vld [vmem:[#allocation2 + $0x12] sm:$0xff] }
  0x2c   : > { %v4790_v37 = vpack.i.bf16 %v420_v35, %v419_v34  ;;  %v425_v38 = vld [vmem:[#allocation2 + $0xf1] sm:$0xff]  ;;  %v426_v39 = vld [vmem:[#allocation2 + $0xf9] sm:$0xff]  ;;  %v431_v52 = vld [vmem:[#allocation2 + $0x2] sm:$0xff] }
  0x2d   : > { %4766 = vrot.lane.b32.xlu1 %v4765_v18, %s6186_s24  ;;  %v423_v40 = vld [vmem:[#allocation2 + $0xe1] sm:$0xff]  ;;  %v424_v41 = vld [vmem:[#allocation2 + $0xe9] sm:$0xff]  ;;  %v4805_v42 = vpack.i.bf16 %v426_v39, %v425_v38  ;;  %v441_v62 = vld [vmem:[#allocation2 + $0x52] sm:$0xff] }
  0x2e   : > { %v4800_v43 = vpack.i.bf16 %v424_v41, %v423_v40  ;;  %v429_v44 = vld [vmem:[#allocation2 + $0x111] sm:$0xff]  ;;  %v430_v45 = vld [vmem:[#allocation2 + $0x119] sm:$0xff]  ;;  %v435_v58 = vld [vmem:[#allocation2 + $0x22] sm:$0xff] }
  0x2f   : > { %4761 = vrot.lane.b32.xlu0 %v4760_v19, %s6186_s24  ;;  %v427_v46 = vld [vmem:[#allocation2 + $0x101] sm:$0xff]  ;;  %v428_v47 = vld [vmem:[#allocation2 + $0x109] sm:$0xff]  ;;  %v4815_v48 = vpack.i.bf16 %v430_v45, %v429_v44  ;;  %v445_v4 = vld [vmem:[#allocation2 + $0x72] sm:$0xff] }
  0x30   : > { %v4810_v49 = vpack.i.bf16 %v428_v47, %v427_v46  ;;  %v434_v51 = vld [vmem:[#allocation2 + $0x1a] sm:$0xff]  ;;  %v432_v53 = vld [vmem:[#allocation2 + $0xa] sm:$0xff]  ;;  %v439_v0 = vld [vmem:[#allocation2 + $0x42] sm:$0xff] }
  0x31   : > { %4776 = vrot.lane.b32.xlu1 %v4775_v24, %s6186_s24  ;;  %v6322_v54 = vpack.i.bf16 %v434_v51, %v433_v50  ;;  %v4820_v55 = vpack.i.bf16 %v432_v53, %v431_v52  ;;  %v438_v57 = vld [vmem:[#allocation2 + $0x3a] sm:$0xff]  ;;  %v436_v59 = vld [vmem:[#allocation2 + $0x2a] sm:$0xff]  ;;  %v443_v6 = vld [vmem:[#allocation2 + $0x62] sm:$0xff] }
  0x32   : > { %v6327_v60 = vpack.i.bf16 %v438_v57, %v437_v56  ;;  %v4830_v61 = vpack.i.bf16 %v436_v59, %v435_v58  ;;  %v442_v63 = vld [vmem:[#allocation2 + $0x5a] sm:$0xff]  ;;  %v440_v1 = vld [vmem:[#allocation2 + $0x4a] sm:$0xff]  ;;  %v449_v10 = vld [vmem:[#allocation2 + $0x92] sm:$0xff] }
  0x33   : > { %4771 = vrot.lane.b32.xlu0 %v4770_v25, %s6186_s24  ;;  %v4845_v2 = vpack.i.bf16 %v442_v63, %v441_v62  ;;  %v4840_v3 = vpack.i.bf16 %v440_v1, %v439_v0  ;;  %v446_v5 = vld [vmem:[#allocation2 + $0x7a] sm:$0xff]  ;;  %v444_v7 = vld [vmem:[#allocation2 + $0x6a] sm:$0xff]  ;;  %v447_v12 = vld [vmem:[#allocation2 + $0x82] sm:$0xff] }
  0x34   : > { %v4855_v8 = vpack.i.bf16 %v446_v5, %v445_v4  ;;  %v4850_v9 = vpack.i.bf16 %v444_v7, %v443_v6  ;;  %v450_v11 = vld [vmem:[#allocation2 + $0x9a] sm:$0xff]  ;;  %v448_v13 = vld [vmem:[#allocation2 + $0x8a] sm:$0xff]  ;;  %v453_v16 = vld [vmem:[#allocation2 + $0xb2] sm:$0xff] }
  0x35   : > { %4786 = vrot.lane.b32.xlu1 %v4785_v30, %s6186_s24  ;;  %v4865_v14 = vpack.i.bf16 %v450_v11, %v449_v10  ;;  %v4860_v15 = vpack.i.bf16 %v448_v13, %v447_v12  ;;  %v454_v17 = vld [vmem:[#allocation2 + $0xba] sm:$0xff]  ;;  %v451_v18 = vld [vmem:[#allocation2 + $0xa2] sm:$0xff]  ;;  %v452_v19 = vld [vmem:[#allocation2 + $0xaa] sm:$0xff] }
  0x36   : > { %v4875_v20 = vpack.i.bf16 %v454_v17, %v453_v16  ;;  %v4870_v21 = vpack.i.bf16 %v452_v19, %v451_v18  ;;  %v457_v22 = vld [vmem:[#allocation2 + $0xd2] sm:$0xff]  ;;  %v458_v23 = vld [vmem:[#allocation2 + $0xda] sm:$0xff]  ;;  %v455_v24 = vld [vmem:[#allocation2 + $0xc2] sm:$0xff] }
  0x37   : > { %4781 = vrot.lane.b32.xlu0 %v4780_v31, %s6186_s24  ;;  %v456_v25 = vld [vmem:[#allocation2 + $0xca] sm:$0xff]  ;;  %v4885_v26 = vpack.i.bf16 %v458_v23, %v457_v22  ;;  %v461_v28 = vld [vmem:[#allocation2 + $0xf2] sm:$0xff]  ;;  %v462_v29 = vld [vmem:[#allocation2 + $0xfa] sm:$0xff] }
  0x38   : > { %v4880_v27 = vpack.i.bf16 %v456_v25, %v455_v24  ;;  %v459_v30 = vld [vmem:[#allocation2 + $0xe2] sm:$0xff]  ;;  %v460_v31 = vld [vmem:[#allocation2 + $0xea] sm:$0xff]  ;;  %v4895_v32 = vpack.i.bf16 %v462_v29, %v461_v28  ;;  %v465_v34 = vld [vmem:[#allocation2 + $0x112] sm:$0xff] }
  0x39   : > { %4796 = vrot.lane.b32.xlu1 %v4795_v36, %s6186_s24  ;;  %v4890_v33 = vpack.i.bf16 %v460_v31, %v459_v30  ;;  %v466_v35 = vld [vmem:[#allocation2 + $0x11a] sm:$0xff]  ;;  %v463_v36 = vld [vmem:[#allocation2 + $0x102] sm:$0xff]  ;;  %v472_v46 = vld [vmem:[#allocation2 + $0x2b] sm:$0xff] }
  0x3a   : > { %v4905_v38 = vpack.i.bf16 %v466_v35, %v465_v34  ;;  %v275_v40 = vld [vmem:[%s6243_s23 + $0xa0] sm:$0xf]  ;;  %v469_v47 = vld [vmem:[#allocation2 + $0x13] sm:$0xff]  ;;  %v476_v52 = vld [vmem:[#allocation2 + $0x4b] sm:$0xff] }
  0x3b   : > { %4791 = vrot.lane.b32.xlu0 %v4790_v37, %s6186_s24  ;;  %v464_v37 = vld [vmem:[#allocation2 + $0x10a] sm:$0xff]  ;;  %v316_v41 = vunpack.c.l.bf16 %v275_v40  ;;  %v473_v53 = vld [vmem:[#allocation2 + $0x33] sm:$0xff]  ;;  %v486_v11 = vld [vmem:[#allocation2 + $0x9b] sm:$0xff] }
  0x3c   : > { %v4900_v39 = vpack.i.bf16 %v464_v37, %v463_v36  ;;  %v471_v45 = vld [vmem:[#allocation2 + $0x23] sm:$0xff]  ;;  %v480_v58 = vld [vmem:[#allocation2 + $0x6b] sm:$0xff]  ;;  %v477_v59 = vld [vmem:[#allocation2 + $0x53] sm:$0xff] }
  0x3d   : > { %4806 = vrot.lane.b32.xlu1 %v4805_v42, %s6186_s24  ;;  %358 = vst.msk [vmem:[#allocation2 + $0x140] sm:$0xff] %vm317_vm0, %v316_v41  ;;  %v467_v42 = vld [vmem:[#allocation2 + $0x122] sm:$0xff]  ;;  %v484_v0 = vld [vmem:[#allocation2 + $0x8b] sm:$0xff]  ;;  %v485_v10 = vld [vmem:[#allocation2 + $0x93] sm:$0xff] }
  0x3e   : > { %v475_v51 = vld [vmem:[#allocation2 + $0x43] sm:$0xff]  ;;  %v492_v16 = vld [vmem:[#allocation2 + $0xcb] sm:$0xff]  ;;  %v489_v18 = vld [vmem:[#allocation2 + $0xb3] sm:$0xff] }
  0x3f   : > { %4801 = vrot.lane.b32.xlu0 %v4800_v43, %s6186_s24  ;;  %v468_v43 = vld [vmem:[#allocation2 + $0x12a] sm:$0xff]  ;;  %v490_v19 = vld [vmem:[#allocation2 + $0xbb] sm:$0xff]  ;;  %v497_v34 = vld [vmem:[#allocation2 + $0xf3] sm:$0xff] }
  0x40   : > { %v4995_v44 = vpack.i.bf16 %v468_v43, %v467_v42  ;;  %v479_v57 = vld [vmem:[#allocation2 + $0x63] sm:$0xff]  ;;  %v5050_v22 = vpack.i.bf16 %v490_v19, %v489_v18  ;;  %v496_v24 = vld [vmem:[#allocation2 + $0xeb] sm:$0xff]  ;;  %v498_v35 = vld [vmem:[#allocation2 + $0xfb] sm:$0xff] }
  0x41   : > { %4816 = vrot.lane.b32.xlu1 %v4815_v48, %s6186_s24  ;;  %v470_v48 = vld [vmem:[#allocation2 + $0x1b] sm:$0xff]  ;;  %v483_v63 = vld [vmem:[#allocation2 + $0x83] sm:$0xff]  ;;  %v504_v40 = vld [vmem:[#allocation2 + $0x12b] sm:$0xff] }
  0x42   : > { %v5000_v50 = vpack.i.bf16 %v470_v48, %v469_v47  ;;  %v5035_v5 = vpack.i.bf16 %v484_v0, %v483_v63  ;;  %v487_v7 = vld [vmem:[#allocation2 + $0xa3] sm:$0xff]  ;;  %v501_v42 = vld [vmem:[#allocation2 + $0x113] sm:$0xff]  ;;  %v502_v43 = vld [vmem:[#allocation2 + $0x11b] sm:$0xff] }
  0x43   : > { %4811 = vrot.lane.b32.xlu0 %v4810_v49, %s6186_s24  ;;  %v5005_v49 = vpack.i.bf16 %v472_v46, %v471_v45  ;;  %v495_v23 = vld [vmem:[#allocation2 + $0xe3] sm:$0xff]  ;;  %v5080_v46 = vpack.i.bf16 %v502_v43, %v501_v42  ;;  %v508_v48 = vld [vmem:[#allocation2 + $0x2c] sm:$0xff] }
  0x44   : > { %v5065_v29 = vpack.i.bf16 %v496_v24, %v495_v23  ;;  %v499_v31 = vld [vmem:[#allocation2 + $0x103] sm:$0xff]  ;;  %v516_v0 = vld [vmem:[#allocation2 + $0x6c] sm:$0xff]  ;;  %v521_v24 = vld [vmem:[#allocation2 + $0x94] sm:$0xff] }
  0x45   : > { %4826 = vrot.lane.b32.xlu1 %v6322_v54, %s6187_s25  ;;  %v507_v47 = vld [vmem:[#allocation2 + $0x24] sm:$0xff]  ;;  %v532_v43 = vld [vmem:[#allocation2 + $0xec] sm:$0xff] }
  0x46   : > { %v515_v63 = vld [vmem:[#allocation2 + $0x64] sm:$0xff] }
  0x47   : > { %4821 = vrot.lane.b32.xlu0 %v4820_v55, %s6187_s25  ;;  %v5015_v55 = vpack.i.bf16 %v476_v52, %v475_v51  ;;  %v506_v51 = vld [vmem:[#allocation2 + $0x1c] sm:$0xff]  ;;  %v531_v42 = vld [vmem:[#allocation2 + $0xe4] sm:$0xff] }
  0x49   : > { %4836 = vrot.lane.b32.xlu1 %v6327_v60, %s6187_s25 }
  0x4b   : > { %4831 = vrot.lane.b32.xlu0 %v4830_v61, %s6187_s25 }
  0x4d   : > { %4846 = vrot.lane.b32.xlu1 %v4845_v2, %s6187_s25 }
  0x4f   : > { %4841 = vrot.lane.b32.xlu0 %v4840_v3, %s6187_s25 }
  0x51   : > { %4856 = vrot.lane.b32.xlu1 %v4855_v8, %s6187_s25 }
  0x53   : > { %4851 = vrot.lane.b32.xlu0 %v4850_v9, %s6187_s25 }
  0x55   : > { %4866 = vrot.lane.b32.xlu1 %v4865_v14, %s6187_s25 }
  0x57   : > { %4861 = vrot.lane.b32.xlu0 %v4860_v15, %s6187_s25 }
  0x59   : > { %4876 = vrot.lane.b32.xlu1 %v4875_v20, %s6187_s25 }
  0x5b   : > { %4871 = vrot.lane.b32.xlu0 %v4870_v21, %s6187_s25 }
  0x5d   : > { %4886 = vrot.lane.b32.xlu1 %v4885_v26, %s6187_s25 }
  0x5f   : > { %4881 = vrot.lane.b32.xlu0 %v4880_v27, %s6187_s25 }
  0x61   : > { %4896 = vrot.lane.b32.xlu1 %v4895_v32, %s6187_s25 }
  0x63   : > { %4891 = vrot.lane.b32.xlu0 %v4890_v33, %s6187_s25 }
  0x65   : > { %4906 = vrot.lane.b32.xlu1 %v4905_v38, %s6187_s25 }
  0x67   : > { %4901 = vrot.lane.b32.xlu0 %v4900_v39, %s6187_s25 }
  0x69   : > { %4916 = vrot.lane.b32.xlu1 %v4830_v61, %s6188_s26  ;;  %v5025_v61 = vpack.i.bf16 %v480_v58, %v479_v57  ;;  %v509_v58 = vld [vmem:[#allocation2 + $0x34] sm:$0xff] }
  0x6b   : > { %4911 = vrot.lane.b32.xlu0 %v6322_v54, %s6188_s26  ;;  %v474_v54 = vld [vmem:[#allocation2 + $0x3b] sm:$0xff] }
  0x6c   : > { %v5010_v56 = vpack.i.bf16 %v474_v54, %v473_v53  ;;  %v6396_v53 = vpack.i.bf16 %v508_v48, %v507_v47  ;;  %v530_v47 = vld [vmem:[#allocation2 + $0xdc] sm:$0xff] }
  0x6d   : > { %4926 = vrot.lane.b32.xlu1 %v4840_v3, %s6188_s26  ;;  %v482_v3 = vld [vmem:[#allocation2 + $0x7b] sm:$0xff] }
  0x6f   : > { %4921 = vrot.lane.b32.xlu0 %v6327_v60, %s6188_s26  ;;  %v478_v60 = vld [vmem:[#allocation2 + $0x5b] sm:$0xff] }
  0x70   : > { %v5020_v62 = vpack.i.bf16 %v478_v60, %v477_v59  ;;  %v510_v59 = vld [vmem:[#allocation2 + $0x3c] sm:$0xff] }
  0x71   : > { %4936 = vrot.lane.b32.xlu1 %v4850_v9, %s6188_s26 }
  0x73   : > { %4931 = vrot.lane.b32.xlu0 %v4845_v2, %s6188_s26  ;;  %v481_v2 = vld [vmem:[#allocation2 + $0x73] sm:$0xff] }
  0x74   : > { %v5030_v6 = vpack.i.bf16 %v482_v3, %v481_v2  ;;  %v513_v3 = vld [vmem:[#allocation2 + $0x54] sm:$0xff] }
  0x75   : > { %4946 = vrot.lane.b32.xlu1 %v4860_v15, %s6188_s26  ;;  %v491_v15 = vld [vmem:[#allocation2 + $0xc3] sm:$0xff] }
  0x77   : > { %4941 = vrot.lane.b32.xlu0 %v4855_v8, %s6188_s26  ;;  %v488_v8 = vld [vmem:[#allocation2 + $0xab] sm:$0xff] }
  0x78   : > { %v5045_v13 = vpack.i.bf16 %v488_v8, %v487_v7  ;;  %v6416_v7 = vpack.i.bf16 %v516_v0, %v515_v63 }
  0x79   : > { %4956 = vrot.lane.b32.xlu1 %v4870_v21, %s6188_s26  ;;  %v5055_v21 = vpack.i.bf16 %v492_v16, %v491_v15  ;;  %v518_v15 = vld [vmem:[#allocation2 + $0x7c] sm:$0xff] }
  0x7b   : > { %4951 = vrot.lane.b32.xlu0 %v4865_v14, %s6188_s26  ;;  %v5040_v14 = vpack.i.bf16 %v486_v11, %v485_v10  ;;  %v519_v10 = vld [vmem:[#allocation2 + $0x84] sm:$0xff]  ;;  %v520_v11 = vld [vmem:[#allocation2 + $0x8c] sm:$0xff] }
  0x7c   : > { %v6428_v18 = vpack.i.bf16 %v520_v11, %v519_v10  ;;  %v540_v10 = vld [vmem:[#allocation2 + $0x12c] sm:$0xff] }
  0x7d   : > { %4966 = vrot.lane.b32.xlu1 %v4880_v27, %s6188_s26  ;;  %v494_v27 = vld [vmem:[#allocation2 + $0xdb] sm:$0xff] }
  0x7f   : > { %4961 = vrot.lane.b32.xlu0 %v4875_v20, %s6188_s26 }
  0x81   : > { %4976 = vrot.lane.b32.xlu1 %v4890_v33, %s6188_s26 }
  0x83   : > { %4971 = vrot.lane.b32.xlu0 %v4885_v26, %s6188_s26  ;;  %v493_v26 = vld [vmem:[#allocation2 + $0xd3] sm:$0xff] }
  0x84   : > { %v5060_v30 = vpack.i.bf16 %v494_v27, %v493_v26  ;;  %v522_v26 = vld [vmem:[#allocation2 + $0x9c] sm:$0xff] }
  0x85   : > { %4986 = vrot.lane.b32.xlu1 %v4900_v39, %s6188_s26  ;;  %v503_v39 = vld [vmem:[#allocation2 + $0x123] sm:$0xff] }
  0x86   : > { %v5085_v45 = vpack.i.bf16 %v504_v40, %v503_v39 }
  0x87   : > { %4981 = vrot.lane.b32.xlu0 %v4895_v32, %s6188_s26  ;;  %v500_v32 = vld [vmem:[#allocation2 + $0x10b] sm:$0xff] }
  0x88   : > { %v5075_v37 = vpack.i.bf16 %v500_v32, %v499_v31  ;;  %v527_v31 = vld [vmem:[#allocation2 + $0xc4] sm:$0xff]  ;;  %v528_v32 = vld [vmem:[#allocation2 + $0xcc] sm:$0xff] }
  0x89   : > { %4996 = vrot.lane.b32.xlu1 %v4995_v44, %s6188_s26  ;;  %v5145_v39 = vpack.i.bf16 %v528_v32, %v527_v31 }
  0x8b   : > { %4991 = vrot.lane.b32.xlu0 %v4905_v38, %s6188_s26  ;;  %v5070_v38 = vpack.i.bf16 %v498_v35, %v497_v34  ;;  %v525_v35 = vld [vmem:[#allocation2 + $0xb4] sm:$0xff] }
  0x8d   : > { %5006 = vrot.lane.b32.xlu1 %v5005_v49, %s6189_s27 }
  0x8f   : > { %5001 = vrot.lane.b32.xlu0 %v5000_v50, %s6189_s27  ;;  %v505_v50 = vld [vmem:[#allocation2 + $0x14] sm:$0xff] }
  0x90   : > { %v5090_v54 = vpack.i.bf16 %v506_v51, %v505_v50  ;;  %v5155_v50 = vpack.i.bf16 %v532_v43, %v531_v42 }
  0x91   : > { %5016 = vrot.lane.b32.xlu1 %v5015_v55, %s6189_s27  ;;  %v511_v55 = vld [vmem:[#allocation2 + $0x44] sm:$0xff] }
  0x93   : > { %5011 = vrot.lane.b32.xlu0 %v5010_v56, %s6189_s27  ;;  %v6355_v1 = vpop.permute.xlu1 %4741  ;;  %v512_v56 = vld [vmem:[#allocation2 + $0x4c] sm:$0xff] }
  0x95   : > { %v6357_v4 = vpop.permute.xlu0 %4731  ;;  %5026 = vrot.lane.b32.xlu1 %v5025_v61, %s6189_s27  ;;  %v6405_v61 = vpack.i.bf16 %v512_v56, %v511_v55  ;;  %v536_v55 = vld [vmem:[#allocation2 + $0x10c] sm:$0xff] }
  0x97   : > { %5021 = vrot.lane.b32.xlu0 %v5020_v62, %s6189_s27  ;;  %v6361_v9 = vpop.permute.xlu1 %4746  ;;  %v6408_v62 = vpack.i.bf16 %v510_v59, %v509_v58  ;;  %v533_v58 = vld [vmem:[#allocation2 + $0xf4] sm:$0xff]  ;;  %v534_v59 = vld [vmem:[#allocation2 + $0xfc] sm:$0xff] }
  0x99   : > { %v6363_v12 = vpop.permute.xlu0 %4736  ;;  %5036 = vrot.lane.b32.xlu1 %v5035_v5, %s6189_s27  ;;  %v514_v5 = vld [vmem:[#allocation2 + $0x5c] sm:$0xff] }
  0x9a   : > { %v6420_v8 = vpack.i.bf16 %v514_v5, %v513_v3  ;;  %v5160_v3 = vpack.i.bf16 %v534_v59, %v533_v58  ;;  %v539_v5 = vld [vmem:[#allocation2 + $0x124] sm:$0xff] }
  0x9b   : > { %5031 = vrot.lane.b32.xlu0 %v5030_v6, %s6189_s27  ;;  %v6367_v17 = vpop.permute.xlu1 %4756  ;;  %v543_v59 = vld [vmem:[#allocation2 + $0x25] sm:$0xff] }
  0x9d   : > { %v6369_v20 = vpop.permute.xlu0 %4751  ;;  %5046 = vrot.lane.b32.xlu1 %v5045_v13, %s6189_s27 }
  0x9f   : > { %5041 = vrot.lane.b32.xlu0 %v5040_v14, %s6189_s27  ;;  %v6373_v25 = vpop.permute.xlu1 %4766  ;;  %v517_v14 = vld [vmem:[#allocation2 + $0x74] sm:$0xff] }
  0xa0   : > { %v6432_v19 = vpack.i.bf16 %v518_v15, %v517_v14  ;;  %v537_v14 = vld [vmem:[#allocation2 + $0x114] sm:$0xff]  ;;  %v538_v15 = vld [vmem:[#allocation2 + $0x11c] sm:$0xff] }
  0xa1   : > { %v6375_v28 = vpop.permute.xlu0 %4761  ;;  %5056 = vrot.lane.b32.xlu1 %v5055_v21, %s6189_s27  ;;  %v523_v21 = vld [vmem:[#allocation2 + $0xa4] sm:$0xff] }
  0xa3   : > { %5051 = vrot.lane.b32.xlu0 %v5050_v22, %s6189_s27  ;;  %v6379_v33 = vpop.permute.xlu1 %4776  ;;  %v524_v22 = vld [vmem:[#allocation2 + $0xac] sm:$0xff] }
  0xa5   : > { %v6381_v36 = vpop.permute.xlu0 %4771  ;;  %5066 = vrot.lane.b32.xlu1 %v5065_v29, %s6189_s27  ;;  %v6440_v29 = vpack.i.bf16 %v524_v22, %v523_v21  ;;  %v5175_v22 = vpack.i.bf16 %v540_v10, %v539_v5  ;;  %v544_v5 = vld [vmem:[#allocation2 + $0x2d] sm:$0xff] }
  0xa6   : > { %v5270_v10 = vpack.i.bf16 %v544_v5, %v543_v59  ;;  %v552_v59 = vld [vmem:[#allocation2 + $0x6d] sm:$0xff] }
  0xa7   : > { %5061 = vrot.lane.b32.xlu0 %v5060_v30, %s6189_s27  ;;  %v6385_v41 = vpop.permute.xlu1 %4786  ;;  %v5130_v30 = vpack.i.bf16 %v522_v26, %v521_v24  ;;  %v5170_v24 = vpack.i.bf16 %v538_v15, %v537_v14  ;;  %v549_v14 = vld [vmem:[#allocation2 + $0x55] sm:$0xff]  ;;  %v550_v15 = vld [vmem:[#allocation2 + $0x5d] sm:$0xff] }
  0xa9   : > { %v6387_v44 = vpop.permute.xlu0 %4781  ;;  %5076 = vrot.lane.b32.xlu1 %v5075_v37, %s6189_s27  ;;  %v526_v37 = vld [vmem:[#allocation2 + $0xbc] sm:$0xff] }
  0xaa   : > { %v5140_v40 = vpack.i.bf16 %v526_v37, %v525_v35 }
  0xab   : > { %5071 = vrot.lane.b32.xlu0 %v5070_v38, %s6189_s27  ;;  %v6391_v49 = vpop.permute.xlu1 %4796 }
  0xad   : > { %v6393_v52 = vpop.permute.xlu0 %4791  ;;  %5086 = vrot.lane.b32.xlu1 %v5085_v45, %s6189_s27 }
  0xaf   : > { %5081 = vrot.lane.b32.xlu0 %v5080_v46, %s6189_s27  ;;  %v6399_v57 = vpop.permute.xlu1 %4806  ;;  %v529_v46 = vld [vmem:[#allocation2 + $0xd4] sm:$0xff] }
  0xb0   : > { %v5150_v51 = vpack.i.bf16 %v530_v47, %v529_v46  ;;  %v542_v47 = vld [vmem:[#allocation2 + $0x13c] sm:$0xff] }
  0xb1   : > { %v6401_v60 = vpop.permute.xlu0 %4801  ;;  %5096 = vrot.lane.b32.xlu1 %v6396_v53, %s6190_s28 }
  0xb3   : > { %5091 = vrot.lane.b32.xlu0 %v5090_v54, %s6190_s28  ;;  %v6410_v2 = vpop.permute.xlu1 %4816  ;;  %v535_v54 = vld [vmem:[#allocation2 + $0x104] sm:$0xff] }
  0xb4   : > { %v5165_v0 = vpack.i.bf16 %v536_v55, %v535_v54 }
  0xb5   : > { %v6412_v6 = vpop.permute.xlu0 %4811  ;;  %5106 = vrot.lane.b32.xlu1 %v6405_v61, %s6190_s28 }
  0xb7   : > { %5101 = vrot.lane.b32.xlu0 %v6408_v62, %s6190_s28  ;;  %v6422_v13 = vpop.permute.xlu1 %4826 }
  0xb9   : > { %v6424_v16 = vpop.permute.xlu0 %4821  ;;  %5116 = vrot.lane.b32.xlu1 %v6416_v7, %s6190_s28 }
  0xbb   : > { %5111 = vrot.lane.b32.xlu0 %v6420_v8, %s6190_s28  ;;  %v6434_v23 = vpop.permute.xlu1 %4836 }
  0xbd   : > { %v6436_v27 = vpop.permute.xlu0 %4831  ;;  %5126 = vrot.lane.b32.xlu1 %v6428_v18, %s6190_s28 }
  0xbf   : > { %5121 = vrot.lane.b32.xlu0 %v6432_v19, %s6190_s28  ;;  %v6444_v34 = vpop.permute.xlu1 %4846 }
  0xc1   : > { %v6446_v38 = vpop.permute.xlu0 %4841  ;;  %5136 = vrot.lane.b32.xlu1 %v6440_v29, %s6190_s28 }
  0xc3   : > { %5131 = vrot.lane.b32.xlu0 %v5130_v30, %s6190_s28  ;;  %v6451_v45 = vpop.permute.xlu1 %4856 }
  0xc5   : > { %v6453_v48 = vpop.permute.xlu0 %4851  ;;  %5146 = vrot.lane.b32.xlu1 %v5145_v39, %s6190_s28 }
  0xc7   : > { %5141 = vrot.lane.b32.xlu0 %v5140_v40, %s6190_s28  ;;  %v6457_v56 = vpop.permute.xlu1 %4866 }
  0xc9   : > { %v6459_v63 = vpop.permute.xlu0 %4861  ;;  %5156 = vrot.lane.b32.xlu1 %v5155_v50, %s6190_s28 }
  0xcb   : > { %5151 = vrot.lane.b32.xlu0 %v5150_v51, %s6190_s28  ;;  %v6463_v11 = vpop.permute.xlu1 %4876 }
  0xcd   : > { %v6465_v21 = vpop.permute.xlu0 %4871  ;;  %5166 = vrot.lane.b32.xlu1 %v5165_v0, %s6190_s28 }
  0xce   : > { %8856 = vst [vmem:[#allocation4_spill] sm:$0xff] %v6465_v21  ;;  %v382_v21 = vld [vmem:[#allocation2 + $0xb8] sm:$0xff] }
  0xcf   : > { %5161 = vrot.lane.b32.xlu0 %v5160_v3, %s6190_s28  ;;  %v6469_v26 = vpop.permute.xlu1 %4886 }
  0xd0   : > { %8857 = vst [vmem:[#allocation5_spill] sm:$0xff] %v6469_v26 }
  0xd1   : > { %v6471_v31 = vpop.permute.xlu0 %4881  ;;  %5176 = vrot.lane.b32.xlu1 %v5175_v22, %s6190_s28 }
  0xd2   : > { %8858 = vst [vmem:[#allocation6_spill] sm:$0xff] %v6471_v31 }
  0xd3   : > { %5171 = vrot.lane.b32.xlu0 %v5170_v24, %s6190_s28  ;;  %v6475_v32 = vpop.permute.xlu1 %4896  ;;  %s6198_s28 = smov 64  }
  0xd4   : > { %8859 = vst [vmem:[#allocation7_spill] sm:$0xff] %v6475_v32  ;;  %v4768_v32 = vunpack.i.l.bf16 %v6373_v25 }
  0xd5   : > { %v6477_v35 = vpop.permute.xlu0 %4891  ;;  %5186 = vrot.lane.b32.xlu1 %v6408_v62, %s6191_s29 }
  0xd6   : > { %8860 = vst [vmem:[#allocation8_spill] sm:$0xff] %v6477_v35  ;;  %v368_v35 = vld [vmem:[#allocation2 + $0x48] sm:$0xff] }
  0xd7   : > { %5181 = vrot.lane.b32.xlu0 %v6396_v53, %s6191_s29  ;;  %v6483_v37 = vpop.permute.xlu1 %4906 }
  0xd9   : > { %v6485_v42 = vpop.permute.xlu0 %4901  ;;  %5196 = vrot.lane.b32.xlu1 %v6420_v8, %s6191_s29 }
  0xda   : > { %8861 = vst [vmem:[#allocation9_spill] sm:$0xff] %v6485_v42  ;;  %v367_v42 = vld [vmem:[#allocation2 + $0x40] sm:$0xff] }
  0xdb   : > { %5191 = vrot.lane.b32.xlu0 %v6405_v61, %s6191_s29  ;;  %v6491_v43 = vpop.permute.xlu1 %4916 }
  0xdc   : > { %8862 = vst [vmem:[#allocation10_spill] sm:$0xff] %v6491_v43 }
  0xdd   : > { %v6493_v46 = vpop.permute.xlu0 %4911  ;;  %5206 = vrot.lane.b32.xlu1 %v6432_v19, %s6191_s29 }
  0xde   : > { %8863 = vst [vmem:[#allocation11_spill] sm:$0xff] %v6493_v46  ;;  %v4753_v46 = vunpack.i.l.bf16 %v6369_v20 }
  0xdf   : > { %5201 = vrot.lane.b32.xlu0 %v6416_v7, %s6191_s29  ;;  %v6499_v53 = vpop.permute.xlu1 %4926 }
  0xe0   : > { %8864 = vst [vmem:[#allocation12_spill] sm:$0xff] %v6499_v53  ;;  %v4754_v53 = vunpack.i.h.bf16 %v6369_v20 }
  0xe1   : > { %v6501_v62 = vpop.permute.xlu0 %4921  ;;  %5216 = vrot.lane.b32.xlu1 %v5130_v30, %s6191_s29 }
  0xe2   : > { %8865 = vst [vmem:[#allocation13_spill] sm:$0xff] %v6501_v62  ;;  %v369_v62 = vld [vmem:[#allocation2 + $0x50] sm:$0xff] }
  0xe3   : > { %5211 = vrot.lane.b32.xlu0 %v6428_v18, %s6191_s29  ;;  %v6506_v61 = vpop.permute.xlu1 %4936 }
  0xe4   : > { %8866 = vst [vmem:[#allocation14_spill] sm:$0xff] %v6506_v61  ;;  %v362_v61 = vld [vmem:[#allocation2 + $0x18] sm:$0xff] }
  0xe5   : > { %v6508_v8 = vpop.permute.xlu0 %4931  ;;  %5226 = vrot.lane.b32.xlu1 %v5140_v40, %s6191_s29  ;;  %v541_v40 = vld [vmem:[#allocation2 + $0x134] sm:$0xff] }
  0xe6   : > { %8867 = vst [vmem:[#allocation15_spill] sm:$0xff] %v6508_v8  ;;  %v5265_v55 = vpack.i.bf16 %v542_v47, %v541_v40  ;;  %v547_v40 = vld [vmem:[#allocation2 + $0x45] sm:$0xff] }
  0xe7   : > { %5221 = vrot.lane.b32.xlu0 %v6440_v29, %s6191_s29  ;;  %v6513_v19 = vpop.permute.xlu1 %4946 }
  0xe8   : > { %8868 = vst [vmem:[#allocation16_spill] sm:$0xff] %v6513_v19  ;;  %v365_v19 = vld [vmem:[#allocation2 + $0x30] sm:$0xff] }
  0xe9   : > { %v6515_v7 = vpop.permute.xlu0 %4941  ;;  %5236 = vrot.lane.b32.xlu1 %v5150_v51, %s6191_s29  ;;  %v546_v51 = vld [vmem:[#allocation2 + $0x3d] sm:$0xff] }
  0xea   : > { %8869 = vst [vmem:[#allocation17_spill] sm:$0xff] %v6515_v7  ;;  %v4733_v7 = vunpack.i.l.bf16 %v6357_v4 }
  0xeb   : > { %5231 = vrot.lane.b32.xlu0 %v5145_v39, %s6191_s29  ;;  %v6519_v30 = vpop.permute.xlu1 %4956  ;;  %v545_v39 = vld [vmem:[#allocation2 + $0x35] sm:$0xff] }
  0xec   : > { %8870 = vst [vmem:[#allocation18_spill] sm:$0xff] %v6519_v30  ;;  %v4734_v30 = vunpack.i.h.bf16 %v6357_v4  ;;  %v361_v4 = vld [vmem:[#allocation2 + $0x10] sm:$0xff] }
  0xed   : > { %v6521_v18 = vpop.permute.xlu0 %4951  ;;  %5246 = vrot.lane.b32.xlu1 %v5160_v3, %s6191_s29 }
  0xee   : > { %8871 = vst [vmem:[#allocation19_spill] sm:$0xff] %v6521_v18  ;;  %v597_v18 = vld [vmem:[#allocation2 + $0xb6] sm:$0xff] }
  0xef   : > { %5241 = vrot.lane.b32.xlu0 %v5155_v50, %s6191_s29  ;;  %v6525_v54 = vpop.permute.xlu1 %4966  ;;  %v5275_v50 = vpack.i.bf16 %v546_v51, %v545_v39  ;;  %v554_v39 = vld [vmem:[#allocation2 + $0x7d] sm:$0xff] }
  0xf0   : > { %8872 = vst [vmem:[#allocation20_spill] sm:$0xff] %v6525_v54  ;;  %v561_v54 = vld [vmem:[#allocation2 + $0xb5] sm:$0xff] }
  0xf1   : > { %v6527_v29 = vpop.permute.xlu0 %4961  ;;  %5256 = vrot.lane.b32.xlu1 %v5170_v24, %s6191_s29 }
  0xf2   : > { %8873 = vst [vmem:[#allocation21_spill] sm:$0xff] %v6527_v29  ;;  %v557_v29 = vld [vmem:[#allocation2 + $0x95] sm:$0xff] }
  0xf3   : > { %5251 = vrot.lane.b32.xlu0 %v5165_v0, %s6191_s29  ;;  %v6531_v58 = vpop.permute.xlu1 %4976  ;;  %v548_v0 = vld [vmem:[#allocation2 + $0x4d] sm:$0xff] }
  0xf4   : > { %8874 = vst [vmem:[#allocation22_spill] sm:$0xff] %v6531_v58  ;;  %v5285_v58 = vpack.i.bf16 %v550_v15, %v549_v14  ;;  %v556_v15 = vld [vmem:[#allocation2 + $0x8d] sm:$0xff] }
  0xf5   : > { %v6533_v3 = vpop.permute.xlu0 %4971  ;;  %5266 = vrot.lane.b32.xlu1 %v5265_v55, %s6191_s29  ;;  %v553_v55 = vld [vmem:[#allocation2 + $0x75] sm:$0xff] }
  0xf6   : > { %8875 = vst [vmem:[#allocation23_spill] sm:$0xff] %v6533_v3  ;;  %v5280_v3 = vpack.i.bf16 %v548_v0, %v547_v40 }
  0xf7   : > { %5261 = vrot.lane.b32.xlu0 %v5175_v22, %s6191_s29  ;;  %v6537_v24 = vpop.permute.xlu1 %4986  ;;  %v551_v22 = vld [vmem:[#allocation2 + $0x65] sm:$0xff] }
  0xf8   : > { %8876 = vst [vmem:[#allocation24_spill] sm:$0xff] %v6537_v24  ;;  %v5295_v24 = vpack.i.bf16 %v554_v39, %v553_v55  ;;  %v560_v39 = vld [vmem:[#allocation2 + $0xad] sm:$0xff] }
  0xf9   : > { %v6539_v47 = vpop.permute.xlu0 %4981  ;;  %5276 = vrot.lane.b32.xlu1 %v5275_v50, %s6192_s30  ;;  %v558_v50 = vld [vmem:[#allocation2 + $0x9d] sm:$0xff] }
  0xfa   : > { %8877 = vst [vmem:[#allocation25_spill] sm:$0xff] %v6539_v47  ;;  %v5290_v47 = vpack.i.bf16 %v552_v59, %v551_v22  ;;  %v5305_v0 = vpack.i.bf16 %v558_v50, %v557_v29  ;;  %v564_v50 = vld [vmem:[#allocation2 + $0xcd] sm:$0xff] }
  0xfb   : > { %5271 = vrot.lane.b32.xlu0 %v5270_v10, %s6192_s30  ;;  %v6543_v51 = vpop.permute.xlu1 %4996  ;;  %v555_v10 = vld [vmem:[#allocation2 + $0x85] sm:$0xff] }
  0xfd   : > { %v6545_v5 = vpop.permute.xlu0 %4991  ;;  %5286 = vrot.lane.b32.xlu1 %v5285_v58, %s6192_s30  ;;  %v562_v58 = vld [vmem:[#allocation2 + $0xbd] sm:$0xff] }
  0xfe   : > { %8878 = vst [vmem:[#allocation26_spill] sm:$0xff] %v6545_v5  ;;  %v5300_v5 = vpack.i.bf16 %v556_v15, %v555_v10  ;;  %v5315_v59 = vpack.i.bf16 %v562_v58, %v561_v54 }
  0xff   : > { %5281 = vrot.lane.b32.xlu0 %v5280_v3, %s6192_s30  ;;  %v6549_v14 = vpop.permute.xlu1 %5006  ;;  %v559_v3 = vld [vmem:[#allocation2 + $0xa5] sm:$0xff] }
 0x100   : > { %8879 = vst [vmem:[#allocation27_spill] sm:$0xff] %v6549_v14  ;;  %v565_v14 = vld [vmem:[#allocation2 + $0xd5] sm:$0xff] }
 0x101   : > { %v6551_v40 = vpop.permute.xlu0 %5001  ;;  %5296 = vrot.lane.b32.xlu1 %v5295_v24, %s6192_s30  ;;  %v566_v24 = vld [vmem:[#allocation2 + $0xdd] sm:$0xff] }
 0x102   : > { %8880 = vst [vmem:[#allocation28_spill] sm:$0xff] %v6551_v40  ;;  %v5310_v40 = vpack.i.bf16 %v560_v39, %v559_v3  ;;  %v5325_v15 = vpack.i.bf16 %v566_v24, %v565_v14  ;;  %v567_v3 = vld [vmem:[#allocation2 + $0xe5] sm:$0xff]  ;;  %v568_v39 = vld [vmem:[#allocation2 + $0xed] sm:$0xff]  ;;  %v573_v24 = vld [vmem:[#allocation2 + $0x115] sm:$0xff] }
 0x103   : > { %5291 = vrot.lane.b32.xlu0 %v5290_v47, %s6192_s30  ;;  %v6555_v55 = vpop.permute.xlu1 %5016  ;;  %v563_v47 = vld [vmem:[#allocation2 + $0xc5] sm:$0xff] }
 0x104   : > { %8881 = vst [vmem:[#allocation29_spill] sm:$0xff] %v6555_v55  ;;  %v5320_v54 = vpack.i.bf16 %v564_v50, %v563_v47  ;;  %v574_v47 = vld [vmem:[#allocation2 + $0x11d] sm:$0xff] }
 0x105   : > { %v6557_v22 = vpop.permute.xlu0 %5011  ;;  %5306 = vrot.lane.b32.xlu1 %v5305_v0, %s6192_s30  ;;  %v570_v0 = vld [vmem:[#allocation2 + $0xfd] sm:$0xff] }
 0x106   : > { %8882 = vst [vmem:[#allocation30_spill] sm:$0xff] %v6557_v22  ;;  %v6170_v22 = vld [vmem:[%s8773_s1] sm:$0xff]  }
 0x107   : > { %5301 = vrot.lane.b32.xlu0 %v5300_v5, %s6192_s30  ;;  %v6561_v29 = vpop.permute.xlu1 %5026  ;;  %v569_v5 = vld [vmem:[#allocation2 + $0xf5] sm:$0xff]  ;;  %4617 = vmatprep.subr.bf16.mxu0 %v6170_v22 }
 0x108   : > { %8883 = vst [vmem:[#allocation31_spill] sm:$0xff] %v6561_v29  ;;  %4618 = vmatpush3.bf16.msra.mxu0 %v6170_v22  ;;  %v5335_v14 = vpack.i.bf16 %v570_v0, %v569_v5  ;;  %v5345_v22 = vpack.i.bf16 %v574_v47, %v573_v24  ;;  %v577_v5 = vld [vmem:[#allocation2 + $0x135] sm:$0xff]  ;;  %v578_v0 = vld [vmem:[#allocation2 + $0x13d] sm:$0xff]  ;;  %v579_v47 = vld [vmem:[#allocation2 + $0x26] sm:$0xff] }
 0x109   : > { %v6563_v10 = vpop.permute.xlu0 %5021  ;;  %5316 = vrot.lane.b32.xlu1 %v5315_v59, %s6192_s30  ;;  %v6171_v59 = vld [vmem:[%s8773_s1 + $0x8] sm:$0xff]  }
 0x10a   : > { %8884 = vst [vmem:[#allocation32_spill] sm:$0xff] %v6563_v10  ;;  %v572_v10 = vld [vmem:[#allocation2 + $0x10d] sm:$0xff]  ;;  %4619 = vmatprep.subr.bf16.mxu0 %v6171_v59 }
 0x10b   : > { %5311 = vrot.lane.b32.xlu0 %v5310_v40, %s6192_s30  ;;  %v6570_v58 = vpop.permute.xlu1 %5036  ;;  %v5330_v40 = vpack.i.bf16 %v568_v39, %v567_v3  ;;  %v575_v39 = vld [vmem:[#allocation2 + $0x125] sm:$0xff] }
 0x10c   : > { %8885 = vst [vmem:[#allocation33_spill] sm:$0xff] %v6570_v58  ;;  %v571_v58 = vld [vmem:[#allocation2 + $0x105] sm:$0xff]  ;;  %4620 = vmatpush3.bf16.msra.mxu0 %v6171_v59 }
 0x10d   : > { %v6572_v29 = vpop.permute.xlu0 %5031  ;;  %5326 = vrot.lane.b32.xlu1 %v5325_v15, %s6192_s30  ;;  %v6172_v15 = vld [vmem:[%s8773_s1 + $0x10] ss:$0 sps:$4 sm:$0x33]  }
 0x10e   : > { %8886 = vst [vmem:[#allocation34_spill] sm:$0xff] %v6572_v29  ;;  %4705 = vmatprep.subr.msk.bf16.mxu0 %vm2093_vm1, %v6172_v15  ;;  %v580_v29 = vld [vmem:[#allocation2 + $0x2e] sm:$0xff] }
 0x10f   : > { %5321 = vrot.lane.b32.xlu0 %v5320_v54, %s6192_s30  ;;  %v6579_v50 = vpop.permute.xlu1 %5046  ;;  %v5340_v54 = vpack.i.bf16 %v572_v10, %v571_v58  ;;  %v582_v10 = vld [vmem:[#allocation2 + $0x3e] sm:$0xff] }
 0x110   : > { %8887 = vst [vmem:[#allocation35_spill] sm:$0xff] %v6579_v50  ;;  %v576_v50 = vld [vmem:[#allocation2 + $0x12d] sm:$0xff] }
 0x111   : > { %v6581_v55 = vpop.permute.xlu0 %5041  ;;  %5336 = vrot.lane.b32.xlu1 %v5335_v14, %s6192_s30  ;;  %v5355_v14 = vpack.i.bf16 %v578_v0, %v577_v5  ;;  %v5350_v24 = vpack.i.bf16 %v576_v50, %v575_v39  ;;  %v584_v50 = vld [vmem:[#allocation2 + $0x4e] sm:$0xff] }
 0x112   : > { %8888 = vst [vmem:[#allocation36_spill] sm:$0xff] %v6581_v55  ;;  %v2095_v55 = vsel %vm2093_vm1, %v6172_v15, 0  ;;  %vm4056_vm1 = vcmask 588800  }
 0x113   : > { %5331 = vrot.lane.b32.xlu0 %v5330_v40, %s6192_s30  ;;  %v6588_v3 = vpop.permute.xlu1 %5056  ;;  %4622 = vmatpush3.bf16.msra.mxu0 %v2095_v55  ;;  %v581_v40 = vld [vmem:[#allocation2 + $0x36] sm:$0xff]  ;;  %v5360_v55 = vpack.i.bf16 %v580_v29, %v579_v47  ;;  %v587_v29 = vld [vmem:[#allocation2 + $0x66] sm:$0xff] }
 0x114   : > { %8889 = vst [vmem:[#allocation37_spill] sm:$0xff] %v6588_v3  ;;  %v5365_v15 = vpack.i.bf16 %v582_v10, %v581_v40  ;;  %v590_v40 = vld [vmem:[#allocation2 + $0x7e] sm:$0xff] }
 0x115   : > { %v6590_v59 = vpop.permute.xlu0 %5051  ;;  %5346 = vrot.lane.b32.xlu1 %v5345_v22, %s6192_s30  ;;  %v586_v22 = vld [vmem:[#allocation2 + $0x5e] sm:$0xff] }
 0x116   : > { %8890 = vst [vmem:[#allocation38_spill] sm:$0xff] %v6590_v59  ;;  %v585_v59 = vld [vmem:[#allocation2 + $0x56] sm:$0xff] }
 0x117   : > { %5341 = vrot.lane.b32.xlu0 %v5340_v54, %s6192_s30  ;;  %v6594_v58 = vpop.permute.xlu1 %5066  ;;  %v583_v54 = vld [vmem:[#allocation2 + $0x46] sm:$0xff]  ;;  %v5375_v39 = vpack.i.bf16 %v586_v22, %v585_v59  ;;  %v592_v22 = vld [vmem:[#allocation2 + $0x8e] sm:$0xff] }
 0x118   : > { %8891 = vst [vmem:[#allocation39_spill] sm:$0xff] %v6594_v58  ;;  %v593_v58 = vld [vmem:[#allocation2 + $0x96] sm:$0xff] }
 0x119   : > { %v6596_v3 = vpop.permute.xlu0 %5061  ;;  %5356 = vrot.lane.b32.xlu1 %v5355_v14, %s6192_s30  ;;  %v589_v14 = vld [vmem:[#allocation2 + $0x76] sm:$0xff] }
 0x11a   : > { %8892 = vst [vmem:[#allocation40_spill] sm:$0xff] %v6596_v3  ;;  %v5370_v3 = vpack.i.bf16 %v584_v50, %v583_v54 }
 0x11b   : > { %5351 = vrot.lane.b32.xlu0 %v5350_v24, %s6192_s30  ;;  %v6600_v5 = vpop.permute.xlu1 %5076  ;;  %v588_v24 = vld [vmem:[#allocation2 + $0x6e] sm:$0xff] }
 0x11c   : > { %8893 = vst [vmem:[#allocation41_spill] sm:$0xff] %v6600_v5  ;;  %v5385_v5 = vpack.i.bf16 %v590_v40, %v589_v14  ;;  %v596_v40 = vld [vmem:[#allocation2 + $0xae] sm:$0xff] }
 0x11d   : > { %v6602_v0 = vpop.permute.xlu0 %5071  ;;  %5366 = vrot.lane.b32.xlu1 %v5365_v15, %s6193_s12  ;;  %v594_v15 = vld [vmem:[#allocation2 + $0x9e] sm:$0xff] }
 0x11e   : > { %8894 = vst [vmem:[#allocation42_spill] sm:$0xff] %v6602_v0  ;;  %v5380_v0 = vpack.i.bf16 %v588_v24, %v587_v29  ;;  %v5395_v50 = vpack.i.bf16 %v594_v15, %v593_v58  ;;  %v600_v15 = vld [vmem:[#allocation2 + $0xce] sm:$0xff] }
 0x11f   : > { %5361 = vrot.lane.b32.xlu0 %v5360_v55, %s6193_s12  ;;  %v6606_v10 = vpop.permute.xlu1 %5086  ;;  %v591_v55 = vld [vmem:[#allocation2 + $0x86] sm:$0xff] }
 0x121   : > { %v6608_v47 = vpop.permute.xlu0 %5081  ;;  %5376 = vrot.lane.b32.xlu1 %v5375_v39, %s6193_s12  ;;  %v598_v39 = vld [vmem:[#allocation2 + $0xbe] sm:$0xff] }
 0x122   : > { %8895 = vst [vmem:[#allocation43_spill] sm:$0xff] %v6608_v47  ;;  %v5390_v47 = vpack.i.bf16 %v592_v22, %v591_v55  ;;  %v5405_v24 = vpack.i.bf16 %v598_v39, %v597_v18  ;;  %v604_v39 = vld [vmem:[#allocation2 + $0xee] sm:$0xff] }
 0x123   : > { %5371 = vrot.lane.b32.xlu0 %v5370_v3, %s6193_s12  ;;  %v6612_v59 = vpop.permute.xlu1 %5096  ;;  %v595_v3 = vld [vmem:[#allocation2 + $0xa6] sm:$0xff] }
 0x124   : > { %8896 = vst [vmem:[#allocation44_spill] sm:$0xff] %v6612_v59  ;;  %v601_v59 = vld [vmem:[#allocation2 + $0xd6] sm:$0xff] }
 0x125   : > { %v6614_v54 = vpop.permute.xlu0 %5091  ;;  %5386 = vrot.lane.b32.xlu1 %v5385_v5, %s6193_s12  ;;  %v602_v5 = vld [vmem:[#allocation2 + $0xde] sm:$0xff] }
 0x126   : > { %8897 = vst [vmem:[#allocation45_spill] sm:$0xff] %v6614_v54  ;;  %v5400_v54 = vpack.i.bf16 %v596_v40, %v595_v3  ;;  %v5415_v22 = vpack.i.bf16 %v602_v5, %v601_v59  ;;  %v4744_v59 = vunpack.i.h.bf16 %v6355_v1  ;;  %v607_v5 = vld [vmem:[#allocation2 + $0x106] sm:$0xff] }
 0x127   : > { %5381 = vrot.lane.b32.xlu0 %v5380_v0, %s6193_s12  ;;  %v6618_v14 = vpop.permute.xlu1 %5106  ;;  %v599_v0 = vld [vmem:[#allocation2 + $0xc6] sm:$0xff] }
 0x128   : > { %8898 = vst [vmem:[#allocation46_spill] sm:$0xff] %v6618_v14  ;;  %v605_v14 = vld [vmem:[#allocation2 + $0xf6] sm:$0xff] }
 0x129   : > { %v6620_v29 = vpop.permute.xlu0 %5101  ;;  %5396 = vrot.lane.b32.xlu1 %v5395_v50, %s6193_s12  ;;  %v606_v50 = vld [vmem:[#allocation2 + $0xfe] sm:$0xff] }
 0x12a   : > { %8899 = vst [vmem:[#allocation47_spill] sm:$0xff] %v6620_v29  ;;  %v5410_v29 = vpack.i.bf16 %v600_v15, %v599_v0  ;;  %v5425_v40 = vpack.i.bf16 %v606_v50, %v605_v14  ;;  %v608_v0 = vld [vmem:[#allocation2 + $0x10e] sm:$0xff]  ;;  %v363_v14 = vld [vmem:[#allocation2 + $0x20] sm:$0xff]  ;;  %v613_v50 = vld [vmem:[#allocation2 + $0x136] sm:$0xff] }
 0x12b   : > { %5391 = vrot.lane.b32.xlu0 %v5390_v47, %s6193_s12  ;;  %v6624_v58 = vpop.permute.xlu1 %5116  ;;  %v603_v47 = vld [vmem:[#allocation2 + $0xe6] sm:$0xff] }
 0x12c   : > { %8900 = vst [vmem:[#allocation48_spill] sm:$0xff] %v6624_v58  ;;  %v609_v58 = vld [vmem:[#allocation2 + $0x116] sm:$0xff]  ;;  %v364_v15 = vld [vmem:[#allocation2 + $0x28] sm:$0xff] }
 0x12d   : > { %v6626_v55 = vpop.permute.xlu0 %5111  ;;  %5406 = vrot.lane.b32.xlu1 %v5405_v24, %s6193_s12  ;;  %v610_v24 = vld [vmem:[#allocation2 + $0x11e] sm:$0xff] }
 0x12e   : > { %8901 = vst [vmem:[#allocation49_spill] sm:$0xff] %v6626_v55  ;;  %v5420_v55 = vpack.i.bf16 %v604_v39, %v603_v47  ;;  %v614_v47 = vld [vmem:[#allocation2 + $0x13e] sm:$0xff]  ;;  %v6645_v39 = vsel %vm317_vm0, %v364_v15, %v4744_v59  ;;  %v4738_v59 = vunpack.i.l.bf16 %v6363_v12  ;;  %v4759_v15 = vunpack.i.h.bf16 %v6367_v17 }
 0x12f   : > { %5401 = vrot.lane.b32.xlu0 %v5400_v54, %s6193_s12  ;;  %v6630_v18 = vpop.permute.xlu1 %5126 }
 0x130   : > { %8902 = vst [vmem:[#allocation50_spill] sm:$0xff] %v6630_v18 }
 0x131   : > { %v6632_v3 = vpop.permute.xlu0 %5121  ;;  %5416 = vrot.lane.b32.xlu1 %v5415_v22, %s6193_s12  ;;  %v4743_v22 = vunpack.i.l.bf16 %v6355_v1  ;;  %v612_v1 = vld [vmem:[#allocation2 + $0x12e] sm:$0xff] }
 0x132   : > { %8903 = vst [vmem:[#allocation51_spill] sm:$0xff] %v6632_v3  ;;  %v5435_v3 = vpack.i.bf16 %v610_v24, %v609_v58  ;;  %v611_v58 = vld [vmem:[#allocation2 + $0x126] sm:$0xff] }
 0x133   : > { %5411 = vrot.lane.b32.xlu0 %v5410_v29, %s6193_s12  ;;  %v6637_v54 = vpop.permute.xlu1 %5136  ;;  %v5430_v29 = vpack.i.bf16 %v608_v0, %v607_v5  ;;  %v359_v24 = vld [vmem:[#allocation2] sm:$0xff]  ;;  %v4748_v5 = vunpack.i.l.bf16 %v6361_v9  ;;  %v4739_v0 = vunpack.i.h.bf16 %v6363_v12  ;;  %v6663_v43 = vsel %vm317_vm0, %v363_v14, %v4743_v22  ;;  %v370_v12 = vld [vmem:[#allocation2 + $0x58] sm:$0xff] }
 0x134   : > { %8904 = vst [vmem:[#allocation52_spill] sm:$0xff] %v6637_v54  ;;  %v360_v54 = vld [vmem:[#allocation2 + $0x8] sm:$0xff]  ;;  %v6672_v20 = vsel %vm317_vm0, %v359_v24, %v4733_v7  ;;  %v374_v22 = vld [vmem:[#allocation2 + $0x78] sm:$0xff]  ;;  %v4764_v14 = vunpack.i.h.bf16 %v6375_v28  ;;  %v6688_v7 = vsel %vm317_vm0, %v361_v4, %v4738_v59  ;;  %v4999_v59 = vunpack.i.h.bf16 %v6543_v51 }
 0x135   : > { %v6639_v18 = vpop.permute.xlu0 %5131  ;;  %5426 = vrot.lane.b32.xlu1 %v5425_v40, %s6193_s12  ;;  %v6669_v31 = vsel %vm317_vm0, %v360_v54, %v4734_v30  ;;  %v6685_v30 = vsel %vm317_vm0, %v362_v61, %v4739_v0  ;;  %v371_v54 = vld [vmem:[#allocation2 + $0x60] sm:$0xff]  ;;  %v6702_v61 = vsel %vm317_vm0, %v367_v42, %v4753_v46  ;;  %v4818_v0 = vunpack.i.l.bf16 %v6410_v2  ;;  %v393_v46 = vld [vmem:[#allocation2 + $0x110] sm:$0xff] }
 0x136   : > { %8905 = vst [vmem:[#allocation53_spill] sm:$0xff] %v6639_v18  ;;  %v4749_v18 = vunpack.i.h.bf16 %v6361_v9  ;;  %v5445_v9 = vpack.i.bf16 %v614_v47, %v613_v50  ;;  %v4763_v50 = vunpack.i.l.bf16 %v6375_v28  ;;  %v6693_v28 = vsel %vm317_vm0, %v370_v12, %v4759_v15 }
 0x137   : > { %5421 = vrot.lane.b32.xlu0 %v5420_v55, %s6193_s12  ;;  %v6650_v40 = vpop.permute.xlu1 %5146  ;;  %v366_v55 = vld [vmem:[#allocation2 + $0x38] sm:$0xff]  ;;  %v4998_v15 = vunpack.i.l.bf16 %v6543_v51  ;;  %v4773_v12 = vunpack.i.l.bf16 %v6381_v36  ;;  %v377_v51 = vld [vmem:[#allocation2 + $0x90] sm:$0xff] }
 0x138   : > { %8906 = vst [vmem:[#allocation54_spill] sm:$0xff] %v6650_v40  ;;  %v4758_v40 = vunpack.i.l.bf16 %v6367_v17  ;;  %v5440_v17 = vpack.i.bf16 %v612_v1, %v611_v58  ;;  %v372_v58 = vld [vmem:[#allocation2 + $0x68] sm:$0xff]  ;;  %v6718_v42 = vsel %vm317_vm0, %v371_v54, %v4763_v50  ;;  %v1733_v50 = vsel %vm317_vm0, %v393_v46, %v4818_v0 }
 0x139   : > { %v6656_v8 = vpop.permute.xlu0 %5141  ;;  %5436 = vrot.lane.b32.xlu1 %v5435_v3, %s6193_s12  ;;  %v373_v3 = vld [vmem:[#allocation2 + $0x70] sm:$0xff]  ;;  %v376_v54 = vld [vmem:[#allocation2 + $0x88] sm:$0xff] }
 0x13a   : > { %8907 = vst [vmem:[#allocation55_spill] sm:$0xff] %v6656_v8  ;;  %v4769_v8 = vunpack.i.h.bf16 %v6373_v25  ;;  %v6679_v25 = vsel %vm317_vm0, %v366_v55, %v4749_v18  ;;  %v6696_v18 = vsel %vm317_vm0, %v369_v62, %v4758_v40  ;;  %v6709_v55 = vsel %vm317_vm0, %v373_v3, %v4768_v32  ;;  %v378_v3 = vld [vmem:[#allocation2 + $0x98] sm:$0xff] }
 0x13b   : > { %5431 = vrot.lane.b32.xlu0 %v5430_v29, %s6193_s12  ;;  %v6676_v47 = vpop.permute.xlu1 %5156  ;;  %v6682_v29 = vsel %vm317_vm0, %v365_v19, %v4748_v5  ;;  %v6699_v19 = vsel %vm317_vm0, %v368_v35, %v4754_v53  ;;  %v4819_v5 = vunpack.i.h.bf16 %v6410_v2  ;;  %v6715_v35 = vsel %vm317_vm0, %v372_v58, %v4764_v14  ;;  %v394_v53 = vld [vmem:[#allocation2 + $0x118] sm:$0xff] }
 0x13c   : > { %8908 = vst [vmem:[#allocation56_spill] sm:$0xff] %v6676_v47  ;;  %v6706_v24 = vsel %vm317_vm0, %v374_v22, %v4769_v8  ;;  %8910 = vst [vmem:[#allocation58_spill] sm:$0xff] %v6715_v35  ;;  %v4909_v62 = vunpack.i.h.bf16 %v6483_v37  ;;  %v4908_v8 = vunpack.i.l.bf16 %v6483_v37  ;;  %v4779_v40 = vunpack.i.h.bf16 %v6379_v33  ;;  %v381_v47 = vld [vmem:[#allocation2 + $0xb0] sm:$0xff]  ;;  %v380_v35 = vld [vmem:[#allocation2 + $0xa8] sm:$0xff] }
 0x13d   : > { %v6690_v1 = vpop.permute.xlu0 %5151  ;;  %5446 = vrot.lane.b32.xlu1 %v5445_v9, %s6193_s12  ;;  %v4778_v2 = vunpack.i.l.bf16 %v6379_v33  ;;  %v4774_v9 = vunpack.i.h.bf16 %v6381_v36  ;;  %v5088_v37 = vunpack.i.l.bf16 %v6606_v10  ;;  %v4789_v22 = vunpack.i.h.bf16 %v6385_v41 }
 0x13e   : > { %8909 = vst [vmem:[#allocation57_spill] sm:$0xff] %v6690_v1  ;;  %v4788_v14 = vunpack.i.l.bf16 %v6385_v41  ;;  %v1734_v33 = vsel %vm317_vm0, %v394_v53, %v4819_v5  ;;  %v4784_v58 = vunpack.i.h.bf16 %v6387_v44  ;;  %v375_v1 = vld [vmem:[#allocation2 + $0x80] sm:$0xff]  ;;  %v6747_v46 = vsel %vm317_vm0, %v378_v3, %v4779_v40 }
 0x13f   : > { %5441 = vrot.lane.b32.xlu0 %v5440_v17, %s6193_s12  ;;  %v6722_v32 = vpop.permute.xlu1 %5166  ;;  %v5089_v17 = vunpack.i.h.bf16 %v6606_v10  ;;  %v1770_v36 = vsel %vm226_vm2, %v1734_v33, %v4909_v62  ;;  %v6752_v33 = vsel %vm317_vm0, %v377_v51, %v4778_v2  ;;  %v386_v51 = vld [vmem:[#allocation2 + $0xd8] sm:$0xff] }
 0x140   : > { %8911 = vst [vmem:[#allocation59_spill] sm:$0xff] %v6722_v32  ;;  %v4783_v32 = vunpack.i.l.bf16 %v6387_v44  ;;  %v1807_v41 = vsel %vm1771_vm3, %v1770_v36, %v4999_v59  ;;  %v379_v44 = vld [vmem:[#allocation2 + $0xa0] sm:$0xff]  ;;  %v6755_v59 = vsel %vm317_vm0, %v376_v54, %v4774_v9  ;;  %v6772_v9 = vsel %vm317_vm0, %v382_v21, %v4789_v22  ;;  %v384_v54 = vld [vmem:[#allocation2 + $0xc8] sm:$0xff] }
 0x141   : > { %v6728_v4 = vpop.permute.xlu0 %5161  ;;  %v6775_v3 = vsel %vm317_vm0, %v381_v47, %v4788_v14  ;;  %v383_v36 = vld [vmem:[#allocation2 + $0xc0] sm:$0xff]  ;;  %v4809_v21 = vunpack.i.h.bf16 %v6399_v57  ;;  %v4808_v22 = vunpack.i.l.bf16 %v6399_v57  ;;  %v4804_v47 = vunpack.i.h.bf16 %v6401_v60  ;;  %v389_v14 = vld [vmem:[#allocation2 + $0xf0] sm:$0xff] }
 0x142   : > { %8912 = vst [vmem:[#allocation60_spill] sm:$0xff] %v6728_v4  ;;  %v1769_v4 = vsel %vm226_vm2, %v1733_v50, %v4908_v8  ;;  %v1844_v8 = vsel %vm1808_vm4, %v1807_v41, %v5089_v17  ;;  %v4798_v17 = vunpack.i.l.bf16 %v6391_v49  ;;  %v6778_v50 = vsel %vm317_vm0, %v380_v35, %v4784_v58  ;;  %v390_v35 = vld [vmem:[#allocation2 + $0xf8] sm:$0xff]  ;;  %v388_v58 = vld [vmem:[#allocation2 + $0xe8] sm:$0xff] }
 0x143   : > { %v5177_v10 = vpop.permute.xlu1 %5176  ;;  %v1806_v26 = vsel %vm1771_vm3, %v1769_v4, %v4998_v15  ;;  %v6764_v4 = vsel %vm317_vm0, %v375_v1, %v4773_v12  ;;  %v6781_v1 = vsel %vm317_vm0, %v379_v44, %v4783_v32  ;;  %v385_v12 = vld [vmem:[#allocation2 + $0xd0] sm:$0xff]  ;;  %v4803_v32 = vunpack.i.l.bf16 %v6401_v60 }
 0x144   : > { %v5179_v5 = vunpack.i.h.bf16 %v5177_v10  ;;  %v5178_v53 = vunpack.i.l.bf16 %v5177_v10  ;;  %v1843_v62 = vsel %vm1808_vm4, %v1806_v26, %v5088_v37  ;;  %v4799_v26 = vunpack.i.h.bf16 %v6391_v49 }
 0x145   : > { %v6744_v0 = vpop.permute.xlu0 %5171  ;;  %v4794_v37 = vunpack.i.h.bf16 %v6393_v52  ;;  %v4793_v10 = vunpack.i.l.bf16 %v6393_v52  ;;  %v4814_v41 = vunpack.i.h.bf16 %v6412_v6  ;;  %v6797_v52 = vsel %vm317_vm0, %v385_v12, %v4798_v17 }
 0x146   : > { %8913 = vst [vmem:[#allocation61_spill] sm:$0xff] %v6744_v0  ;;  %v6758_v15 = vsel %vm1845_vm5, %v1843_v62, %v5178_v53  ;;  %v6761_v40 = vsel %vm1845_vm5, %v1844_v8, %v5179_v5  ;;  %v4813_v5 = vunpack.i.l.bf16 %v6412_v6  ;;  %v4828_v53 = vunpack.i.l.bf16 %v6422_v13  ;;  %v387_v62 = vld [vmem:[#allocation2 + $0xe0] sm:$0xff]  ;;  %v392_v0 = vld [vmem:[#allocation2 + $0x108] sm:$0xff] }
 0x147   : > { %8914 = vst [vmem:[#allocation62_spill] sm:$0xff] %v6758_v15  ;;  %8915 = vst [vmem:[#allocation63_spill] sm:$0xff] %v6761_v40  ;;  %v6769_v2 = vpop.permute.xlu1 %5186  ;;  %v6794_v44 = vsel %vm317_vm0, %v386_v51, %v4799_v26  ;;  %v6800_v57 = vsel %vm317_vm0, %v384_v54, %v4794_v37  ;;  %v391_v8 = vld [vmem:[#allocation2 + $0x100] sm:$0xff]  ;;  %v4829_v60 = vunpack.i.h.bf16 %v6422_v13  ;;  %v4824_v6 = vunpack.i.h.bf16 %v6424_v16 }
 0x148   : > { %v4823_v15 = vunpack.i.l.bf16 %v6424_v16  ;;  %v4839_v26 = vunpack.i.h.bf16 %v6434_v23  ;;  %v4838_v51 = vunpack.i.l.bf16 %v6434_v23  ;;  %v6812_v37 = vsel %vm317_vm0, %v383_v36, %v4793_v10 }
 0x149   : > { %v6783_v49 = vpop.permute.xlu0 %5181  ;;  %v6815_v12 = vsel %vm317_vm0, %v390_v35, %v4809_v21  ;;  %v6818_v13 = vsel %vm317_vm0, %v389_v14, %v4808_v22  ;;  %v6821_v54 = vsel %vm317_vm0, %v388_v58, %v4804_v47  ;;  %v6824_v16 = vsel %vm317_vm0, %v387_v62, %v4803_v32 }
 0x14a   : > { %v6830_v23 = vsel %vm317_vm0, %v391_v8, %v4813_v5  ;;  %v6834_v36 = vsel %vm226_vm2, %v6688_v7, %v4828_v53  ;;  %v6838_v10 = vsel %vm226_vm2, %v6685_v30, %v4829_v60  ;;  %v4834_v21 = vunpack.i.h.bf16 %v6436_v27 }
 0x14b   : > { %v6803_v40 = vpop.permute.xlu1 %5196  ;;  %v4833_v22 = vunpack.i.l.bf16 %v6436_v27  ;;  %v4849_v47 = vunpack.i.h.bf16 %v6444_v34  ;;  %v6851_v7 = vsel %vm226_vm2, %v6669_v31, %v4824_v6  ;;  %v6855_v30 = vsel %vm226_vm2, %v6679_v25, %v4839_v26  ;;  %v8920_v6 = vld [vmem:[#allocation58_spill] sm:$0xff]  ;;  %v8921_v26 = vld [vmem:[#allocation4_spill] sm:$0xff] }
 0x14c   : > { %8916 = vst [vmem:[#allocation64_spill] sm:$0xff] %v6803_v40  ;;  %v6827_v40 = vsel %vm317_vm0, %v392_v0, %v4814_v41  ;;  %v6847_v0 = vsel %vm226_vm2, %v6672_v20, %v4823_v15  ;;  %v6859_v35 = vsel %vm226_vm2, %v6682_v29, %v4838_v51  ;;  %v4848_v58 = vunpack.i.l.bf16 %v6444_v34 }
 0x14d   : > { %v6809_v17 = vpop.permute.xlu0 %5191  ;;  %v4844_v32 = vunpack.i.h.bf16 %v6446_v38  ;;  %v4843_v20 = vunpack.i.l.bf16 %v6446_v38  ;;  %v4859_v15 = vunpack.i.h.bf16 %v6451_v45  ;;  %v4858_v31 = vunpack.i.l.bf16 %v6451_v45 }
 0x14e   : > { %v4854_v41 = vunpack.i.h.bf16 %v6453_v48  ;;  %v4853_v25 = vunpack.i.l.bf16 %v6453_v48  ;;  %v4869_v5 = vunpack.i.h.bf16 %v6457_v56  ;;  %v6873_v29 = vsel %vm226_vm2, %v6645_v39, %v4834_v21 }
 0x14f   : > { %v6843_v14 = vpop.permute.xlu1 %5206  ;;  %v6877_v34 = vsel %vm226_vm2, %v6663_v43, %v4833_v22  ;;  %v6881_v38 = vsel %vm226_vm2, %v6693_v28, %v4849_v47  ;;  %v4868_v45 = vunpack.i.l.bf16 %v6457_v56  ;;  %v4864_v48 = vunpack.i.h.bf16 %v6459_v63 }
 0x150   : > { %8917 = vst [vmem:[#allocation65_spill] sm:$0xff] %v6843_v14  ;;  %v4863_v62 = vunpack.i.l.bf16 %v6459_v63  ;;  %v4879_v8 = vunpack.i.h.bf16 %v6463_v11  ;;  %v4878_v39 = vunpack.i.l.bf16 %v6463_v11  ;;  %v6894_v43 = vsel %vm226_vm2, %v6696_v18, %v4848_v58  ;;  %v8963_v14 = vld [vmem:[#allocation35_spill] sm:$0xff] }
 0x151   : > { %v6861_v27 = vpop.permute.xlu0 %5201  ;;  %v6898_v28 = vsel %vm226_vm2, %v6702_v61, %v4843_v20  ;;  %v6902_v56 = vsel %vm226_vm2, %v6699_v19, %v4844_v32  ;;  %v6906_v63 = vsel %vm226_vm2, %v6706_v24, %v4859_v15  ;;  %v6910_v11 = vsel %vm226_vm2, %v6709_v55, %v4858_v31  ;;  %v8926_v15 = vld [vmem:[#allocation7_spill] sm:$0xff] }
 0x152   : > { %v6914_v18 = vsel %vm226_vm2, %v6718_v42, %v4853_v25  ;;  %v6918_v61 = vsel %vm226_vm2, %v8920_v6, %v4854_v41  ;;  %v6922_v19 = vsel %vm226_vm2, %v6747_v46, %v4869_v5  ;;  %v6926_v24 = vsel %vm226_vm2, %v6752_v33, %v4868_v45  ;;  %v8927_v25 = vld [vmem:[#allocation8_spill] sm:$0xff] }
 0x153   : > { %v6884_v53 = vpop.permute.xlu1 %5216  ;;  %v4874_v51 = vunpack.i.h.bf16 %v8921_v26  ;;  %v4873_v55 = vunpack.i.l.bf16 %v8921_v26  ;;  %v6934_v42 = vsel %vm226_vm2, %v6764_v4, %v4863_v62  ;;  %v6938_v22 = vsel %vm226_vm2, %v6755_v59, %v4864_v48  ;;  %v8924_v59 = vld [vmem:[#allocation5_spill] sm:$0xff] }
 0x154   : > { %8918 = vst [vmem:[#allocation66_spill] sm:$0xff] %v6884_v53  ;;  %v6942_v46 = vsel %vm226_vm2, %v6772_v9, %v4879_v8  ;;  %v6946_v33 = vsel %vm226_vm2, %v6775_v3, %v4878_v39  ;;  %v8836_v58 = vmov 0.0   ;;  %v4889_v4 = vunpack.i.h.bf16 %v8924_v59  ;;  %v8925_v3 = vld [vmem:[#allocation6_spill] sm:$0xff]  ;;  %v8928_v8 = vld [vmem:[#allocation9_spill] sm:$0xff] }
 0x155   : > { %v6890_v60 = vpop.permute.xlu0 %5211  ;;  %227 = vst.msk [vmem:[#allocation3] sm:$0xff] %vm226_vm2, %v8836_v58  ;;  %228 = vst.msk [vmem:[#allocation3 + $0x8] sm:$0xff] %vm226_vm2, %v8836_v58  ;;  %v4888_v9 = vunpack.i.l.bf16 %v8924_v59  ;;  %v4884_v32 = vunpack.i.h.bf16 %v8925_v3  ;;  %v4883_v20 = vunpack.i.l.bf16 %v8925_v3  ;;  %v4899_v31 = vunpack.i.h.bf16 %v8926_v15  ;;  %v8930_v59 = vld [vmem:[#allocation10_spill] sm:$0xff] }
 0x156   : > { %8919 = vst [vmem:[#allocation67_spill] sm:$0xff] %v6890_v60  ;;  %231 = vst.msk [vmem:[#allocation3 + $0x133] sm:$0xff] %vm226_vm2, %v8836_v58  ;;  %v4898_v41 = vunpack.i.l.bf16 %v8926_v15  ;;  %v4894_v5 = vunpack.i.h.bf16 %v8927_v25  ;;  %v4893_v45 = vunpack.i.l.bf16 %v8927_v25  ;;  %v6968_v48 = vsel %vm226_vm2, %v6781_v1, %v4873_v55  ;;  %v8962_v53 = vld [vmem:[#allocation34_spill] sm:$0xff] }
 0x157   : > { %v6930_v21 = vpop.permute.xlu1 %5226  ;;  %232 = vst.msk [vmem:[#allocation3 + $0x13b] sm:$0xff] %vm226_vm2, %v8836_v58  ;;  %v6972_v62 = vsel %vm226_vm2, %v6778_v50, %v4874_v51  ;;  %v4904_v39 = vunpack.i.h.bf16 %v8928_v8  ;;  %v4903_v6 = vunpack.i.l.bf16 %v8928_v8  ;;  %v4919_v3 = vunpack.i.h.bf16 %v8930_v59  ;;  %v8931_v58 = vld [vmem:[#allocation11_spill] sm:$0xff] }
 0x158   : > { %8922 = vst [vmem:[#allocation58_spill] sm:$0xff] %v6930_v21  ;;  %v4918_v15 = vunpack.i.l.bf16 %v8930_v59  ;;  %v4914_v25 = vunpack.i.h.bf16 %v8931_v58  ;;  %v4913_v21 = vunpack.i.l.bf16 %v8931_v58  ;;  %v6986_v50 = vsel %vm226_vm2, %v6794_v44, %v4889_v4  ;;  %v8933_v4 = vld [vmem:[#allocation12_spill] sm:$0xff] }
 0x159   : > { %v6948_v47 = vpop.permute.xlu0 %5221  ;;  %v6990_v51 = vsel %vm226_vm2, %v6797_v52, %v4888_v9  ;;  %v6994_v55 = vsel %vm226_vm2, %v6812_v37, %v4883_v20  ;;  %v6998_v8 = vsel %vm226_vm2, %v6800_v57, %v4884_v32  ;;  %v7002_v58 = vsel %vm226_vm2, %v6815_v12, %v4899_v31  ;;  %v8936_v31 = vld [vmem:[#allocation13_spill] sm:$0xff] }
 0x15a   : > { %8923 = vst [vmem:[#allocation4_spill] sm:$0xff] %v6948_v47  ;;  %v7006_v44 = vsel %vm226_vm2, %v6818_v13, %v4898_v41  ;;  %v7010_v52 = vsel %vm226_vm2, %v6824_v16, %v4893_v45  ;;  %v7014_v37 = vsel %vm226_vm2, %v6821_v54, %v4894_v5  ;;  %v7018_v57 = vsel %vm226_vm2, %v6830_v23, %v4903_v6 }
 0x15b   : > { %v6976_v26 = vpop.permute.xlu1 %5236  ;;  %v7022_v12 = vsel %vm226_vm2, %v6827_v40, %v4904_v39  ;;  %v4929_v9 = vunpack.i.h.bf16 %v8933_v4  ;;  %v4928_v13 = vunpack.i.l.bf16 %v8933_v4  ;;  %v7030_v16 = vsel %vm1771_vm3, %v6834_v36, %v4918_v15  ;;  %v8937_v36 = vld [vmem:[#allocation14_spill] sm:$0xff] }
 0x15c   : > { %8929 = vst [vmem:[#allocation5_spill] sm:$0xff] %v6976_v26  ;;  %v7034_v54 = vsel %vm1771_vm3, %v6838_v10, %v4919_v3  ;;  %v7038_v23 = vsel %vm1771_vm3, %v6847_v0, %v4913_v21  ;;  %v7042_v40 = vsel %vm1771_vm3, %v6851_v7, %v4914_v25  ;;  %v4924_v41 = vunpack.i.h.bf16 %v8936_v31  ;;  %v8938_v10 = vld [vmem:[#allocation15_spill] sm:$0xff]  ;;  %v8939_v0 = vld [vmem:[#allocation16_spill] sm:$0xff]  ;;  %v8940_v25 = vld [vmem:[#allocation17_spill] sm:$0xff] }
 0x15d   : > { %v6982_v1 = vpop.permute.xlu0 %5231  ;;  %v4923_v5 = vunpack.i.l.bf16 %v8936_v31  ;;  %v4939_v45 = vunpack.i.h.bf16 %v8937_v36  ;;  %v4938_v39 = vunpack.i.l.bf16 %v8937_v36  ;;  %v4934_v6 = vunpack.i.h.bf16 %v8938_v10  ;;  %v8943_v26 = vld [vmem:[#allocation19_spill] sm:$0xff] }
 0x15e   : > { %8932 = vst [vmem:[#allocation6_spill] sm:$0xff] %v6982_v1  ;;  %v4933_v59 = vunpack.i.l.bf16 %v8938_v10  ;;  %v4949_v21 = vunpack.i.h.bf16 %v8939_v0  ;;  %v4948_v3 = vunpack.i.l.bf16 %v8939_v0  ;;  %v7056_v7 = vsel %vm1771_vm3, %v6859_v35, %v4928_v13 }
 0x15f   : > { %v7026_v32 = vpop.permute.xlu1 %5246  ;;  %v7060_v15 = vsel %vm1771_vm3, %v6855_v30, %v4929_v9  ;;  %v4944_v4 = vunpack.i.h.bf16 %v8940_v25  ;;  %v4943_v31 = vunpack.i.l.bf16 %v8940_v25  ;;  %v4954_v0 = vunpack.i.h.bf16 %v8943_v26 }
 0x160   : > { %8934 = vst [vmem:[#allocation7_spill] sm:$0xff] %v7026_v32  ;;  %v8942_v32 = vld [vmem:[#allocation18_spill] sm:$0xff]  ;;  %v4953_v1 = vunpack.i.l.bf16 %v8943_v26  ;;  %v7074_v30 = vsel %vm1771_vm3, %v6877_v34, %v4923_v5  ;;  %v7078_v9 = vsel %vm1771_vm3, %v6873_v29, %v4924_v41  ;;  %v7082_v13 = vsel %vm1771_vm3, %v6894_v43, %v4938_v39  ;;  %v8945_v41 = vld [vmem:[#allocation20_spill] sm:$0xff] }
 0x161   : > { %v7044_v20 = vpop.permute.xlu0 %5241  ;;  %v4959_v10 = vunpack.i.h.bf16 %v8942_v32  ;;  %v7090_v26 = vsel %vm1771_vm3, %v6898_v28, %v4933_v59  ;;  %v7094_v34 = vsel %vm1771_vm3, %v6902_v56, %v4934_v6  ;;  %v7098_v29 = vsel %vm1771_vm3, %v6910_v11, %v4948_v3  ;;  %v8947_v6 = vld [vmem:[#allocation21_spill] sm:$0xff] }
 0x162   : > { %8935 = vst [vmem:[#allocation8_spill] sm:$0xff] %v7044_v20  ;;  %v4958_v20 = vunpack.i.l.bf16 %v8942_v32  ;;  %v7086_v32 = vsel %vm1771_vm3, %v6881_v38, %v4939_v45  ;;  %v7102_v43 = vsel %vm1771_vm3, %v6906_v63, %v4949_v21  ;;  %v7106_v38 = vsel %vm1771_vm3, %v6914_v18, %v4943_v31 }
 0x163   : > { %v7064_v36 = vpop.permute.xlu1 %5256  ;;  %v7110_v28 = vsel %vm1771_vm3, %v6918_v61, %v4944_v4  ;;  %v4969_v5 = vunpack.i.h.bf16 %v8945_v41  ;;  %v4968_v56 = vunpack.i.l.bf16 %v8945_v41  ;;  %v7122_v63 = vsel %vm1771_vm3, %v6922_v19, %v4959_v10  ;;  %v8949_v19 = vld [vmem:[#allocation23_spill] sm:$0xff] }
 0x164   : > { %8941 = vst [vmem:[#allocation9_spill] sm:$0xff] %v7064_v36  ;;  %v7118_v11 = vsel %vm1771_vm3, %v6926_v24, %v4958_v20  ;;  %v7126_v18 = vsel %vm1771_vm3, %v6934_v42, %v4953_v1  ;;  %v7130_v61 = vsel %vm1771_vm3, %v6938_v22, %v4954_v0  ;;  %v4964_v59 = vunpack.i.h.bf16 %v8947_v6  ;;  %v8948_v24 = vld [vmem:[#allocation22_spill] sm:$0xff]  ;;  %v8950_v42 = vld [vmem:[#allocation24_spill] sm:$0xff]  ;;  %v8951_v0 = vld [vmem:[#allocation25_spill] sm:$0xff] }
 0x165   : > { %v7070_v35 = vpop.permute.xlu0 %5251  ;;  %v4963_v21 = vunpack.i.l.bf16 %v8947_v6  ;;  %v4979_v20 = vunpack.i.h.bf16 %v8948_v24  ;;  %v4978_v3 = vunpack.i.l.bf16 %v8948_v24  ;;  %v4974_v25 = vunpack.i.h.bf16 %v8949_v19 }
 0x166   : > { %8944 = vst [vmem:[#allocation10_spill] sm:$0xff] %v7070_v35  ;;  %v4973_v4 = vunpack.i.l.bf16 %v8949_v19  ;;  %v4989_v1 = vunpack.i.h.bf16 %v8950_v42  ;;  %v4988_v31 = vunpack.i.l.bf16 %v8950_v42  ;;  %v7144_v22 = vsel %vm1771_vm3, %v6946_v33, %v4968_v56  ;;  %v8953_v35 = vld [vmem:[#allocation27_spill] sm:$0xff] }
 0x167   : > { %v7114_v45 = vpop.permute.xlu1 %5266  ;;  %v7148_v10 = vsel %vm1771_vm3, %v6942_v46, %v4969_v5  ;;  %v4984_v41 = vunpack.i.h.bf16 %v8951_v0  ;;  %v4983_v6 = vunpack.i.l.bf16 %v8951_v0  ;;  %v5009_v42 = vunpack.i.h.bf16 %v8953_v35 }
 0x168   : > { %v5008_v47 = vunpack.i.l.bf16 %v8953_v35  ;;  %v7162_v46 = vsel %vm1771_vm3, %v6968_v48, %v4963_v21  ;;  %v7166_v5 = vsel %vm1771_vm3, %v6972_v62, %v4964_v59  ;;  %v7170_v56 = vsel %vm1771_vm3, %v6990_v51, %v4978_v3  ;;  %v8954_v59 = vld [vmem:[#allocation28_spill] sm:$0xff] }
 0x169   : > { %v7132_v39 = vpop.permute.xlu0 %5261  ;;  %v7178_v35 = vsel %vm1771_vm3, %v6994_v55, %v4973_v4  ;;  %v7182_v48 = vsel %vm1771_vm3, %v6998_v8, %v4974_v25  ;;  %v7186_v62 = vsel %vm1771_vm3, %v7006_v44, %v4988_v31  ;;  %v7190_v51 = vsel %vm1771_vm3, %v7002_v58, %v4989_v1  ;;  %v8956_v25 = vld [vmem:[#allocation29_spill] sm:$0xff] }
 0x16a   : > { %8946 = vst [vmem:[#allocation11_spill] sm:$0xff] %v7132_v39  ;;  %v8952_v39 = vld [vmem:[#allocation26_spill] sm:$0xff]  ;;  %v7198_v55 = vsel %vm1771_vm3, %v7014_v37, %v4984_v41  ;;  %v5004_v21 = vunpack.i.h.bf16 %v8954_v59  ;;  %v5003_v8 = vunpack.i.l.bf16 %v8954_v59  ;;  %v7218_v37 = vsel %vm1808_vm4, %v7034_v54, %v5009_v42  ;;  %v8960_v42 = vld [vmem:[#allocation33_spill] sm:$0xff] }
 0x16b   : > { %v7152_v24 = vpop.permute.xlu1 %5276  ;;  %v4994_v19 = vunpack.i.h.bf16 %v8952_v39  ;;  %v4993_v36 = vunpack.i.l.bf16 %v8952_v39  ;;  %v7174_v39 = vsel %vm1771_vm3, %v6986_v50, %v4979_v20  ;;  %v7194_v50 = vsel %vm1771_vm3, %v7010_v52, %v4983_v6 }
 0x16c   : > { %v7214_v52 = vsel %vm1808_vm4, %v7030_v16, %v5008_v47  ;;  %v5019_v4 = vunpack.i.h.bf16 %v8956_v25  ;;  %v5018_v1 = vunpack.i.l.bf16 %v8956_v25  ;;  %v8959_v47 = vld [vmem:[#allocation32_spill] sm:$0xff]  ;;  %v7232_v54 = vsel %vm1808_vm4, %v7038_v23, %v5003_v8 }
 0x16d   : > { %v7158_v33 = vpop.permute.xlu0 %5271  ;;  %v7206_v44 = vsel %vm1771_vm3, %v7018_v57, %v4993_v36  ;;  %v7210_v58 = vsel %vm1771_vm3, %v7022_v12, %v4994_v19  ;;  %v8957_v57 = vld [vmem:[#allocation30_spill] sm:$0xff]  ;;  %v8958_v12 = vld [vmem:[#allocation31_spill] sm:$0xff]  ;;  %v5024_v16 = vunpack.i.h.bf16 %v8959_v47  ;;  %v5023_v6 = vunpack.i.l.bf16 %v8959_v47 }
 0x16e   : > { %v5014_v36 = vunpack.i.h.bf16 %v8957_v57  ;;  %v5013_v31 = vunpack.i.l.bf16 %v8957_v57  ;;  %v5029_v0 = vunpack.i.h.bf16 %v8958_v12  ;;  %v5028_v41 = vunpack.i.l.bf16 %v8958_v12 }
 0x16f   : > { %v7202_v20 = vpop.permute.xlu1 %5286  ;;  %v7236_v19 = vsel %vm1808_vm4, %v7042_v40, %v5004_v21  ;;  %v5039_v59 = vunpack.i.h.bf16 %v8960_v42  ;;  %v5038_v25 = vunpack.i.l.bf16 %v8960_v42  ;;  %v5034_v12 = vunpack.i.h.bf16 %v8962_v53 }
 0x170   : > { %8955 = vst [vmem:[#allocation12_spill] sm:$0xff] %v7202_v20  ;;  %v5033_v60 = vunpack.i.l.bf16 %v8962_v53  ;;  %v5049_v47 = vunpack.i.h.bf16 %v8963_v14  ;;  %v5048_v20 = vunpack.i.l.bf16 %v8963_v14  ;;  %v7250_v40 = vsel %vm1808_vm4, %v7056_v7, %v5018_v1 }
 0x171   : > { %v7220_v3 = vpop.permute.xlu0 %5281  ;;  %v7254_v21 = vsel %vm1808_vm4, %v7060_v15, %v5019_v4  ;;  %v7258_v8 = vsel %vm1808_vm4, %v7074_v30, %v5013_v31  ;;  %v7262_v53 = vsel %vm1808_vm4, %v7078_v9, %v5014_v36  ;;  %v7266_v14 = vsel %vm1808_vm4, %v7082_v13, %v5028_v41  ;;  %v8964_v4 = vld [vmem:[#allocation36_spill] sm:$0xff] }
 0x172   : > { %v7270_v7 = vsel %vm1808_vm4, %v7086_v32, %v5029_v0  ;;  %v7274_v15 = vsel %vm1808_vm4, %v7090_v26, %v5023_v6  ;;  %v7278_v30 = vsel %vm1808_vm4, %v7094_v34, %v5024_v16  ;;  %v7282_v9 = vsel %vm1808_vm4, %v7098_v29, %v5038_v25  ;;  %v8968_v0 = vld [vmem:[#allocation37_spill] sm:$0xff] }
 0x173   : > { %v7240_v57 = vpop.permute.xlu1 %5296  ;;  %v7286_v13 = vsel %vm1808_vm4, %v7102_v43, %v5039_v59  ;;  %v5044_v1 = vunpack.i.h.bf16 %v8964_v4  ;;  %v5043_v32 = vunpack.i.l.bf16 %v8964_v4  ;;  %v7294_v26 = vsel %vm1808_vm4, %v7106_v38, %v5033_v60  ;;  %v8969_v60 = vld [vmem:[#allocation38_spill] sm:$0xff] }
 0x174   : > { %8961 = vst [vmem:[#allocation13_spill] sm:$0xff] %v7240_v57  ;;  %v7298_v34 = vsel %vm1808_vm4, %v7110_v28, %v5034_v12  ;;  %v7302_v29 = vsel %vm1808_vm4, %v7118_v11, %v5048_v20  ;;  %v7306_v43 = vsel %vm1808_vm4, %v7122_v63, %v5049_v47  ;;  %v5059_v41 = vunpack.i.h.bf16 %v8968_v0  ;;  %v8970_v28 = vld [vmem:[#allocation39_spill] sm:$0xff]  ;;  %v8971_v11 = vld [vmem:[#allocation40_spill] sm:$0xff]  ;;  %v8972_v47 = vld [vmem:[#allocation41_spill] sm:$0xff] }
 0x175   : > { %v7246_v23 = vpop.permute.xlu0 %5291  ;;  %8966 = vst [vmem:[#allocation15_spill] sm:$0xff] %v7306_v43  ;;  %v5058_v16 = vunpack.i.l.bf16 %v8968_v0  ;;  %v5054_v38 = vunpack.i.h.bf16 %v8969_v60  ;;  %v5053_v6 = vunpack.i.l.bf16 %v8969_v60  ;;  %v5069_v42 = vunpack.i.h.bf16 %v8970_v28  ;;  %v8974_v57 = vld [vmem:[#allocation43_spill] sm:$0xff] }
 0x176   : > { %v5068_v59 = vunpack.i.l.bf16 %v8970_v28  ;;  %v5064_v20 = vunpack.i.h.bf16 %v8971_v11  ;;  %v5063_v25 = vunpack.i.l.bf16 %v8971_v11  ;;  %v7320_v63 = vsel %vm1808_vm4, %v7126_v18, %v5043_v32 }
 0x177   : > { %v7290_v36 = vpop.permute.xlu1 %5306  ;;  %v7324_v12 = vsel %vm1808_vm4, %v7130_v61, %v5044_v1  ;;  %v5079_v4 = vunpack.i.h.bf16 %v8972_v47  ;;  %v5078_v0 = vunpack.i.l.bf16 %v8972_v47  ;;  %v5084_v11 = vunpack.i.h.bf16 %v8974_v57 }
 0x178   : > { %8965 = vst [vmem:[#allocation14_spill] sm:$0xff] %v7290_v36  ;;  %v8973_v36 = vld [vmem:[#allocation42_spill] sm:$0xff]  ;;  %v5083_v43 = vunpack.i.l.bf16 %v8974_v57  ;;  %v7338_v61 = vsel %vm1808_vm4, %v7144_v22, %v5058_v16  ;;  %v7342_v1 = vsel %vm1808_vm4, %v7148_v10, %v5059_v41  ;;  %v7346_v32 = vsel %vm1808_vm4, %v7162_v46, %v5053_v6  ;;  %v8977_v41 = vld [vmem:[#allocation44_spill] sm:$0xff] }
 0x179   : > { %v7308_v31 = vpop.permute.xlu0 %5301  ;;  %v5074_v28 = vunpack.i.h.bf16 %v8973_v36  ;;  %v7354_v57 = vsel %vm1808_vm4, %v7170_v56, %v5068_v59  ;;  %v7358_v22 = vsel %vm1808_vm4, %v7174_v39, %v5069_v42  ;;  %v7362_v10 = vsel %vm1808_vm4, %v7178_v35, %v5063_v25  ;;  %v8981_v42 = vld [vmem:[#allocation45_spill] sm:$0xff]  ;;  %v8983_v25 = vld [vmem:[#allocation47_spill] sm:$0xff] }
 0x17a   : > { %8967 = vst [vmem:[#allocation16_spill] sm:$0xff] %v7308_v31  ;;  %v5073_v31 = vunpack.i.l.bf16 %v8973_v36  ;;  %v7350_v36 = vsel %vm1808_vm4, %v7166_v5, %v5054_v38  ;;  %v7366_v46 = vsel %vm1808_vm4, %v7182_v48, %v5064_v20  ;;  %v7370_v5 = vsel %vm1808_vm4, %v7186_v62, %v5078_v0 }
 0x17b   : > { %v7328_v60 = vpop.permute.xlu1 %5316  ;;  %8975 = vst [vmem:[#allocation17_spill] sm:$0xff] %v7370_v5  ;;  %v7374_v56 = vsel %vm1808_vm4, %v7190_v51, %v5079_v4  ;;  %v5099_v16 = vunpack.i.h.bf16 %v8977_v41  ;;  %v5098_v39 = vunpack.i.l.bf16 %v8977_v41  ;;  %v7386_v48 = vsel %vm1808_vm4, %v7198_v55, %v5074_v28 }
 0x17c   : > { %8976 = vst [vmem:[#allocation18_spill] sm:$0xff] %v7374_v56  ;;  %v7382_v35 = vsel %vm1808_vm4, %v7194_v50, %v5073_v31  ;;  %8978 = vst [vmem:[#allocation19_spill] sm:$0xff] %v7386_v48  ;;  %v7390_v62 = vsel %vm1808_vm4, %v7206_v44, %v5083_v43  ;;  %v7394_v51 = vsel %vm1808_vm4, %v7210_v58, %v5084_v11  ;;  %v5094_v59 = vunpack.i.h.bf16 %v8981_v42  ;;  %v8982_v31 = vld [vmem:[#allocation46_spill] sm:$0xff]  ;;  %v8984_v43 = vld [vmem:[#allocation48_spill] sm:$0xff] }
 0x17d   : > { %v7334_v18 = vpop.permute.xlu0 %5311  ;;  %8979 = vst [vmem:[#allocation20_spill] sm:$0xff] %v7390_v62  ;;  %8980 = vst [vmem:[#allocation21_spill] sm:$0xff] %v7394_v51  ;;  %v5093_v50 = vunpack.i.l.bf16 %v8981_v42  ;;  %v5109_v20 = vunpack.i.h.bf16 %v8982_v31  ;;  %v5108_v55 = vunpack.i.l.bf16 %v8982_v31  ;;  %v5104_v47 = vunpack.i.h.bf16 %v8983_v25  ;;  %v8985_v11 = vld [vmem:[#allocation49_spill] sm:$0xff]  ;;  %v8986_v31 = vld [vmem:[#allocation50_spill] sm:$0xff] }
 0x17e   : > { %v5103_v44 = vunpack.i.l.bf16 %v8983_v25  ;;  %v5119_v4 = vunpack.i.h.bf16 %v8984_v43  ;;  %v5118_v58 = vunpack.i.l.bf16 %v8984_v43  ;;  %v1848_v0 = vsel %vm1845_vm5, %v7214_v52, %v5098_v39  ;;  %v8987_v56 = vld [vmem:[#allocation51_spill] sm:$0xff] }
 0x17f   : > { %v7378_v38 = vpop.permute.xlu1 %5326  ;;  %v1849_v28 = vsel %vm1845_vm5, %v7218_v37, %v5099_v16  ;;  %v5114_v41 = vunpack.i.h.bf16 %v8985_v11  ;;  %v5113_v42 = vunpack.i.l.bf16 %v8985_v11  ;;  %v5129_v62 = vunpack.i.h.bf16 %v8986_v31 }
 0x180   : > { %v5128_v25 = vunpack.i.l.bf16 %v8986_v31  ;;  %v5124_v5 = vunpack.i.h.bf16 %v8987_v56  ;;  %v5123_v43 = vunpack.i.l.bf16 %v8987_v56  ;;  %v1846_v52 = vsel %vm1845_vm5, %v7232_v54, %v5093_v50 }
 0x181   : > { %v7396_v6 = vpop.permute.xlu0 %5321  ;;  %v1847_v37 = vsel %vm1845_vm5, %v7236_v19, %v5094_v59  ;;  %v7426_v16 = vsel %vm1845_vm5, %v7250_v40, %v5108_v55  ;;  %v7430_v39 = vsel %vm1845_vm5, %v7254_v21, %v5109_v20  ;;  %v1850_v56 = vsel %vm1845_vm5, %v7258_v8, %v5103_v44  ;;  %v8992_v44 = vld [vmem:[#allocation62_spill] sm:$0xff] }
 0x182   : > { %v1851_v11 = vsel %vm1845_vm5, %v7262_v53, %v5104_v47  ;;  %v7438_v54 = vsel %vm1845_vm5, %v7266_v14, %v5118_v58  ;;  %v7442_v19 = vsel %vm1845_vm5, %v7270_v7, %v5119_v4  ;;  %v7446_v40 = vsel %vm1845_vm5, %v7274_v15, %v5113_v42 }
 0x183   : > { %v7412_v51 = vpop.permute.xlu1 %5336  ;;  %v7450_v21 = vsel %vm1845_vm5, %v7278_v30, %v5114_v41  ;;  %v5189_v8 = vunpack.i.h.bf16 %v6769_v2  ;;  %v5188_v53 = vunpack.i.l.bf16 %v6769_v2  ;;  %v7458_v14 = vsel %vm1845_vm5, %v7282_v9, %v5128_v25 }
 0x184   : > { %v7462_v7 = vsel %vm1845_vm5, %v7286_v13, %v5129_v62  ;;  %v7466_v15 = vsel %vm1845_vm5, %v7294_v26, %v5123_v43  ;;  %v7470_v30 = vsel %vm1845_vm5, %v7298_v34, %v5124_v5  ;;  %v5184_v50 = vunpack.i.h.bf16 %v6783_v49  ;;  %v8989_v13 = vld [vmem:[#allocation52_spill] sm:$0xff]  ;;  %v8990_v26 = vld [vmem:[#allocation53_spill] sm:$0xff] }
 0x185   : > { %v7418_v48 = vpop.permute.xlu0 %5331  ;;  %v5183_v20 = vunpack.i.l.bf16 %v6783_v49  ;;  %v5269_v9 = vunpack.i.h.bf16 %v7114_v45  ;;  %v5268_v55 = vunpack.i.l.bf16 %v7114_v45  ;;  %v5138_v47 = vunpack.i.l.bf16 %v8989_v13 }
 0x186   : > { %v1885_v34 = vsel %vm1882_vm6, %v1848_v0, %v5188_v53  ;;  %v1886_v5 = vsel %vm1882_vm6, %v1849_v28, %v5189_v8  ;;  %v5194_v58 = vunpack.i.h.bf16 %v6809_v17  ;;  %v5193_v49 = vunpack.i.l.bf16 %v6809_v17  ;;  %v8993_v0 = vld [vmem:[#allocation63_spill] sm:$0xff] }
 0x187   : > { %v7454_v59 = vpop.permute.xlu1 %5346  ;;  %v5279_v45 = vunpack.i.h.bf16 %v7152_v24  ;;  %v5278_v42 = vunpack.i.l.bf16 %v7152_v24  ;;  %v1917_v4 = vsel %vm1882_vm6, %v8992_v44, %v5268_v55  ;;  %v1918_v28 = vsel %vm1882_vm6, %v8993_v0, %v5269_v9 }
 0x188   : > { %8988 = vst [vmem:[#allocation22_spill] sm:$0xff] %v7454_v59  ;;  %v1883_v8 = vsel %vm1882_vm6, %v1846_v52, %v5183_v20  ;;  %v1884_v17 = vsel %vm1882_vm6, %v1847_v37, %v5184_v50  ;;  %v5274_v53 = vunpack.i.h.bf16 %v7158_v33  ;;  %v5273_v62 = vunpack.i.l.bf16 %v7158_v33 }
 0x189   : > { %v7472_v2 = vpop.permute.xlu0 %5341  ;;  %v1887_v9 = vsel %vm1882_vm6, %v1850_v56, %v5193_v49  ;;  %v1888_v52 = vsel %vm1882_vm6, %v1851_v11, %v5194_v58  ;;  %v1922_v37 = vsel %vm1919_vm7, %v1885_v34, %v5278_v42  ;;  %v1923_v50 = vsel %vm1919_vm7, %v1886_v5, %v5279_v45 }
 0x18a   : > { %v1920_v11 = vsel %vm1919_vm7, %v1883_v8, %v5273_v62  ;;  %v1921_v58 = vsel %vm1919_vm7, %v1884_v17, %v5274_v53  ;;  %v5204_v34 = vunpack.i.h.bf16 %v6861_v27  ;;  %vm3958_vm0 = vcmask 523264  }
 0x18b   : > { %v5357_v41 = vpop.permute.xlu1 %5356  ;;  %vm233_vm3 = vcmask 61440  }
 0x18c   : > { %v5359_v31 = vunpack.i.h.bf16 %v5357_v41  ;;  %v5358_v25 = vunpack.i.l.bf16 %v5357_v41 }
 0x18d   : > { %v7488_v43 = vpop.permute.xlu0 %5351 }
 0x18e   : > { %8991 = vst [vmem:[#allocation23_spill] sm:$0xff] %v7488_v43  ;;  %v7499_v24 = vsel %vm1919_vm7, %v1917_v4, %v5358_v25  ;;  %v7502_v41 = vsel %vm1919_vm7, %v1918_v28, %v5359_v31  ;;  %v8994_v43 = vld [vmem:[#allocation64_spill] sm:$0xff]  ;;  %v5284_v25 = vunpack.i.h.bf16 %v7220_v3  ;;  %v5283_v31 = vunpack.i.l.bf16 %v7220_v3 }
 0x18f   : > { %v5199_v59 = vunpack.i.h.bf16 %v8994_v43  ;;  %v5198_v55 = vunpack.i.l.bf16 %v8994_v43  ;;  %v5367_v20 = vpop.permute.xlu1 %5366  ;;  %v5203_v3 = vunpack.i.l.bf16 %v6861_v27  ;;  %v7529_v27 = vsel %vm1845_vm5, %v7302_v29, %v5138_v47 }
 0x190   : > { %v5369_v33 = vunpack.i.h.bf16 %v5367_v20  ;;  %v5368_v44 = vunpack.i.l.bf16 %v5367_v20  ;;  %v8995_v20 = vld [vmem:[#allocation12_spill] sm:$0xff]  ;;  %v1924_v62 = vsel %vm1919_vm7, %v1887_v9, %v5283_v31  ;;  %v1925_v8 = vsel %vm1919_vm7, %v1888_v52, %v5284_v25 }
 0x191   : > { %v5362_v4 = vpop.permute.xlu0 %5361  ;;  %v1891_v31 = vsel %vm1882_vm6, %v7446_v40, %v5203_v3  ;;  %v1892_v29 = vsel %vm1882_vm6, %v7450_v21, %v5204_v34  ;;  %v8996_v40 = vunpack.i.h.bf16 %v8989_v13  ;;  %v8997_v21 = vld [vmem:[#allocation15_spill] sm:$0xff] }
 0x192   : > { %v5364_v0 = vunpack.i.h.bf16 %v5362_v4  ;;  %v5363_v28 = vunpack.i.l.bf16 %v5362_v4  ;;  %v1959_v43 = vsel %vm1956_vm8, %v1922_v37, %v5368_v44  ;;  %v1960_v56 = vsel %vm1956_vm8, %v1923_v50, %v5369_v33 }
 0x193   : > { %v5377_v5 = vpop.permute.xlu1 %5376  ;;  %v1994_v42 = vpack.c.bf16 %v1960_v56, %v1959_v43  ;;  %v5289_v4 = vunpack.i.h.bf16 %v8995_v20  ;;  %v5288_v37 = vunpack.i.l.bf16 %v8995_v20  ;;  %v5294_v33 = vunpack.i.h.bf16 %v7246_v23 }
 0x194   : > { %v1957_v49 = vsel %vm1956_vm8, %v1920_v11, %v5363_v28  ;;  %v1958_v45 = vsel %vm1956_vm8, %v1921_v58, %v5364_v0  ;;  %v5293_v28 = vunpack.i.l.bf16 %v7246_v23  ;;  %v5379_v0 = vunpack.i.h.bf16 %v5377_v5 }
 0x195   : > { %v5372_v44 = vpop.permute.xlu0 %5371  ;;  %v1993_v50 = vpack.c.bf16 %v1958_v45, %v1957_v49  ;;  %v5378_v43 = vunpack.i.l.bf16 %v5377_v5  ;;  %v1889_v56 = vsel %vm1882_vm6, %v7426_v16, %v5198_v55  ;;  %v1890_v23 = vsel %vm1882_vm6, %v7430_v39, %v5199_v59 }
 0x196   : > { %v5374_v17 = vunpack.i.h.bf16 %v5372_v44  ;;  %v5373_v53 = vunpack.i.l.bf16 %v5372_v44  ;;  %v1926_v16 = vsel %vm1919_vm7, %v1889_v56, %v5288_v37  ;;  %v1927_v55 = vsel %vm1919_vm7, %v1890_v23, %v5289_v4  ;;  %v8999_v44 = vld [vmem:[#allocation65_spill] sm:$0xff] }
 0x197   : > { %4623 = vmatprep.mubr.msk.bf16.mxu0 %vm2038_vm9, %v1993_v50  ;;  %v5387_v25 = vpop.permute.xlu1 %5386  ;;  %v1928_v49 = vsel %vm1919_vm7, %v1891_v31, %v5293_v28  ;;  %v1929_v45 = vsel %vm1919_vm7, %v1892_v29, %v5294_v33  ;;  %v1963_v39 = vsel %vm1956_vm8, %v1926_v16, %v5378_v43  ;;  %v1964_v59 = vsel %vm1956_vm8, %v1927_v55, %v5379_v0  ;;  %v9001_v33 = vld [vmem:[#allocation13_spill] sm:$0xff]  ;;  %v9002_v0 = vld [vmem:[#allocation16_spill] sm:$0xff] }
 0x198   : > { %v1961_v9 = vsel %vm1956_vm8, %v1924_v62, %v5373_v53  ;;  %v1962_v52 = vsel %vm1956_vm8, %v1925_v8, %v5374_v17  ;;  %4624 = vmatmul.mubr.msk.bf16.vlgmr.msra.gmra.mrb[0].mxu0 %vm2038_vm9, %v1994_v42  ;;  %v7553_v34 = vsel %vm1845_vm5, %v8997_v21, %v8996_v40  ;;  %v8998_v42 = vunpack.i.l.bf16 %v8990_v26  ;;  %v9000_v62 = vld [vmem:[#allocation67_spill] sm:$0xff] }
 0x199   : > { %v5382_v47 = vpop.permute.xlu0 %5381  ;;  %v1995_v11 = vpack.c.bf16 %v1962_v52, %v1961_v9  ;;  %v5209_v50 = vunpack.i.h.bf16 %v8999_v44  ;;  %v5208_v13 = vunpack.i.l.bf16 %v8999_v44  ;;  %v5214_v8 = vunpack.i.h.bf16 %v9000_v62 }
 0x19a   : > { %v5384_v58 = vunpack.i.h.bf16 %v5382_v47  ;;  %v5383_v5 = vunpack.i.l.bf16 %v5382_v47  ;;  %v7559_v3 = vsel %vm1845_vm5, %v7320_v63, %v8998_v42  ;;  %v5213_v17 = vunpack.i.l.bf16 %v9000_v62 }
 0x19b   : > { %4627 = vmatprep.mubr.msk.bf16.mxu0 %vm2038_vm9, %v1995_v11  ;;  %v7563_v37 = vpop.permute.xlu1 %5396  ;;  %v5299_v28 = vunpack.i.h.bf16 %v9001_v33  ;;  %v5298_v63 = vunpack.i.l.bf16 %v9001_v33  ;;  %v5304_v43 = vunpack.i.h.bf16 %v9002_v0  ;;  %v1996_v56 = vpack.c.bf16 %v1964_v59, %v1963_v39  ;;  %v9004_v11 = vld [vmem:[#allocation54_spill] sm:$0xff] }
 0x19c   : > { %v1965_v20 = vsel %vm1956_vm8, %v1928_v49, %v5383_v5  ;;  %v1966_v4 = vsel %vm1956_vm8, %v1929_v45, %v5384_v58  ;;  %v5303_v9 = vunpack.i.l.bf16 %v9002_v0  ;;  %v5389_v52 = vunpack.i.h.bf16 %v5387_v25  ;;  %v9005_v45 = vld [vmem:[#allocation55_spill] sm:$0xff] }
 0x19d   : > { %v5392_v53 = vpop.permute.xlu0 %5391  ;;  %v5388_v23 = vunpack.i.l.bf16 %v5387_v25  ;;  %v1997_v31 = vpack.c.bf16 %v1966_v4, %v1965_v20  ;;  %v9003_v29 = vunpack.i.h.bf16 %v8990_v26  ;;  %v5148_v16 = vunpack.i.l.bf16 %v9004_v11 }
 0x19e   : > { %v5394_v55 = vunpack.i.h.bf16 %v5392_v53  ;;  %v5393_v58 = vunpack.i.l.bf16 %v5392_v53  ;;  %v5149_v49 = vunpack.i.h.bf16 %v9004_v11  ;;  %v5144_v39 = vunpack.i.h.bf16 %v9005_v45 }
 0x19f   : > { %v1863_v47 = vsel %vm1845_vm5, %v7324_v12, %v9003_v29  ;;  %v7579_v5 = vpop.permute.xlu1 %5406  ;;  %v1893_v25 = vsel %vm1882_vm6, %v7438_v54, %v5208_v13  ;;  %v1894_v26 = vsel %vm1882_vm6, %v7442_v19, %v5209_v50  ;;  %v1895_v12 = vsel %vm1882_vm6, %v7466_v15, %v5213_v17  ;;  %v9006_v13 = vld [vmem:[#allocation66_spill] sm:$0xff]  ;;  %v9007_v17 = vld [vmem:[#allocation4_spill] sm:$0xff] }
 0x1a0   : > { %4628 = vmatmul.mubr.msk.bf16.gmra.mrb[4].mxu0 %vm2038_vm9, %v1996_v56  ;;  %v1896_v59 = vsel %vm1882_vm6, %v7470_v30, %v5214_v8  ;;  %v1930_v40 = vsel %vm1919_vm7, %v1893_v25, %v5298_v63  ;;  %v1931_v21 = vsel %vm1919_vm7, %v1894_v26, %v5299_v28  ;;  %v1932_v42 = vsel %vm1919_vm7, %v1895_v12, %v5303_v9  ;;  %v9008_v63 = vld [vmem:[#allocation14_spill] sm:$0xff] }
 0x1a1   : > { %4631 = vmatprep.mubr.msk.bf16.mxu0 %vm2038_vm9, %v1997_v31  ;;  %v1933_v20 = vsel %vm1919_vm7, %v1896_v59, %v5304_v43  ;;  %v1967_v54 = vsel %vm1956_vm8, %v1930_v40, %v5388_v23  ;;  %v1968_v19 = vsel %vm1956_vm8, %v1931_v21, %v5389_v52  ;;  %v7600_v4 = vsel %vm1845_vm5, %v7338_v61, %v5148_v16  ;;  %v5402_v28 = vpop.permute.xlu0 %5401 }
 0x1a2   : > { %v5143_v15 = vunpack.i.l.bf16 %v9005_v45  ;;  %v1969_v30 = vsel %vm1956_vm8, %v1932_v42, %v5393_v58  ;;  %v1970_v44 = vsel %vm1956_vm8, %v1933_v20, %v5394_v55  ;;  %v5219_v62 = vunpack.i.h.bf16 %v9006_v13  ;;  %v9009_v45 = vld [vmem:[#allocation56_spill] sm:$0xff] }
 0x1a3   : > { %v7605_v50 = vpop.permute.xlu1 %5416  ;;  %v5218_v8 = vunpack.i.l.bf16 %v9006_v13  ;;  %v5224_v53 = vunpack.i.h.bf16 %v9007_v17  ;;  %v5223_v33 = vunpack.i.l.bf16 %v9007_v17  ;;  %v5309_v61 = vunpack.i.h.bf16 %v9008_v63 }
 0x1a4   : > { %v5308_v0 = vunpack.i.l.bf16 %v9008_v63  ;;  %v5314_v43 = vunpack.i.h.bf16 %v7334_v18  ;;  %v1998_v56 = vpack.c.bf16 %v1968_v19, %v1967_v54  ;;  %v5313_v9 = vunpack.i.l.bf16 %v7334_v18  ;;  %v9011_v54 = vld [vmem:[#allocation6_spill] sm:$0xff] }
 0x1a5   : > { %v5399_v52 = vunpack.i.h.bf16 %v7563_v37  ;;  %v5398_v23 = vunpack.i.l.bf16 %v7563_v37  ;;  %v1999_v31 = vpack.c.bf16 %v1970_v44, %v1969_v30  ;;  %v7619_v29 = vsel %vm1845_vm5, %v7342_v1, %v5149_v49  ;;  %v5412_v44 = vpop.permute.xlu0 %5411 }
 0x1a6   : > { %v1866_v11 = vsel %vm1845_vm5, %v7346_v32, %v5143_v15  ;;  %v5404_v16 = vunpack.i.h.bf16 %v5402_v28  ;;  %v5403_v55 = vunpack.i.l.bf16 %v5402_v28  ;;  %v1867_v18 = vsel %vm1845_vm5, %v7350_v36, %v5144_v39 }
 0x1a7   : > { %v7624_v58 = vpop.permute.xlu1 %5426  ;;  %v5159_v25 = vunpack.i.h.bf16 %v9009_v45  ;;  %v1897_v37 = vsel %vm1882_vm6, %v7458_v14, %v5218_v8  ;;  %v1898_v1 = vsel %vm1882_vm6, %v7462_v7, %v5219_v62  ;;  %v1899_v32 = vsel %vm1882_vm6, %v7559_v3, %v5223_v33  ;;  %v9010_v7 = vld [vmem:[#allocation58_spill] sm:$0xff] }
 0x1a8   : > { %4632 = vmatmul.mubr.msk.bf16.gmra.mrb[8].mxu0 %vm2038_vm9, %v1998_v56  ;;  %v1900_v49 = vsel %vm1882_vm6, %v1863_v47, %v5224_v53  ;;  %v1934_v26 = vsel %vm1919_vm7, %v1897_v37, %v5308_v0  ;;  %v1935_v12 = vsel %vm1919_vm7, %v1898_v1, %v5309_v61  ;;  %v1936_v36 = vsel %vm1919_vm7, %v1899_v32, %v5313_v9  ;;  %v9012_v53 = vld [vmem:[#allocation57_spill] sm:$0xff] }
 0x1a9   : > { %4635 = vmatprep.mubr.msk.bf16.mxu0 %vm2038_vm9, %v1999_v31  ;;  %v1937_v39 = vsel %vm1919_vm7, %v1900_v49, %v5314_v43  ;;  %v1971_v14 = vsel %vm1956_vm8, %v1934_v26, %v5398_v23  ;;  %v1972_v59 = vsel %vm1956_vm8, %v1935_v12, %v5399_v52  ;;  %v5229_v40 = vunpack.i.h.bf16 %v9010_v7  ;;  %v9013_v12 = vld [vmem:[#allocation5_spill] sm:$0xff] }
 0x1aa   : > { %v5228_v21 = vunpack.i.l.bf16 %v9010_v7  ;;  %v1973_v3 = vsel %vm1956_vm8, %v1936_v36, %v5403_v55  ;;  %v1974_v47 = vsel %vm1956_vm8, %v1937_v39, %v5404_v16  ;;  %v5158_v20 = vunpack.i.l.bf16 %v9009_v45  ;;  %v5422_v7 = vpop.permute.xlu0 %5421 }
 0x1ab   : > { %v7647_v42 = vpop.permute.xlu1 %5436  ;;  %v5234_v19 = vunpack.i.h.bf16 %v9011_v54  ;;  %v5233_v15 = vunpack.i.l.bf16 %v9011_v54  ;;  %v5319_v30 = vunpack.i.h.bf16 %v7328_v60  ;;  %v5318_v13 = vunpack.i.l.bf16 %v7328_v60 }
 0x1ac   : > { %v5324_v62 = vunpack.i.h.bf16 %v7396_v6  ;;  %v5323_v8 = vunpack.i.l.bf16 %v7396_v6  ;;  %v2000_v17 = vpack.c.bf16 %v1972_v59, %v1971_v14  ;;  %v5154_v33 = vunpack.i.h.bf16 %v9012_v53  ;;  %v9014_v14 = vld [vmem:[#allocation8_spill] sm:$0xff] }
 0x1ad   : > { %v5409_v28 = vunpack.i.h.bf16 %v7579_v5  ;;  %v5408_v63 = vunpack.i.l.bf16 %v7579_v5  ;;  %v2001_v61 = vpack.c.bf16 %v1974_v47, %v1973_v3  ;;  %v1901_v0 = vsel %vm1882_vm6, %v7529_v27, %v5228_v21 }
 0x1ae   : > { %v1902_v43 = vsel %vm1882_vm6, %v7553_v34, %v5229_v40  ;;  %v5414_v56 = vunpack.i.h.bf16 %v5412_v44  ;;  %v5413_v60 = vunpack.i.l.bf16 %v5412_v44  ;;  %v1903_v6 = vsel %vm1882_vm6, %v1866_v11, %v5233_v15 }
 0x1af   : > { %v5447_v9 = vpop.permute.xlu1 %5446  ;;  %v1904_v52 = vsel %vm1882_vm6, %v1867_v18, %v5234_v19  ;;  %v1938_v5 = vsel %vm1919_vm7, %v1901_v0, %v5318_v13  ;;  %v1939_v27 = vsel %vm1919_vm7, %v1902_v43, %v5319_v30  ;;  %v1940_v16 = vsel %vm1919_vm7, %v1903_v6, %v5323_v8  ;;  %v9017_v43 = vld [vmem:[#allocation10_spill] sm:$0xff] }
 0x1b0   : > { %4636 = vmatmul.mubr.msk.bf16.gmra.mrb[12].mxu0 %vm2038_vm9, %v2000_v17  ;;  %v5449_v23 = vunpack.i.h.bf16 %v5447_v9  ;;  %v5448_v31 = vunpack.i.l.bf16 %v5447_v9  ;;  %v1941_v34 = vsel %vm1919_vm7, %v1904_v52, %v5324_v62  ;;  %v1975_v55 = vsel %vm1956_vm8, %v1938_v5, %v5408_v63  ;;  %v9015_v17 = vld [vmem:[#allocation60_spill] sm:$0xff]  ;;  %v9016_v63 = vld [vmem:[#allocation7_spill] sm:$0xff]  ;;  %v5432_v9 = vpop.permute.xlu0 %5431 }
 0x1b1   : > { %4639 = vmatprep.mubr.msk.bf16.mxu0 %vm2038_vm9, %v2001_v61  ;;  %v1976_v37 = vsel %vm1956_vm8, %v1939_v27, %v5409_v28  ;;  %v5153_v1 = vunpack.i.l.bf16 %v9012_v53  ;;  %v1977_v32 = vsel %vm1956_vm8, %v1940_v16, %v5413_v60  ;;  %v1978_v49 = vsel %vm1956_vm8, %v1941_v34, %v5414_v56 }
 0x1b2   : > { %v7675_v11 = vsel %vm1956_vm8, %v7499_v24, %v5448_v31  ;;  %v7679_v18 = vsel %vm1956_vm8, %v7502_v41, %v5449_v23  ;;  %v5239_v36 = vunpack.i.h.bf16 %v9013_v12  ;;  %v5238_v39 = vunpack.i.l.bf16 %v9013_v12  ;;  %v9019_v12 = vld [vmem:[#allocation19_spill] sm:$0xff] }
 0x1b3   : > { %v2010_v26 = vpack.c.bf16 %v7679_v18, %v7675_v11  ;;  %v5244_v24 = vunpack.i.h.bf16 %v9014_v14  ;;  %v5243_v59 = vunpack.i.l.bf16 %v9014_v14  ;;  %v5329_v41 = vunpack.i.h.bf16 %v7378_v38 }
 0x1b4   : > { %v5328_v40 = vunpack.i.l.bf16 %v7378_v38  ;;  %v5334_v21 = vunpack.i.h.bf16 %v7418_v48  ;;  %v2002_v3 = vpack.c.bf16 %v1976_v37, %v1975_v55  ;;  %v5333_v47 = vunpack.i.l.bf16 %v7418_v48  ;;  %v9018_v55 = vld [vmem:[#allocation59_spill] sm:$0xff] }
 0x1b5   : > { %v5419_v54 = vunpack.i.h.bf16 %v7605_v50  ;;  %v5418_v19 = vunpack.i.l.bf16 %v7605_v50  ;;  %v2003_v15 = vpack.c.bf16 %v1978_v49, %v1977_v32  ;;  %v1872_v30 = vsel %vm1845_vm5, %v7354_v57, %v5158_v20 }
 0x1b6   : > { %v1873_v44 = vsel %vm1845_vm5, %v7358_v22, %v5159_v25  ;;  %v5424_v13 = vunpack.i.h.bf16 %v5422_v7  ;;  %v5423_v38 = vunpack.i.l.bf16 %v5422_v7  ;;  %v1870_v48 = vsel %vm1845_vm5, %v7362_v10, %v5153_v1 }
 0x1b7   : > { %v1871_v62 = vsel %vm1845_vm5, %v7366_v46, %v5154_v33  ;;  %v1905_v50 = vsel %vm1882_vm6, %v7600_v4, %v5238_v39  ;;  %v1906_v57 = vsel %vm1882_vm6, %v7619_v29, %v5239_v36  ;;  %v1907_v22 = vsel %vm1882_vm6, %v1870_v48, %v5243_v59 }
 0x1b8   : > { %4640 = vmatmul.mubr.msk.bf16.gmra.mrb[16].mxu0 %vm2038_vm9, %v2002_v3  ;;  %v1908_v45 = vsel %vm1882_vm6, %v1871_v62, %v5244_v24  ;;  %v1942_v25 = vsel %vm1919_vm7, %v1905_v50, %v5328_v40  ;;  %v1943_v20 = vsel %vm1919_vm7, %v1906_v57, %v5329_v41  ;;  %v1944_v10 = vsel %vm1919_vm7, %v1907_v22, %v5333_v47  ;;  %v5442_v62 = vpop.permute.xlu0 %5441  ;;  %v9023_v50 = vld [vmem:[#allocation22_spill] sm:$0xff] }
 0x1b9   : > { %4643 = vmatprep.mubr.msk.bf16.mxu0 %vm2038_vm9, %v2003_v15  ;;  %v1945_v46 = vsel %vm1919_vm7, %v1908_v45, %v5334_v21  ;;  %v1979_v8 = vsel %vm1956_vm8, %v1942_v25, %v5418_v19  ;;  %v1980_v4 = vsel %vm1956_vm8, %v1943_v20, %v5419_v54  ;;  %v5164_v29 = vunpack.i.h.bf16 %v9015_v17  ;;  %v9020_v21 = vld [vmem:[#allocation61_spill] sm:$0xff]  ;;  %v9024_v45 = vld [vmem:[#allocation23_spill] sm:$0xff] }
 0x1ba   : > { %v5163_v53 = vunpack.i.l.bf16 %v9015_v17  ;;  %v1981_v33 = vsel %vm1956_vm8, %v1944_v10, %v5423_v38  ;;  %v1982_v28 = vsel %vm1956_vm8, %v1945_v46, %v5424_v13  ;;  %v5249_v61 = vunpack.i.h.bf16 %v9016_v63  ;;  %v9021_v15 = vld [vmem:[#allocation9_spill] sm:$0xff]  ;;  %v9022_v13 = vld [vmem:[#allocation11_spill] sm:$0xff] }
 0x1bb   : > { %v5248_v0 = vunpack.i.l.bf16 %v9016_v63  ;;  %v5254_v56 = vunpack.i.h.bf16 %v9017_v43  ;;  %v5253_v60 = vunpack.i.l.bf16 %v9017_v43  ;;  %v5339_v6 = vunpack.i.h.bf16 %v7412_v51  ;;  %v9025_v17 = vld [vmem:[#allocation17_spill] sm:$0xff] }
 0x1bc   : > { %v5338_v52 = vunpack.i.l.bf16 %v7412_v51  ;;  %v5344_v23 = vunpack.i.h.bf16 %v7472_v2  ;;  %v2004_v31 = vpack.c.bf16 %v1980_v4, %v1979_v8  ;;  %v5343_v5 = vunpack.i.l.bf16 %v7472_v2  ;;  %v9028_v43 = vld [vmem:[#allocation21_spill] sm:$0xff] }
 0x1bd   : > { %v5429_v27 = vunpack.i.h.bf16 %v7624_v58  ;;  %v5428_v16 = vunpack.i.l.bf16 %v7624_v58  ;;  %v2005_v34 = vpack.c.bf16 %v1982_v28, %v1981_v33  ;;  %v5169_v37 = vunpack.i.h.bf16 %v9018_v55 }
 0x1be   : > { %v5168_v1 = vunpack.i.l.bf16 %v9018_v55  ;;  %v5434_v32 = vunpack.i.h.bf16 %v5432_v9  ;;  %v5433_v49 = vunpack.i.l.bf16 %v5432_v9  ;;  %v1874_v51 = vsel %vm1845_vm5, %v7382_v35, %v5163_v53  ;;  %v9026_v53 = vld [vmem:[#allocation18_spill] sm:$0xff] }
 0x1bf   : > { %v1875_v36 = vsel %vm1845_vm5, %v9019_v12, %v5164_v29  ;;  %v1909_v2 = vsel %vm1882_vm6, %v1872_v30, %v5248_v0  ;;  %v1910_v39 = vsel %vm1882_vm6, %v1873_v44, %v5249_v61  ;;  %v1911_v58 = vsel %vm1882_vm6, %v1874_v51, %v5253_v60  ;;  %v9027_v61 = vld [vmem:[#allocation20_spill] sm:$0xff] }
 0x1c0   : > { %4644 = vmatmul.mubr.msk.bf16.gmra.mrb[20].mxu0 %vm2038_vm9, %v2004_v31  ;;  %v1912_v14 = vsel %vm1882_vm6, %v1875_v36, %v5254_v56  ;;  %v1946_v24 = vsel %vm1919_vm7, %v1909_v2, %v5338_v52  ;;  %v1947_v59 = vsel %vm1919_vm7, %v1910_v39, %v5339_v6  ;;  %v1948_v7 = vsel %vm1919_vm7, %v1911_v58, %v5343_v5  ;;  %v2435_v36 = vld [vmem:[#allocation3 + $0x2] sm:$0xff]  ;;  %v7800_v58 = vld [vmem:[%s8774_s2] ss:$0 sm:$0xff] }
 0x1c1   : > { %4647 = vmatprep.mubr.msk.bf16.mxu0 %vm2038_vm9, %v2005_v34  ;;  %v1949_v35 = vsel %vm1919_vm7, %v1912_v14, %v5344_v23  ;;  %v1983_v41 = vsel %vm1956_vm8, %v1946_v24, %v5428_v16  ;;  %v1984_v40 = vsel %vm1956_vm8, %v1947_v59, %v5429_v27  ;;  %v5174_v3 = vunpack.i.h.bf16 %v9020_v21 }
 0x1c2   : > { %v5173_v47 = vunpack.i.l.bf16 %v9020_v21  ;;  %v1985_v54 = vsel %vm1956_vm8, %v1948_v7, %v5433_v49  ;;  %v1986_v19 = vsel %vm1956_vm8, %v1949_v35, %v5434_v32  ;;  %v5259_v30 = vunpack.i.h.bf16 %v9021_v15  ;;  %v2399_v49 = vld [vmem:[#allocation3 + $0x1] sm:$0xff] }
 0x1c3   : > { %v5258_v44 = vunpack.i.l.bf16 %v9021_v15  ;;  %v5264_v38 = vunpack.i.h.bf16 %v9022_v13  ;;  %v5263_v48 = vunpack.i.l.bf16 %v9022_v13  ;;  %v5349_v57 = vunpack.i.h.bf16 %v9023_v50 }
 0x1c4   : > { %v5348_v22 = vunpack.i.l.bf16 %v9023_v50  ;;  %v5354_v25 = vunpack.i.h.bf16 %v9024_v45  ;;  %v2006_v20 = vpack.c.bf16 %v1984_v40, %v1983_v41  ;;  %v5353_v10 = vunpack.i.l.bf16 %v9024_v45 }
 0x1c5   : > { %v5439_v46 = vunpack.i.h.bf16 %v7647_v42  ;;  %v5438_v8 = vunpack.i.l.bf16 %v7647_v42  ;;  %v2007_v4 = vpack.c.bf16 %v1986_v19, %v1985_v54  ;;  %v1876_v29 = vsel %vm1845_vm5, %v9025_v17, %v5168_v1 }
 0x1c6   : > { %v1877_v33 = vsel %vm1845_vm5, %v9026_v53, %v5169_v37  ;;  %v5444_v28 = vunpack.i.h.bf16 %v5442_v62  ;;  %v5443_v63 = vunpack.i.l.bf16 %v5442_v62  ;;  %v1878_v0 = vsel %vm1845_vm5, %v9027_v61, %v5173_v47 }
 0x1c7   : > { %v1879_v56 = vsel %vm1845_vm5, %v9028_v43, %v5174_v3  ;;  %v1913_v60 = vsel %vm1882_vm6, %v1876_v29, %v5258_v44  ;;  %v1914_v42 = vsel %vm1882_vm6, %v1877_v33, %v5259_v30  ;;  %v1915_v9 = vsel %vm1882_vm6, %v1878_v0, %v5263_v48 }
 0x1c8   : > { %4648 = vmatmul.mubr.msk.bf16.gmra.mrb[24].mxu0 %vm2038_vm9, %v2006_v20  ;;  %v1916_v6 = vsel %vm1882_vm6, %v1879_v56, %v5264_v38  ;;  %v1950_v52 = vsel %vm1919_vm7, %v1913_v60, %v5348_v22  ;;  %v1951_v23 = vsel %vm1919_vm7, %v1914_v42, %v5349_v57  ;;  %v1952_v31 = vsel %vm1919_vm7, %v1915_v9, %v5353_v10 }
 0x1c9   : > { %4651 = vmatprep.mubr.msk.bf16.mxu0 %vm2038_vm9, %v2007_v4  ;;  %v1953_v5 = vsel %vm1919_vm7, %v1916_v6, %v5354_v25  ;;  %v1987_v27 = vsel %vm1956_vm8, %v1950_v52, %v5438_v8  ;;  %v1988_v16 = vsel %vm1956_vm8, %v1951_v23, %v5439_v46  ;;  %v1989_v34 = vsel %vm1956_vm8, %v1952_v31, %v5443_v63 }
 0x1ca   : > { %v1990_v55 = vsel %vm1956_vm8, %v1953_v5, %v5444_v28  ;;  %v2008_v37 = vpack.c.bf16 %v1988_v16, %v1987_v27  ;;  %v9029_v32 = vmov 0.0  }
 0x1cb   : > { %v2009_v1 = vpack.c.bf16 %v1990_v55, %v1989_v34  ;;  %230 = vst.msk [vmem:[#allocation3 + $0x10] sm:$0x7] %vm229_vm10, %v9029_v32 }
 0x1cc   : > { %234 = vst.msk [vmem:[#allocation3 + $0x143] sm:$0x1f] %vm233_vm3, %v9029_v32 }
 0x1d0   : > { %4652 = vmatmul.mubr.msk.bf16.gmra.mrb[28].mxu0 %vm2038_vm9, %v2008_v37 }
 0x1d1   : > { %4655 = vmatprep.mubr.msk.bf16.mxu0 %vm2038_vm9, %v2009_v1 }
 0x1d2   : > { %v2400_v51 = vld [vmem:[#allocation3 + $0x9] sm:$0xff] }
 0x1d3   : > { %v5450_v12 = vpack.i.bf16 %v2400_v51, %v2399_v49  ;;  %v2436_v2 = vld [vmem:[#allocation3 + $0xa] sm:$0xff] }
 0x1d4   : > { %v5455_v39 = vpack.i.bf16 %v2436_v2, %v2435_v36 }
 0x1d5   : > { %5451 = vrot.lane.b32.xlu0 %v5450_v12, %s6187_s25 }
 0x1d8   : > { %4656 = vmatmul.mubr.msk.bf16.gmra.mrb[32].mxu0 %vm2038_vm9, %v2010_v26 }
 0x1d9   : > { %5456 = vrot.lane.b32.xlu0 %v5455_v39, %s6189_s27 }
 0x26b   : > { %v4625_v11 = vpop.f32.mrb[0].mxu0 }
 0x26c   : > { %v2140_v18 = vadd.f32 %v4625_v11, %v7800_v58  ;;  %v2131_v26 = vpop.f32.mrb[1].mxu0 }
 0x26d   : > { %v2132_v14 = vadd.f32 %v7800_v58, %v2131_v26  ;;  %v4626_v24 = vpop.f32.mrb[2].mxu0 }
 0x26e   : > { %v2276_v59 = vmax.f32 %v2140_v18, 0.0  ;;  %v2143_v7 = vadd.f32 %v4626_v24, %v7800_v58  ;;  %v2134_v35 = vpop.f32.mrb[3].mxu0 }
 0x26f   : > { %v2274_v41 = vmax.f32 %v2132_v14, 0.0  ;;  %v2135_v40 = vadd.f32 %v7800_v58, %v2134_v35 }
 0x270   : > { %2312 = vst.msk [vmem:[#allocation3 + $0x23] sm:$0xff] %vm226_vm2, %v2276_v59  ;;  %v2277_v21 = vmax.f32 %v2143_v7, 0.0 }
 0x271   : > { %2347 = vst.msk [vmem:[#allocation3 + $0x23] sm:$0x3] %vm2346_vm11, %v9029_v32  ;;  %v2275_v3 = vmax.f32 %v2135_v40, 0.0 }
 0x272   : > { %2310 = vst.msk [vmem:[#allocation3 + $0x13] sm:$0xff] %vm226_vm2, %v2274_v41  ;;  %2313 = vst.msk [vmem:[#allocation3 + $0x2b] sm:$0xff] %vm226_vm2, %v2277_v21 }
 0x273   : > { %2311 = vst.msk [vmem:[#allocation3 + $0x1b] sm:$0xff] %vm226_vm2, %v2275_v3  ;;  %v4629_v47 = vpop.f32.mrb[4].mxu0 }
 0x274   : > { %v2156_v54 = vadd.f32 %v4629_v47, %v7800_v58  ;;  %v2147_v19 = vpop.f32.mrb[5].mxu0 }
 0x275   : > { %v2148_v15 = vadd.f32 %v7800_v58, %v2147_v19  ;;  %v4630_v30 = vpop.f32.mrb[6].mxu0 }
 0x276   : > { %v2280_v44 = vmax.f32 %v2156_v54, 0.0  ;;  %v2159_v13 = vadd.f32 %v4630_v30, %v7800_v58  ;;  %v2150_v38 = vpop.f32.mrb[7].mxu0 }
 0x277   : > { %v2278_v48 = vmax.f32 %v2148_v15, 0.0  ;;  %v2151_v62 = vadd.f32 %v7800_v58, %v2150_v38 }
 0x278   : > { %2316 = vst.msk [vmem:[#allocation3 + $0x43] sm:$0xff] %vm226_vm2, %v2280_v44  ;;  %v2281_v50 = vmax.f32 %v2159_v13, 0.0  ;;  %v2475_v57 = vld [vmem:[#allocation3 + $0x23] sm:$0xff] }
 0x279   : > { %2349 = vst.msk [vmem:[#allocation3 + $0x47] sm:$0x3] %vm2346_vm11, %v9029_v32  ;;  %v2279_v22 = vmax.f32 %v2151_v62, 0.0  ;;  %v2476_v45 = vld [vmem:[#allocation3 + $0x2b] sm:$0xff]  ;;  %v2473_v2 = vld [vmem:[#allocation3 + $0x13] sm:$0xff] }
 0x27a   : > { %2314 = vst.msk [vmem:[#allocation3 + $0x33] sm:$0xff] %vm226_vm2, %v2278_v48  ;;  %v2404_v25 = vld [vmem:[#allocation3 + $0x29] sm:$0xff]  ;;  %2317 = vst.msk [vmem:[#allocation3 + $0x4b] sm:$0xff] %vm226_vm2, %v2281_v50  ;;  %v5460_v20 = vpack.i.bf16 %v2476_v45, %v2475_v57  ;;  %v2403_v10 = vld [vmem:[#allocation3 + $0x21] sm:$0xff] }
 0x27b   : > { %2348 = vst.msk [vmem:[#allocation3 + $0x35] sm:$0x3] %vm2346_vm11, %v9029_v32  ;;  %v4633_v46 = vpop.f32.mrb[8].mxu0  ;;  %v5470_v8 = vpack.i.bf16 %v2404_v25, %v2403_v10  ;;  %v2402_v4 = vld [vmem:[#allocation3 + $0x19] sm:$0xff]  ;;  %v2439_v53 = vld [vmem:[#allocation3 + $0x22] sm:$0xff]  ;;  %v2440_v33 = vld [vmem:[#allocation3 + $0x2a] sm:$0xff] }
 0x27c   : > { %2315 = vst.msk [vmem:[#allocation3 + $0x3b] sm:$0xff] %vm226_vm2, %v2279_v22  ;;  %v2172_v17 = vadd.f32 %v4633_v46, %v7800_v58  ;;  %5461 = vrot.lane.b32.xlu1 %v5460_v20, %s6193_s12  ;;  %v2163_v29 = vpop.f32.mrb[9].mxu0  ;;  %v2401_v61 = vld [vmem:[#allocation3 + $0x11] sm:$0xff]  ;;  %v5480_v6 = vpack.i.bf16 %v2440_v33, %v2439_v53  ;;  %v2438_v52 = vld [vmem:[#allocation3 + $0x1a] sm:$0xff]  ;;  %v2511_v41 = vld [vmem:[#allocation3 + $0x24] sm:$0xff] }
 0x27d   : > { %v2164_v28 = vadd.f32 %v7800_v58, %v2163_v29  ;;  %v4634_v63 = vpop.f32.mrb[10].mxu0  ;;  %5471 = vrot.lane.b32.xlu0 %v5470_v8, %s6187_s25  ;;  %v5465_v60 = vpack.i.bf16 %v2402_v4, %v2401_v61  ;;  %v2437_v5 = vld [vmem:[#allocation3 + $0x12] sm:$0xff]  ;;  %v2474_v37 = vld [vmem:[#allocation3 + $0x1b] sm:$0xff] }
 0x27e   : > { %v2284_v0 = vmax.f32 %v2172_v17, 0.0  ;;  %v2175_v43 = vadd.f32 %v4634_v63, %v7800_v58  ;;  %v2166_v56 = vpop.f32.mrb[11].mxu0  ;;  %v5475_v27 = vpack.i.bf16 %v2438_v52, %v2437_v5  ;;  %v5495_v18 = vpack.i.bf16 %v2474_v37, %v2473_v2  ;;  %v2509_v26 = vld [vmem:[#allocation3 + $0x14] sm:$0xff]  ;;  %v2510_v14 = vld [vmem:[#allocation3 + $0x1c] sm:$0xff]  ;;  %v2547_v17 = vld [vmem:[#allocation3 + $0x25] sm:$0xff] }
 0x27f   : > { %v2282_v42 = vmax.f32 %v2164_v28, 0.0  ;;  %v2167_v9 = vadd.f32 %v7800_v58, %v2166_v56  ;;  %v5500_v35 = vpack.i.bf16 %v2510_v14, %v2509_v26  ;;  %v6173_v20 = vld [vmem:[%s8775_s3] sm:$0xff]   ;;  %v6174_v56 = vld [vmem:[%s8775_s3 + $0x8] sm:$0xff]   ;;  %v6175_v5 = vld [vmem:[%s8775_s3 + $0x10] sm:$0xff]  }
 0x280   : > { %2320 = vst.msk [vmem:[#allocation3 + $0x63] sm:$0xff] %vm226_vm2, %v2284_v0  ;;  %v2285_v23 = vmax.f32 %v2175_v43, 0.0  ;;  %5466 = vrot.lane.b32.xlu1 %v5465_v60, %s6187_s25  ;;  %4659 = vmatprep.subr.bf16.mxu1 %v6173_v20  ;;  %v6176_v2 = vld [vmem:[%s8775_s3 + $0x18] sm:$0xff]  }
 0x281   : > { %2318 = vst.msk [vmem:[#allocation3 + $0x53] sm:$0xff] %vm226_vm2, %v2282_v42  ;;  %v2283_v31 = vmax.f32 %v2167_v9, 0.0  ;;  %5481 = vrot.lane.b32.xlu0 %v5480_v6, %s6189_s27  ;;  %v2512_v59 = vld [vmem:[#allocation3 + $0x2c] sm:$0xff]  ;;  %4660 = vmatpush3.bf16.msra.mxu1 %v6173_v20 }
 0x282   : > { %2350 = vst.msk [vmem:[#allocation3 + $0x59] sm:$0x3] %vm2346_vm11, %v9029_v32  ;;  %v5505_v21 = vpack.i.bf16 %v2512_v59, %v2511_v41  ;;  %v2408_v30 = vld [vmem:[#allocation3 + $0x49] sm:$0xff]  ;;  %v2441_v0 = vld [vmem:[#allocation3 + $0x32] sm:$0xff]  ;;  %4661 = vmatprep.subr.bf16.mxu1 %v6174_v56 }
 0x283   : > { %2321 = vst.msk [vmem:[#allocation3 + $0x6b] sm:$0xff] %vm226_vm2, %v2285_v23  ;;  %2319 = vst.msk [vmem:[#allocation3 + $0x5b] sm:$0xff] %vm226_vm2, %v2283_v31  ;;  %v4637_v16 = vpop.f32.mrb[12].mxu0  ;;  %v2407_v15 = vld [vmem:[#allocation3 + $0x41] sm:$0xff]  ;;  %v2548_v25 = vld [vmem:[#allocation3 + $0x2d] sm:$0xff] }
 0x284   : > { %2351 = vst.msk [vmem:[#allocation3 + $0x6b] sm:$0x3] %vm2346_vm11, %v9029_v32  ;;  %v2188_v34 = vadd.f32 %v4637_v16, %v7800_v58  ;;  %v2179_v55 = vpop.f32.mrb[13].mxu0  ;;  %5476 = vrot.lane.b32.xlu1 %v5475_v27, %s6189_s27  ;;  %v5535_v45 = vpack.i.bf16 %v2408_v30, %v2407_v15  ;;  %v2443_v46 = vld [vmem:[#allocation3 + $0x42] sm:$0xff]  ;;  %v2444_v8 = vld [vmem:[#allocation3 + $0x4a] sm:$0xff]  ;;  %v5515_v29 = vpack.i.bf16 %v2548_v25, %v2547_v17  ;;  %v2442_v43 = vld [vmem:[#allocation3 + $0x3a] sm:$0xff] }
 0x285   : > { %v2180_v1 = vadd.f32 %v7800_v58, %v2179_v55  ;;  %v4638_v49 = vpop.f32.mrb[14].mxu0  ;;  %5486 = vrot.lane.b32.xlu0 %v5475_v27, %s6191_s29  ;;  %v7873_v33 = vpack.i.bf16 %v2444_v8, %v2443_v46  ;;  %v2584_v28 = vld [vmem:[#allocation3 + $0x2e] sm:$0xff]  ;;  %v2583_v9 = vld [vmem:[#allocation3 + $0x26] sm:$0xff]  ;;  %4662 = vmatpush3.bf16.msra.mxu1 %v6174_v56  ;;  %v2406_v26 = vld [vmem:[#allocation3 + $0x39] sm:$0xff] }
 0x286   : > { %v2288_v51 = vmax.f32 %v2188_v34, 0.0  ;;  %v2191_v12 = vadd.f32 %v4638_v49, %v7800_v58  ;;  %v2182_v36 = vpop.f32.mrb[15].mxu0  ;;  %v5520_v31 = vpack.i.bf16 %v2584_v28, %v2583_v9  ;;  %v5550_v34 = vpack.i.bf16 %v2442_v43, %v2441_v0  ;;  %v2479_v55 = vld [vmem:[#allocation3 + $0x43] sm:$0xff]  ;;  %v2480_v37 = vld [vmem:[#allocation3 + $0x4b] sm:$0xff]  ;;  %v2477_v49 = vld [vmem:[#allocation3 + $0x33] sm:$0xff]  ;;  %4663 = vmatprep.subr.bf16.mxu1 %v6175_v5 }
 0x287   : > { %v2286_v39 = vmax.f32 %v2180_v1, 0.0  ;;  %v2183_v11 = vadd.f32 %v7800_v58, %v2182_v36  ;;  %v5525_v36 = vpack.i.bf16 %v2480_v37, %v2479_v55  ;;  %v2513_v59 = vld [vmem:[#allocation3 + $0x34] sm:$0xff]  ;;  %v2515_v56 = vld [vmem:[#allocation3 + $0x44] sm:$0xff] }
 0x288   : > { %2324 = vst.msk [vmem:[#allocation3 + $0x83] sm:$0xff] %vm226_vm2, %v2288_v51  ;;  %v2289_v24 = vmax.f32 %v2191_v12, 0.0  ;;  %5491 = vrot.lane.b32.xlu1 %v5480_v6, %s6191_s29  ;;  %v2478_v51 = vld [vmem:[#allocation3 + $0x3b] sm:$0xff] }
 0x289   : > { %2322 = vst.msk [vmem:[#allocation3 + $0x73] sm:$0xff] %vm226_vm2, %v2286_v39  ;;  %v2287_v7 = vmax.f32 %v2183_v11, 0.0  ;;  %5496 = vrot.lane.b32.xlu0 %v5495_v18, %s6193_s12  ;;  %v5560_v11 = vpack.i.bf16 %v2478_v51, %v2477_v49  ;;  %v2405_v18 = vld [vmem:[#allocation3 + $0x31] sm:$0xff]  ;;  %4664 = vmatpush3.bf16.msra.mxu1 %v6175_v5 }
 0x28a   : > { %2325 = vst.msk [vmem:[#allocation3 + $0x8b] sm:$0xff] %vm226_vm2, %v2289_v24  ;;  %v2517_v3 = vld [vmem:[#allocation3 + $0x54] sm:$0xff]  ;;  %v2518_v47 = vld [vmem:[#allocation3 + $0x5c] sm:$0xff]  ;;  %4665 = vmatprep.subr.bf16.mxu1 %v6176_v2 }
 0x28b   : > { %2353 = vst.msk [vmem:[#allocation3 + $0x8f] sm:$0x3] %vm2346_vm11, %v9029_v32  ;;  %v4641_v40 = vpop.f32.mrb[16].mxu0  ;;  %v7860_v38 = vpack.i.bf16 %v2518_v47, %v2517_v3  ;;  %v5530_v47 = vpack.i.bf16 %v2406_v26, %v2405_v18  ;;  %v2585_v20 = vld [vmem:[#allocation3 + $0x36] sm:$0xff]  ;;  %v2448_v18 = vld [vmem:[#allocation3 + $0x6a] sm:$0xff] }
 0x28c   : > { %2323 = vst.msk [vmem:[#allocation3 + $0x7b] sm:$0xff] %vm226_vm2, %v2287_v7  ;;  %v2204_v54 = vadd.f32 %v4641_v40, %v7800_v58  ;;  %v2195_v19 = vpop.f32.mrb[17].mxu0  ;;  %5501 = vrot.lane.b32.xlu1 %v5500_v35, %s6195_s15  ;;  %v2514_v7 = vld [vmem:[#allocation3 + $0x3c] sm:$0xff]  ;;  %v2588_v26 = vld [vmem:[#allocation3 + $0x4e] sm:$0xff] }
 0x28d   : > { %2352 = vst.msk [vmem:[#allocation3 + $0x7d] sm:$0x3] %vm2346_vm11, %v9029_v32  ;;  %v2196_v44 = vadd.f32 %v7800_v58, %v2195_v19  ;;  %v4642_v13 = vpop.f32.mrb[18].mxu0  ;;  %5506 = vrot.lane.b32.xlu0 %v5505_v21, %s6195_s15  ;;  %v5565_v30 = vpack.i.bf16 %v2514_v7, %v2513_v59  ;;  %4666 = vmatpush3.bf16.msra.mxu1 %v6176_v2  ;;  %v2410_v9 = vld [vmem:[#allocation3 + $0x59] sm:$0xff]  ;;  %v2411_v7 = vld [vmem:[#allocation3 + $0x61] sm:$0xff] }
 0x28e   : > { %v2292_v48 = vmax.f32 %v2204_v54, 0.0  ;;  %v2207_v62 = vadd.f32 %v4642_v13, %v7800_v58  ;;  %v2198_v50 = vpop.f32.mrb[19].mxu0  ;;  %v6177_v54 = vld [vmem:[%s8775_s3 + $0x20] ss:$0 sps:$4 sm:$0xff]   ;;  %v2446_v49 = vld [vmem:[#allocation3 + $0x5a] sm:$0xff] }
 0x28f   : > { %v2290_v57 = vmax.f32 %v2196_v44, 0.0  ;;  %v2199_v22 = vadd.f32 %v7800_v58, %v2198_v50  ;;  %v2549_v13 = vld [vmem:[#allocation3 + $0x35] sm:$0xff]  ;;  %4706 = vmatprep.subr.msk.bf16.mxu1 %vm4111_vm12, %v6177_v54 }
 0x290   : > { %2328 = vst.msk [vmem:[#allocation3 + $0xa3] sm:$0xff] %vm226_vm2, %v2292_v48  ;;  %v2293_v10 = vmax.f32 %v2207_v62, 0.0  ;;  %5511 = vrot.lane.b32.xlu1 %v5505_v21, %s6196_s20  ;;  %v2550_v48 = vld [vmem:[#allocation3 + $0x3d] sm:$0xff]  ;;  %v4113_v62 = vsel %vm4111_vm12, %v6177_v54, 0 }
 0x291   : > { %2326 = vst.msk [vmem:[#allocation3 + $0x93] sm:$0xff] %vm226_vm2, %v2290_v57  ;;  %v2291_v4 = vmax.f32 %v2199_v22, 0.0  ;;  %5536 = vrot.lane.b32.xlu0 %v5535_v45, %s6187_s25  ;;  %v5570_v22 = vpack.i.bf16 %v2550_v48, %v2549_v13  ;;  %4668 = vmatpush3.bf16.msra.mxu1 %v4113_v62  ;;  %v2590_v54 = vld [vmem:[#allocation3 + $0x5e] sm:$0xff] }
 0x292   : > { %2329 = vst.msk [vmem:[#allocation3 + $0xab] sm:$0xff] %vm226_vm2, %v2293_v10  ;;  %v2586_v10 = vld [vmem:[#allocation3 + $0x3e] sm:$0xff]  ;;  %v2416_v13 = vld [vmem:[#allocation3 + $0x89] sm:$0xff] }
 0x293   : > { %2327 = vst.msk [vmem:[#allocation3 + $0x9b] sm:$0xff] %vm226_vm2, %v2291_v4  ;;  %v4645_v53 = vpop.f32.mrb[20].mxu0 }
 0x294   : > { %2354 = vst.msk [vmem:[#allocation3 + $0xa1] sm:$0x3] %vm2346_vm11, %v9029_v32  ;;  %v2220_v63 = vadd.f32 %v4645_v53, %v7800_v58  ;;  %v2211_v61 = vpop.f32.mrb[21].mxu0  ;;  %5516 = vrot.lane.b32.xlu1 %v5515_v29, %s6197_s21 }
 0x295   : > { %v2212_v60 = vadd.f32 %v7800_v58, %v2211_v61  ;;  %v4646_v42 = vpop.f32.mrb[22].mxu0  ;;  %5546 = vrot.lane.b32.xlu0 %v7873_v33, %s6189_s27  ;;  %v2516_v61 = vld [vmem:[#allocation3 + $0x4c] sm:$0xff] }
 0x296   : > { %v2296_v6 = vmax.f32 %v2220_v63, 0.0  ;;  %v2223_v52 = vadd.f32 %v4646_v42, %v7800_v58  ;;  %v2214_v23 = vpop.f32.mrb[23].mxu0  ;;  %v5575_v63 = vpack.i.bf16 %v2586_v10, %v2585_v20 }
 0x297   : > { %v2294_v27 = vmax.f32 %v2212_v60, 0.0  ;;  %v2215_v16 = vadd.f32 %v7800_v58, %v2214_v23  ;;  %v5585_v60 = vpack.i.bf16 %v2516_v61, %v2515_v56 }
 0x298   : > { %2332 = vst.msk [vmem:[#allocation3 + $0xc3] sm:$0xff] %vm226_vm2, %v2296_v6  ;;  %v2297_v1 = vmax.f32 %v2223_v52, 0.0  ;;  %5521 = vrot.lane.b32.xlu1 %v5520_v31, %s6198_s28  ;;  %v2409_v31 = vld [vmem:[#allocation3 + $0x51] sm:$0xff] }
 0x299   : > { %2356 = vst.msk [vmem:[#allocation3 + $0xc5] sm:$0x3] %vm2346_vm11, %v9029_v32  ;;  %v2295_v12 = vmax.f32 %v2215_v16, 0.0  ;;  %5551 = vrot.lane.b32.xlu0 %v5550_v34, %s6191_s29 }
 0x29a   : > { %2330 = vst.msk [vmem:[#allocation3 + $0xb3] sm:$0xff] %vm226_vm2, %v2294_v27  ;;  %2333 = vst.msk [vmem:[#allocation3 + $0xcb] sm:$0xff] %vm226_vm2, %v2297_v1  ;;  %v2445_v1 = vld [vmem:[#allocation3 + $0x52] sm:$0xff] }
 0x29b   : > { %2355 = vst.msk [vmem:[#allocation3 + $0xb3] sm:$0x3] %vm2346_vm11, %v9029_v32  ;;  %v4649_v39 = vpop.f32.mrb[24].mxu0  ;;  %v5615_v2 = vpack.i.bf16 %v2446_v49, %v2445_v1  ;;  %v2418_v10 = vld [vmem:[#allocation3 + $0x99] sm:$0xff] }
 0x29c   : > { %2331 = vst.msk [vmem:[#allocation3 + $0xbb] sm:$0xff] %vm226_vm2, %v2295_v12  ;;  %v2236_v14 = vadd.f32 %v4649_v39, %v7800_v58  ;;  %v2227_v24 = vpop.f32.mrb[25].mxu0  ;;  %5526 = vrot.lane.b32.xlu1 %v5525_v36, %s6193_s12  ;;  %v2552_v12 = vld [vmem:[#allocation3 + $0x4d] sm:$0xff]  ;;  %v2551_v39 = vld [vmem:[#allocation3 + $0x45] sm:$0xff] }
 0x29d   : > { %v2228_v35 = vadd.f32 %v7800_v58, %v2227_v24  ;;  %v4650_v41 = vpop.f32.mrb[26].mxu0  ;;  %5561 = vrot.lane.b32.xlu0 %v5560_v11, %s6193_s12  ;;  %v2447_v11 = vld [vmem:[#allocation3 + $0x62] sm:$0xff] }
 0x29e   : > { %v2300_v40 = vmax.f32 %v2236_v14, 0.0  ;;  %v2239_v21 = vadd.f32 %v4650_v41, %v7800_v58  ;;  %v2230_v3 = vpop.f32.mrb[27].mxu0  ;;  %v5630_v14 = vpack.i.bf16 %v2448_v18, %v2447_v11  ;;  %v2587_v24 = vld [vmem:[#allocation3 + $0x46] sm:$0xff] }
 0x29f   : > { %v2298_v19 = vmax.f32 %v2228_v35, 0.0  ;;  %v2231_v15 = vadd.f32 %v7800_v58, %v2230_v3  ;;  %v5600_v59 = vpack.i.bf16 %v2588_v26, %v2587_v24  ;;  %v2412_v35 = vld [vmem:[#allocation3 + $0x69] sm:$0xff] }
 0x2a0   : > { %2336 = vst.msk [vmem:[#allocation3 + $0xe3] sm:$0xff] %vm226_vm2, %v2300_v40  ;;  %v2301_v44 = vmax.f32 %v2239_v21, 0.0  ;;  %5531 = vrot.lane.b32.xlu1 %v5530_v47, %s6187_s25  ;;  %v5610_v41 = vpack.i.bf16 %v2412_v35, %v2411_v7  ;;  %v2553_v40 = vld [vmem:[#allocation3 + $0x55] sm:$0xff]  ;;  %v2554_v21 = vld [vmem:[#allocation3 + $0x5d] sm:$0xff] }
 0x2a1   : > { %2358 = vst.msk [vmem:[#allocation3 + $0xe9] sm:$0x3] %vm2346_vm11, %v9029_v32  ;;  %v2299_v50 = vmax.f32 %v2231_v15, 0.0  ;;  %5566 = vrot.lane.b32.xlu0 %v5565_v30, %s6196_s20  ;;  %v5640_v3 = vpack.i.bf16 %v2554_v21, %v2553_v40  ;;  %v2589_v47 = vld [vmem:[#allocation3 + $0x56] sm:$0xff]  ;;  %v2451_v15 = vld [vmem:[#allocation3 + $0x82] sm:$0xff] }
 0x2a2   : > { %2334 = vst.msk [vmem:[#allocation3 + $0xd3] sm:$0xff] %vm226_vm2, %v2298_v19  ;;  %2337 = vst.msk [vmem:[#allocation3 + $0xeb] sm:$0xff] %vm226_vm2, %v2301_v44  ;;  %v5645_v19 = vpack.i.bf16 %v2590_v54, %v2589_v47  ;;  %v2415_v44 = vld [vmem:[#allocation3 + $0x81] sm:$0xff]  ;;  %v2421_v56 = vld [vmem:[#allocation3 + $0xb1] sm:$0xff] }
 0x2a3   : > { %2357 = vst.msk [vmem:[#allocation3 + $0xd7] sm:$0x3] %vm2346_vm11, %v9029_v32  ;;  %v4653_v57 = vpop.f32.mrb[28].mxu0  ;;  %v5650_v62 = vpack.i.bf16 %v2416_v13, %v2415_v44 }
 0x2a4   : > { %2335 = vst.msk [vmem:[#allocation3 + $0xdb] sm:$0xff] %vm226_vm2, %v2299_v50  ;;  %v2252_v45 = vadd.f32 %v4653_v57, %v7800_v58  ;;  %v2243_v25 = vpop.f32.mrb[29].mxu0  ;;  %5541 = vrot.lane.b32.xlu1 %v5550_v34, %s6189_s27  ;;  %v5605_v34 = vpack.i.bf16 %v2410_v9, %v2409_v31  ;;  %v2414_v50 = vld [vmem:[#allocation3 + $0x79] sm:$0xff]  ;;  %v2413_v57 = vld [vmem:[#allocation3 + $0x71] sm:$0xff]  ;;  %v2424_v9 = vld [vmem:[#allocation3 + $0xc9] sm:$0xff] }
 0x2a5   : > { %v2244_v46 = vadd.f32 %v7800_v58, %v2243_v25  ;;  %v4654_v8 = vpop.f32.mrb[30].mxu0  ;;  %5571 = vrot.lane.b32.xlu0 %v5570_v22, %s6197_s21  ;;  %v5665_v22 = vpack.i.bf16 %v2414_v50, %v2413_v57  ;;  %v2449_v25 = vld [vmem:[#allocation3 + $0x72] sm:$0xff]  ;;  %v2459_v31 = vld [vmem:[#allocation3 + $0xc2] sm:$0xff] }
 0x2a6   : > { %v2304_v4 = vmax.f32 %v2252_v45, 0.0  ;;  %v2255_v17 = vadd.f32 %v4654_v8, %v7800_v58  ;;  %v2246_v29 = vpop.f32.mrb[31].mxu0  ;;  %v2450_v45 = vld [vmem:[#allocation3 + $0x7a] sm:$0xff]  ;;  %v2417_v8 = vld [vmem:[#allocation3 + $0x91] sm:$0xff] }
 0x2a7   : > { %v2302_v53 = vmax.f32 %v2244_v46, 0.0  ;;  %v2247_v28 = vadd.f32 %v7800_v58, %v2246_v29  ;;  %v5670_v20 = vpack.i.bf16 %v2450_v45, %v2449_v25  ;;  %v2419_v46 = vld [vmem:[#allocation3 + $0xa1] sm:$0xff] }
 0x2a8   : > { %2340 = vst.msk [vmem:[#allocation3 + $0x103] sm:$0xff] %vm226_vm2, %v2304_v4  ;;  %v2305_v0 = vmax.f32 %v2255_v17, 0.0  ;;  %5556 = vrot.lane.b32.xlu1 %v7873_v33, %s6191_s29  ;;  %v5680_v4 = vpack.i.bf16 %v2418_v10, %v2417_v8  ;;  %v2420_v17 = vld [vmem:[#allocation3 + $0xa9] sm:$0xff] }
 0x2a9   : > { %2338 = vst.msk [vmem:[#allocation3 + $0xf3] sm:$0xff] %vm226_vm2, %v2302_v53  ;;  %v2303_v43 = vmax.f32 %v2247_v28, 0.0  ;;  %5576 = vrot.lane.b32.xlu0 %v5575_v63, %s6198_s28  ;;  %v5685_v29 = vpack.i.bf16 %v2420_v17, %v2419_v46  ;;  %v2454_v53 = vld [vmem:[#allocation3 + $0x9a] sm:$0xff]  ;;  %v2455_v28 = vld [vmem:[#allocation3 + $0xa2] sm:$0xff]  ;;  %v2453_v63 = vld [vmem:[#allocation3 + $0x92] sm:$0xff] }
 0x2aa   : > { %2341 = vst.msk [vmem:[#allocation3 + $0x10b] sm:$0xff] %vm226_vm2, %v2305_v0  ;;  %v5690_v61 = vpack.i.bf16 %v2454_v53, %v2453_v63  ;;  %v2456_v0 = vld [vmem:[#allocation3 + $0xaa] sm:$0xff]  ;;  %v2482_v17 = vld [vmem:[#allocation3 + $0x5b] sm:$0xff] }
 0x2ab   : > { %2360 = vst.msk [vmem:[#allocation3 + $0x10d] sm:$0x3] %vm2346_vm11, %v9029_v32  ;;  %v4657_v42 = vpop.f32.mrb[32].mxu0  ;;  %v2427_v1 = vld [vmem:[#allocation3 + $0xe1] sm:$0xff]  ;;  %v2428_v49 = vld [vmem:[#allocation3 + $0xe9] sm:$0xff] }
 0x2ac   : > { %2339 = vst.msk [vmem:[#allocation3 + $0xfb] sm:$0xff] %vm226_vm2, %v2303_v43  ;;  %v2268_v33 = vadd.f32 %v4657_v42, %v7800_v58  ;;  %v2259_v6 = vpop.f32.mrb[33].mxu0  ;;  %5586 = vrot.lane.b32.xlu1 %v5585_v60, %s6195_s15  ;;  %v5695_v43 = vpack.i.bf16 %v2456_v0, %v2455_v28  ;;  %v2423_v42 = vld [vmem:[#allocation3 + $0xc1] sm:$0xff]  ;;  %v2464_v11 = vld [vmem:[#allocation3 + $0xea] sm:$0xff] }
 0x2ad   : > { %2359 = vst.msk [vmem:[#allocation3 + $0xfb] sm:$0x3] %vm2346_vm11, %v9029_v32  ;;  %v2260_v52 = vadd.f32 %v7800_v58, %v2259_v6  ;;  %v4658_v23 = vpop.f32.mrb[34].mxu0  ;;  %5581 = vrot.lane.b32.xlu0 %v5565_v30, %s6195_s15  ;;  %v2452_v30 = vld [vmem:[#allocation3 + $0x8a] sm:$0xff]  ;;  %v5715_v6 = vpack.i.bf16 %v2424_v9, %v2423_v42 }
 0x2ae   : > { %v2308_v5 = vmax.f32 %v2268_v33, 0.0  ;;  %v2271_v27 = vadd.f32 %v4658_v23, %v7800_v58  ;;  %v2262_v16 = vpop.f32.mrb[35].mxu0  ;;  %v5660_v48 = vpack.i.bf16 %v2452_v30, %v2451_v15  ;;  %v2458_v23 = vld [vmem:[#allocation3 + $0xba] sm:$0xff]  ;;  %v2364_v10 = vld [vmem:[#allocation3 + $0x8] sm:$0xff] }
 0x2af   : > { %v2306_v55 = vmax.f32 %v2260_v52, 0.0  ;;  %v2263_v37 = vadd.f32 %v7800_v58, %v2262_v16  ;;  %v5595_v58 = vpack.i.bf16 %v2552_v12, %v2551_v39  ;;  %v2457_v52 = vld [vmem:[#allocation3 + $0xb2] sm:$0xff]  ;;  %v2462_v39 = vld [vmem:[#allocation3 + $0xda] sm:$0xff]  ;;  %v2483_v28 = vld [vmem:[#allocation3 + $0x63] sm:$0xff] }
 0x2b0   : > { %2344 = vst.msk [vmem:[#allocation3 + $0x123] sm:$0xff] %vm226_vm2, %v2308_v5  ;;  %v2309_v51 = vmax.f32 %v2271_v27, 0.0  ;;  %5606 = vrot.lane.b32.xlu1 %v5605_v34, %s6187_s25  ;;  %v2460_v5 = vld [vmem:[#allocation3 + $0xca] sm:$0xff]  ;;  %v5720_v27 = vpack.i.bf16 %v2458_v23, %v2457_v52  ;;  %v7980_v34 = vpop.permute.xlu0 %5451  ;;  %v2465_v50 = vld [vmem:[#allocation3 + $0xf2] sm:$0xff] }
 0x2b1   : > { %2342 = vst.msk [vmem:[#allocation3 + $0x113] sm:$0xff] %vm226_vm2, %v2306_v55  ;;  %v2307_v36 = vmax.f32 %v2263_v37, 0.0  ;;  %5591 = vrot.lane.b32.xlu0 %v5585_v60, %s6196_s20  ;;  %v2422_v60 = vld [vmem:[#allocation3 + $0xb9] sm:$0xff]  ;;  %v5725_v16 = vpack.i.bf16 %v2460_v5, %v2459_v31  ;;  %v2425_v55 = vld [vmem:[#allocation3 + $0xd1] sm:$0xff]  ;;  %v5454_v57 = vunpack.i.h.bf16 %v7980_v34 }
 0x2b2   : > { %2345 = vst.msk [vmem:[#allocation3 + $0x12b] sm:$0xff] %vm226_vm2, %v2309_v51  ;;  %v5710_v33 = vpack.i.bf16 %v2422_v60, %v2421_v56  ;;  %v2426_v37 = vld [vmem:[#allocation3 + $0xd9] sm:$0xff]  ;;  %v2432_v21 = vld [vmem:[#allocation3 + $0x109] sm:$0xff]  ;;  %v2429_v30 = vld [vmem:[#allocation3 + $0xf1] sm:$0xff] }
 0x2b3   : > { %2362 = vst.msk [vmem:[#allocation3 + $0x131] sm:$0x3] %vm2346_vm11, %v9029_v32  ;;  %v5740_v12 = vpack.i.bf16 %v2426_v37, %v2425_v55  ;;  %v2467_v35 = vld [vmem:[#allocation3 + $0x102] sm:$0xff]  ;;  %v2484_v8 = vld [vmem:[#allocation3 + $0x6b] sm:$0xff]  ;;  %v3704_v63 = vsel %vm226_vm2, %v2364_v10, %v5454_v57 }
 0x2b4   : > { %2343 = vst.msk [vmem:[#allocation3 + $0x11b] sm:$0xff] %vm226_vm2, %v2307_v36  ;;  %5616 = vrot.lane.b32.xlu1 %v5615_v2, %s6189_s27  ;;  %v7986_v51 = vpop.permute.xlu0 %5456  ;;  %v5745_v36 = vpack.i.bf16 %v2428_v49, %v2427_v1  ;;  %v2431_v40 = vld [vmem:[#allocation3 + $0x101] sm:$0xff]  ;;  %v2430_v15 = vld [vmem:[#allocation3 + $0xf9] sm:$0xff]  ;;  %v2520_v57 = vld [vmem:[#allocation3 + $0x6c] sm:$0xff] }
 0x2b5   : > { %2361 = vst.msk [vmem:[#allocation3 + $0x11f] sm:$0x3] %vm2346_vm11, %v9029_v32  ;;  %5596 = vrot.lane.b32.xlu0 %v5595_v58, %s6197_s21  ;;  %v2463_v58 = vld [vmem:[#allocation3 + $0xe2] sm:$0xff]  ;;  %v5785_v13 = vpack.i.bf16 %v2430_v15, %v2429_v30  ;;  %v5458_v53 = vunpack.i.l.bf16 %v7986_v51 }
 0x2b6   : > { %v5755_v24 = vpack.i.bf16 %v2464_v11, %v2463_v58  ;;  %v2519_v10 = vld [vmem:[#allocation3 + $0x64] sm:$0xff] }
 0x2b8   : > { %5631 = vrot.lane.b32.xlu1 %v5630_v14, %s6191_s29  ;;  %v2469_v1 = vld [vmem:[#allocation3 + $0x112] sm:$0xff] }
 0x2b9   : > { %5601 = vrot.lane.b32.xlu0 %v5600_v59, %s6198_s28 }
 0x2ba   : > { %v2472_v9 = vld [vmem:[#allocation3 + $0x12a] sm:$0xff] }
 0x2bb   : > { %v2471_v42 = vld [vmem:[#allocation3 + $0x122] sm:$0xff] }
 0x2bc   : > { %5636 = vrot.lane.b32.xlu1 %v7860_v38, %s6196_s20  ;;  %v2470_v52 = vld [vmem:[#allocation3 + $0x11a] sm:$0xff]  ;;  %v5810_v37 = vpack.i.bf16 %v2472_v9, %v2471_v42 }
 0x2bd   : > { %5611 = vrot.lane.b32.xlu0 %v5610_v41, %s6187_s25  ;;  %v2468_v41 = vld [vmem:[#allocation3 + $0x10a] sm:$0xff]  ;;  %v2521_v9 = vld [vmem:[#allocation3 + $0x74] sm:$0xff] }
 0x2be   : > { %v5780_v47 = vpack.i.bf16 %v2468_v41, %v2467_v35  ;;  %v2433_v41 = vld [vmem:[#allocation3 + $0x111] sm:$0xff] }
 0x2c0   : > { %5641 = vrot.lane.b32.xlu1 %v5640_v3, %s6197_s21 }
 0x2c1   : > { %5621 = vrot.lane.b32.xlu0 %v5630_v14, %s6189_s27 }
 0x2c4   : > { %5646 = vrot.lane.b32.xlu1 %v5645_v19, %s6198_s28  ;;  %v5770_v19 = vpack.i.bf16 %v2432_v21, %v2431_v40 }
 0x2c5   : > { %5626 = vrot.lane.b32.xlu0 %v5615_v2, %s6191_s29  ;;  %v2461_v2 = vld [vmem:[#allocation3 + $0xd2] sm:$0xff] }
 0x2c6   : > { %v5750_v26 = vpack.i.bf16 %v2462_v39, %v2461_v2  ;;  %v2434_v2 = vld [vmem:[#allocation3 + $0x119] sm:$0xff] }
 0x2c8   : > { %5661 = vrot.lane.b32.xlu1 %v5660_v48, %s6191_s29 }
 0x2c9   : > { %5651 = vrot.lane.b32.xlu0 %v5650_v62, %s6187_s25  ;;  %v2466_v62 = vld [vmem:[#allocation3 + $0xfa] sm:$0xff] }
 0x2ca   : > { %v5790_v25 = vpack.i.bf16 %v2466_v62, %v2465_v50 }
 0x2cc   : > { %5666 = vrot.lane.b32.xlu1 %v5665_v22, %s6187_s25  ;;  %v5453_v22 = vunpack.i.l.bf16 %v7980_v34 }
 0x2cd   : > { %5656 = vrot.lane.b32.xlu0 %v5660_v48, %s6189_s27 }
 0x2d0   : > { %5671 = vrot.lane.b32.xlu1 %v5670_v20, %s6189_s27 }
 0x2d1   : > { %5676 = vrot.lane.b32.xlu0 %v5670_v20, %s6191_s29  ;;  %v2363_v20 = vld [vmem:[#allocation3] sm:$0xff] }
 0x2d4   : > { %5681 = vrot.lane.b32.xlu1 %v5680_v4, %s6187_s25  ;;  %v2481_v4 = vld [vmem:[#allocation3 + $0x53] sm:$0xff] }
 0x2d5   : > { %5686 = vrot.lane.b32.xlu0 %v5685_v29, %s6187_s25  ;;  %v5459_v29 = vunpack.i.h.bf16 %v7986_v51  ;;  %v5800_v60 = vpack.i.bf16 %v2482_v17, %v2481_v4  ;;  %v5840_v4 = vpack.i.bf16 %v2520_v57, %v2519_v10  ;;  %v2556_v17 = vld [vmem:[#allocation3 + $0x6d] sm:$0xff] }
 0x2d7   : > { %v3740_v31 = vsel %vm1808_vm4, %v3704_v63, %v5459_v29 }
 0x2d8   : > { %5691 = vrot.lane.b32.xlu1 %v5690_v61, %s6189_s27 }
 0x2d9   : > { %5696 = vrot.lane.b32.xlu0 %v5695_v43, %s6189_s27 }
 0x2dc   : > { %5706 = vrot.lane.b32.xlu1 %v5695_v43, %s6191_s29  ;;  %v5805_v43 = vpack.i.bf16 %v2484_v8, %v2483_v28 }
 0x2dd   : > { %5701 = vrot.lane.b32.xlu0 %v5690_v61, %s6191_s29  ;;  %v3703_v61 = vsel %vm226_vm2, %v2363_v20, %v5453_v22 }
 0x2de   : > { %v3739_v23 = vsel %vm1808_vm4, %v3703_v61, %v5458_v53  ;;  %v2555_v61 = vld [vmem:[#allocation3 + $0x65] sm:$0xff] }
 0x2df   : > { %v5850_v42 = vpack.i.bf16 %v2556_v17, %v2555_v61  ;;  %v2524_v61 = vld [vmem:[#allocation3 + $0x8c] sm:$0xff] }
 0x2e0   : > { %5711 = vrot.lane.b32.xlu1 %v5710_v33, %s6187_s25 }
 0x2e1   : > { %5716 = vrot.lane.b32.xlu0 %v5715_v6, %s6187_s25 }
 0x2e4   : > { %5721 = vrot.lane.b32.xlu1 %v5720_v27, %s6189_s27 }
 0x2e5   : > { %5726 = vrot.lane.b32.xlu0 %v5725_v16, %s6189_s27 }
 0x2e8   : > { %5736 = vrot.lane.b32.xlu1 %v5725_v16, %s6191_s29 }
 0x2e9   : > { %5731 = vrot.lane.b32.xlu0 %v5720_v27, %s6191_s29 }
 0x2ec   : > { %5741 = vrot.lane.b32.xlu1 %v5740_v12, %s6187_s25 }
 0x2ed   : > { %5746 = vrot.lane.b32.xlu0 %v5745_v36, %s6187_s25  ;;  %v5825_v36 = vpack.i.bf16 %v2470_v52, %v2469_v1  ;;  %v2366_v52 = vld [vmem:[#allocation3 + $0x18] sm:$0xff] }
 0x2ee   : > { %v7990_v18 = vpop.permute.xlu1 %5461 }
 0x2ef   : > { %v7992_v14 = vpop.permute.xlu0 %5471 }
 0x2f0   : > { %5751 = vrot.lane.b32.xlu1 %v5750_v26, %s6189_s27 }
 0x2f1   : > { %5756 = vrot.lane.b32.xlu0 %v5755_v24, %s6189_s27 }
 0x2f2   : > { %v7996_v59 = vpop.permute.xlu1 %5466 }
 0x2f3   : > { %v7998_v7 = vpop.permute.xlu0 %5481  ;;  %v5469_v29 = vunpack.i.h.bf16 %v7996_v59 }
 0x2f4   : > { %5766 = vrot.lane.b32.xlu1 %v5755_v24, %s6191_s29 }
 0x2f5   : > { %5761 = vrot.lane.b32.xlu0 %v5750_v26, %s6191_s29 }
 0x2f6   : > { %v8002_v3 = vpop.permute.xlu1 %5476 }
 0x2f7   : > { %v5487_v54 = vpop.permute.xlu0 %5486  ;;  %v5479_v53 = vunpack.i.h.bf16 %v8002_v3  ;;  %v5478_v28 = vunpack.i.l.bf16 %v8002_v3 }
 0x2f8   : > { %5781 = vrot.lane.b32.xlu1 %v5780_v47, %s6191_s29  ;;  %v5489_v33 = vunpack.i.h.bf16 %v5487_v54  ;;  %v5488_v6 = vunpack.i.l.bf16 %v5487_v54  ;;  %v5815_v54 = vpack.i.bf16 %v2434_v2, %v2433_v41  ;;  %v5464_v2 = vunpack.i.h.bf16 %v7990_v18 }
 0x2f9   : > { %5771 = vrot.lane.b32.xlu0 %v5770_v19, %s6187_s25 }
 0x2fa   : > { %v8006_v44 = vpop.permute.xlu1 %5491  ;;  %v3776_v39 = vsel %vm1882_vm6, %v3740_v31, %v5489_v33  ;;  %v3775_v58 = vsel %vm1882_vm6, %v3739_v23, %v5488_v6  ;;  %v2522_v33 = vld [vmem:[#allocation3 + $0x7c] sm:$0xff]  ;;  %v2592_v6 = vld [vmem:[#allocation3 + $0x6e] sm:$0xff]  ;;  %v3706_v23 = vsel %vm226_vm2, %v2366_v52, %v5469_v29  ;;  %v2591_v31 = vld [vmem:[#allocation3 + $0x66] sm:$0xff] }
 0x2fb   : > { %v5497_v48 = vpop.permute.xlu0 %5496  ;;  %v2560_v52 = vld [vmem:[#allocation3 + $0x8d] sm:$0xff] }
 0x2fc   : > { %5786 = vrot.lane.b32.xlu1 %v5785_v13, %s6187_s25  ;;  %v5499_v5 = vunpack.i.h.bf16 %v5497_v48  ;;  %v5498_v27 = vunpack.i.l.bf16 %v5497_v48 }
 0x2fd   : > { %5776 = vrot.lane.b32.xlu0 %v5780_v47, %s6189_s27 }
 0x2fe   : > { %v5502_v45 = vpop.permute.xlu1 %5501  ;;  %v3811_v24 = vsel %vm1956_vm8, %v3775_v58, %v5498_v27  ;;  %v3812_v35 = vsel %vm1956_vm8, %v3776_v39, %v5499_v5  ;;  %v3742_v5 = vsel %vm1808_vm4, %v3706_v23, %v5479_v53  ;;  %v5463_v39 = vunpack.i.l.bf16 %v7990_v18  ;;  %v2526_v23 = vld [vmem:[#allocation3 + $0x9c] sm:$0xff] }
 0x2ff   : > { %v8012_v46 = vpop.permute.xlu0 %5506  ;;  %v5504_v16 = vunpack.i.h.bf16 %v5502_v45  ;;  %v5503_v34 = vunpack.i.l.bf16 %v5502_v45 }
 0x300   : > { %5791 = vrot.lane.b32.xlu1 %v5790_v25, %s6189_s27  ;;  %v5508_v1 = vunpack.i.l.bf16 %v8012_v46 }
 0x301   : > { %5796 = vrot.lane.b32.xlu0 %v5790_v25, %s6191_s29  ;;  %v3849_v40 = vsel %vm3847_vm13, %v3812_v35, %v5504_v16  ;;  %v3848_v21 = vsel %vm3847_vm13, %v3811_v24, %v5503_v34  ;;  %v5845_v16 = vpack.i.bf16 %v2522_v33, %v2521_v9  ;;  %v5860_v34 = vpack.i.bf16 %v2592_v6, %v2591_v31 }
 0x302   : > { %v5512_v0 = vpop.permute.xlu1 %5511  ;;  %v5474_v9 = vunpack.i.h.bf16 %v7992_v14  ;;  %v5473_v33 = vunpack.i.l.bf16 %v7992_v14  ;;  %v5484_v31 = vunpack.i.h.bf16 %v7998_v7  ;;  %v2367_v14 = vld [vmem:[#allocation3 + $0x20] sm:$0xff] }
 0x303   : > { %v8020_v56 = vpop.permute.xlu0 %5536  ;;  %v5514_v49 = vunpack.i.h.bf16 %v5512_v0  ;;  %v5513_v51 = vunpack.i.l.bf16 %v5512_v0  ;;  %v5494_v0 = vunpack.i.h.bf16 %v8006_v44 }
 0x304   : > { %5806 = vrot.lane.b32.xlu1 %v5805_v43, %s6193_s12  ;;  %v5493_v43 = vunpack.i.l.bf16 %v8006_v44 }
 0x305   : > { %5801 = vrot.lane.b32.xlu0 %v5800_v60, %s6193_s12  ;;  %v3885_v13 = vsel %vm3884_vm14, %v3848_v21, %v5513_v51  ;;  %v3886_v48 = vsel %vm3884_vm14, %v3849_v40, %v5514_v49  ;;  %v2557_v51 = vld [vmem:[#allocation3 + $0x75] sm:$0xff] }
 0x306   : > { %v5517_v55 = vpop.permute.xlu1 %5516 }
 0x307   : > { %v8026_v12 = vpop.permute.xlu0 %5546  ;;  %v5519_v11 = vunpack.i.h.bf16 %v5517_v55  ;;  %v5518_v26 = vunpack.i.l.bf16 %v5517_v55  ;;  %v3778_v55 = vsel %vm1882_vm6, %v3742_v5, %v5494_v0  ;;  %v2487_v0 = vld [vmem:[#allocation3 + $0x83] sm:$0xff] }
 0x308   : > { %5811 = vrot.lane.b32.xlu1 %v5810_v37, %s6191_s29  ;;  %v5509_v37 = vunpack.i.h.bf16 %v8012_v46  ;;  %v3814_v46 = vsel %vm1956_vm8, %v3778_v55, %v5464_v2 }
 0x309   : > { %5826 = vrot.lane.b32.xlu0 %v5825_v36, %s6191_s29  ;;  %v3922_v62 = vsel %vm3921_vm15, %v3885_v13, %v5518_v26  ;;  %v3923_v50 = vsel %vm3921_vm15, %v3886_v48, %v5519_v11  ;;  %v2486_v26 = vld [vmem:[#allocation3 + $0x7b] sm:$0xff] }
 0x30a   : > { %v5522_v47 = vpop.permute.xlu1 %5521  ;;  %v3851_v18 = vsel %vm3847_vm13, %v3814_v46, %v5509_v37  ;;  %v2593_v13 = vld [vmem:[#allocation3 + $0x76] sm:$0xff]  ;;  %v2594_v48 = vld [vmem:[#allocation3 + $0x7e] sm:$0xff] }
 0x30b   : > { %v5524_v19 = vunpack.i.h.bf16 %v5522_v47  ;;  %v5523_v15 = vunpack.i.l.bf16 %v5522_v47  ;;  %v8036_v30 = vpop.permute.xlu0 %5551  ;;  %v2485_v47 = vld [vmem:[#allocation3 + $0x73] sm:$0xff]  ;;  %v5865_v29 = vpack.i.bf16 %v2594_v48, %v2593_v13 }
 0x30c   : > { %5816 = vrot.lane.b32.xlu1 %v5815_v54, %s6187_s25  ;;  %v5554_v5 = vunpack.i.h.bf16 %v8036_v30  ;;  %s4708_s25 = smul.u32 288, %s9037_s19 }
 0x30d   : > { %5831 = vrot.lane.b32.xlu0 %v7860_v38, %s6195_s15  ;;  %v3959_v22 = vsel %vm3958_vm0, %v3922_v62, %v5523_v15  ;;  %v3960_v45 = vsel %vm3958_vm0, %v3923_v50, %v5524_v19  ;;  %v5468_v38 = vunpack.i.l.bf16 %v7996_v59  ;;  %v2365_v59 = vld [vmem:[#allocation3 + $0x10] sm:$0xff]  ;;  %v5870_v15 = vpack.i.bf16 %v2486_v26, %v2485_v47  ;;  %v2562_v26 = vld [vmem:[#allocation3 + $0x9d] sm:$0xff] }
 0x30e   : > { %v8047_v25 = vpop.permute.xlu1 %5526  ;;  %v3995_v20 = vpack.c.bf16 %v3960_v45, %v3959_v22  ;;  %s8627_s10 = scalar_lea.vmem %s8777_s5, %s4708_s25 }
 0x30f   : > { %v8049_v8 = vpop.permute.xlu0 %5561  ;;  %v3705_v3 = vsel %vm226_vm2, %v2365_v59, %v5468_v38 }
 0x310   : > { %5821 = vrot.lane.b32.xlu1 %v5825_v36, %s6189_s27  ;;  %4669 = vmatprep.mubr.msk.bf16.mxu1 %vm4056_vm1, %v3995_v20  ;;  %v3741_v44 = vsel %vm1808_vm4, %v3705_v3, %v5478_v28  ;;  %v2558_v36 = vld [vmem:[#allocation3 + $0x7d] sm:$0xff]  ;;  %v2488_v28 = vld [vmem:[#allocation3 + $0x8b] sm:$0xff]  ;;  %v2525_v3 = vld [vmem:[#allocation3 + $0x94] sm:$0xff]  ;;  %v5564_v55 = vunpack.i.h.bf16 %v8049_v8  ;;  %v5563_v37 = vunpack.i.l.bf16 %v8049_v8 }
 0x311   : > { %5841 = vrot.lane.b32.xlu0 %v5840_v4, %s6196_s20  ;;  %v3777_v32 = vsel %vm1882_vm6, %v3741_v44, %v5493_v43  ;;  %v5855_v21 = vpack.i.bf16 %v2558_v36, %v2557_v51  ;;  %v5483_v44 = vunpack.i.l.bf16 %v7998_v7  ;;  %v8112_v51 = vpack.i.bf16 %v2526_v23, %v2525_v3  ;;  %v2598_v3 = vld [vmem:[#allocation3 + $0x9e] sm:$0xff]  ;;  %v2369_v23 = vld [vmem:[#allocation3 + $0x30] sm:$0xff] }
 0x312   : > { %v8058_v63 = vpop.permute.xlu1 %5531  ;;  %v3813_v41 = vsel %vm1956_vm8, %v3777_v32, %v5463_v39  ;;  %v2368_v32 = vld [vmem:[#allocation3 + $0x28] sm:$0xff]  ;;  %v3707_v36 = vsel %vm226_vm2, %v2367_v14, %v5473_v33 }
 0x313   : > { %v5567_v60 = vpop.permute.xlu0 %5566  ;;  %v3850_v54 = vsel %vm3847_vm13, %v3813_v41, %v5508_v1  ;;  %v3708_v7 = vsel %vm226_vm2, %v2368_v32, %v5474_v9 }
 0x314   : > { %5836 = vrot.lane.b32.xlu1 %v5840_v4, %s6195_s15  ;;  %v5569_v58 = vunpack.i.h.bf16 %v5567_v60  ;;  %v5568_v11 = vunpack.i.l.bf16 %v5567_v60  ;;  %v5875_v60 = vpack.i.bf16 %v2488_v28, %v2487_v0 }
 0x315   : > { %5851 = vrot.lane.b32.xlu0 %v5850_v42, %s6197_s21  ;;  %v2523_v42 = vld [vmem:[#allocation3 + $0x84] sm:$0xff] }
 0x316   : > { %v8069_v27 = vpop.permute.xlu1 %5541  ;;  %v3887_v62 = vsel %vm3884_vm14, %v3850_v54, %v5568_v11  ;;  %v3888_v50 = vsel %vm3884_vm14, %v3851_v18, %v5569_v58  ;;  %v5890_v59 = vpack.i.bf16 %v2524_v61, %v2523_v42  ;;  %v2596_v58 = vld [vmem:[#allocation3 + $0x8e] sm:$0xff]  ;;  %v2595_v18 = vld [vmem:[#allocation3 + $0x86] sm:$0xff] }
 0x317   : > { %v5572_v49 = vpop.permute.xlu0 %5571  ;;  %v2561_v11 = vld [vmem:[#allocation3 + $0x95] sm:$0xff]  ;;  %v5910_v48 = vpack.i.bf16 %v2596_v58, %v2595_v18  ;;  %v5544_v28 = vunpack.i.h.bf16 %v8069_v27  ;;  %v5543_v61 = vunpack.i.l.bf16 %v8069_v27 }
 0x318   : > { %5846 = vrot.lane.b32.xlu1 %v5845_v16, %s6196_s20  ;;  %v5574_v24 = vunpack.i.h.bf16 %v5572_v49  ;;  %v5573_v35 = vunpack.i.l.bf16 %v5572_v49  ;;  %v2370_v27 = vld [vmem:[#allocation3 + $0x38] sm:$0xff] }
 0x319   : > { %5861 = vrot.lane.b32.xlu0 %v5860_v34, %s6198_s28  ;;  %v2559_v34 = vld [vmem:[#allocation3 + $0x85] sm:$0xff] }
 0x31a   : > { %v8081_v40 = vpop.permute.xlu1 %5556  ;;  %v3924_v45 = vsel %vm3921_vm15, %v3887_v62, %v5573_v35  ;;  %v3925_v20 = vsel %vm3921_vm15, %v3888_v50, %v5574_v24  ;;  %v5900_v49 = vpack.i.bf16 %v2560_v52, %v2559_v34  ;;  %v3743_v24 = vsel %vm1808_vm4, %v3707_v36, %v5483_v44  ;;  %v2597_v52 = vld [vmem:[#allocation3 + $0x96] sm:$0xff] }
 0x31b   : > { %v5577_v19 = vpop.permute.xlu0 %5576  ;;  %v3744_v35 = vsel %vm1808_vm4, %v3708_v7, %v5484_v31  ;;  %v5905_v62 = vpack.i.bf16 %v2562_v26, %v2561_v11  ;;  %v5534_v50 = vunpack.i.h.bf16 %v8058_v63  ;;  %v5558_v42 = vunpack.i.l.bf16 %v8081_v40  ;;  %v2492_v26 = vld [vmem:[#allocation3 + $0xab] sm:$0xff] }
 0x31c   : > { %v5579_v57 = vunpack.i.h.bf16 %v5577_v19  ;;  %v5578_v22 = vunpack.i.l.bf16 %v5577_v19  ;;  %5856 = vrot.lane.b32.xlu1 %v5855_v21, %s6197_s21  ;;  %v3780_v46 = vsel %vm1882_vm6, %v3744_v35, %v5554_v5  ;;  %v5915_v14 = vpack.i.bf16 %v2598_v3, %v2597_v52  ;;  %v2566_v52 = vld [vmem:[#allocation3 + $0xbd] sm:$0xff]  ;;  %v2493_v3 = vld [vmem:[#allocation3 + $0xb3] sm:$0xff] }
 0x31d   : > { %5871 = vrot.lane.b32.xlu0 %v5870_v15, %s6193_s12  ;;  %v3816_v15 = vsel %vm1956_vm8, %v3780_v46, %v5564_v55 }
 0x31e   : > { %v3961_v10 = vsel %vm3958_vm0, %v3924_v45, %v5578_v22  ;;  %v3962_v4 = vsel %vm3958_vm0, %v3925_v20, %v5579_v57  ;;  %v8093_v17 = vpop.permute.xlu1 %5586  ;;  %v5533_v57 = vunpack.i.l.bf16 %v8058_v63 }
 0x31f   : > { %v5582_v38 = vpop.permute.xlu0 %5581  ;;  %v3996_v53 = vpack.c.bf16 %v3962_v4, %v3961_v10  ;;  %v5588_v7 = vunpack.i.l.bf16 %v8093_v17 }
 0x320   : > { %5866 = vrot.lane.b32.xlu1 %v5865_v29, %s6198_s28  ;;  %v5584_v2 = vunpack.i.h.bf16 %v5582_v38  ;;  %v3709_v34 = vsel %vm226_vm2, %v2369_v23, %v5533_v57  ;;  %v2494_v23 = vld [vmem:[#allocation3 + $0xbb] sm:$0xff] }
 0x321   : > { %5881 = vrot.lane.b32.xlu0 %v5845_v16, %s6195_s15  ;;  %4670 = vmatmul.mubr.msk.bf16.vlgmr.msra.gmra.mrb[0].mxu1 %vm4056_vm1, %v3996_v53  ;;  %v5553_v16 = vunpack.i.l.bf16 %v8036_v30  ;;  %v5583_v30 = vunpack.i.l.bf16 %v5582_v38  ;;  %v2490_v53 = vld [vmem:[#allocation3 + $0x9b] sm:$0xff] }
 0x322   : > { %v8098_v43 = vpop.permute.xlu1 %5606  ;;  %v3853_v45 = vsel %vm3847_vm13, %v3816_v15, %v5584_v2  ;;  %v5529_v2 = vunpack.i.h.bf16 %v8047_v25 }
 0x323   : > { %v5592_v6 = vpop.permute.xlu0 %5591  ;;  %v3779_v21 = vsel %vm1882_vm6, %v3743_v24, %v5553_v16  ;;  %v3710_v16 = vsel %vm226_vm2, %v2370_v27, %v5534_v50  ;;  %v2528_v24 = vld [vmem:[#allocation3 + $0xac] sm:$0xff] }
 0x324   : > { %5876 = vrot.lane.b32.xlu1 %v5875_v60, %s6193_s12  ;;  %v5594_v8 = vunpack.i.h.bf16 %v5592_v6  ;;  %v5593_v41 = vunpack.i.l.bf16 %v5592_v6  ;;  %v3815_v19 = vsel %vm1956_vm8, %v3779_v21, %v5563_v37  ;;  %v5559_v60 = vunpack.i.h.bf16 %v8081_v40  ;;  %v2527_v21 = vld [vmem:[#allocation3 + $0xa4] sm:$0xff] }
 0x325   : > { %5891 = vrot.lane.b32.xlu0 %v5890_v59, %s6196_s20  ;;  %v3852_v22 = vsel %vm3847_vm13, %v3815_v19, %v5583_v30  ;;  %v3745_v40 = vsel %vm1808_vm4, %v3709_v34, %v5543_v61  ;;  %v3746_v32 = vsel %vm1808_vm4, %v3710_v16, %v5544_v28  ;;  %v5528_v30 = vunpack.i.l.bf16 %v8047_v25  ;;  %v2529_v61 = vld [vmem:[#allocation3 + $0xb4] sm:$0xff] }
 0x326   : > { %v8110_v1 = vpop.permute.xlu1 %5616  ;;  %v3889_v10 = vsel %vm3884_vm14, %v3852_v22, %v5593_v41  ;;  %v3890_v4 = vsel %vm3884_vm14, %v3853_v45, %v5594_v8  ;;  %v3781_v55 = vsel %vm1882_vm6, %v3745_v40, %v5558_v42  ;;  %v3782_v37 = vsel %vm1882_vm6, %v3746_v32, %v5559_v60  ;;  %v2564_v45 = vld [vmem:[#allocation3 + $0xad] sm:$0xff]  ;;  %v2601_v34 = vld [vmem:[#allocation3 + $0xb6] sm:$0xff]  ;;  %v2602_v40 = vld [vmem:[#allocation3 + $0xbe] sm:$0xff] }
 0x327   : > { %v5597_v39 = vpop.permute.xlu0 %5596  ;;  %v3817_v41 = vsel %vm1956_vm8, %v3781_v55, %v5528_v30  ;;  %v3818_v46 = vsel %vm1956_vm8, %v3782_v37, %v5529_v2  ;;  %v5940_v19 = vpack.i.bf16 %v2528_v24, %v2527_v21  ;;  %v5970_v16 = vpack.i.bf16 %v2494_v23, %v2493_v3  ;;  %v2495_v37 = vld [vmem:[#allocation3 + $0xc3] sm:$0xff] }
 0x328   : > { %5886 = vrot.lane.b32.xlu1 %v5890_v59, %s6195_s15  ;;  %v5599_v47 = vunpack.i.h.bf16 %v5597_v39  ;;  %v5598_v54 = vunpack.i.l.bf16 %v5597_v39  ;;  %v2489_v59 = vld [vmem:[#allocation3 + $0x93] sm:$0xff]  ;;  %v3854_v25 = vsel %vm3847_vm13, %v3817_v41, %v5588_v7  ;;  %v2603_v23 = vld [vmem:[#allocation3 + $0xc6] sm:$0xff] }
 0x329   : > { %5901 = vrot.lane.b32.xlu0 %v5900_v49, %s6197_s21  ;;  %v5920_v44 = vpack.i.bf16 %v2490_v53, %v2489_v59  ;;  %v5589_v49 = vunpack.i.h.bf16 %v8093_v17  ;;  %v2491_v17 = vld [vmem:[#allocation3 + $0xa3] sm:$0xff]  ;;  %v2565_v59 = vld [vmem:[#allocation3 + $0xb5] sm:$0xff]  ;;  %v2532_v7 = vld [vmem:[#allocation3 + $0xcc] sm:$0xff] }
 0x32a   : > { %v8124_v13 = vpop.permute.xlu1 %5631  ;;  %v3926_v63 = vsel %vm3921_vm15, %v3889_v10, %v5598_v54  ;;  %v3927_v0 = vsel %vm3921_vm15, %v3890_v4, %v5599_v47  ;;  %v5925_v18 = vpack.i.bf16 %v2492_v26, %v2491_v17  ;;  %v2568_v41 = vld [vmem:[#allocation3 + $0xcd] sm:$0xff] }
 0x32b   : > { %v5602_v20 = vpop.permute.xlu0 %5601  ;;  %v3855_v47 = vsel %vm3847_vm13, %v3818_v46, %v5589_v49  ;;  %v2496_v49 = vld [vmem:[#allocation3 + $0xcb] sm:$0xff]  ;;  %v2383_v46 = vld [vmem:[#allocation3 + $0xa0] sm:$0xff] }
 0x32c   : > { %v5604_v29 = vunpack.i.h.bf16 %v5602_v20  ;;  %v5603_v38 = vunpack.i.l.bf16 %v5602_v20  ;;  %5896 = vrot.lane.b32.xlu1 %v8112_v51, %s6196_s20  ;;  %v2384_v17 = vld [vmem:[#allocation3 + $0xa8] sm:$0xff] }
 0x32d   : > { %5911 = vrot.lane.b32.xlu0 %v5910_v48, %s6198_s28 }
 0x32e   : > { %v3963_v9 = vsel %vm3958_vm0, %v3926_v63, %v5603_v38  ;;  %v3964_v33 = vsel %vm3958_vm0, %v3927_v0, %v5604_v29  ;;  %v5637_v6 = vpop.permute.xlu1 %5636  ;;  %v2563_v38 = vld [vmem:[#allocation3 + $0xa5] sm:$0xff]  ;;  %v2530_v63 = vld [vmem:[#allocation3 + $0xbc] sm:$0xff]  ;;  %v2600_v0 = vld [vmem:[#allocation3 + $0xae] sm:$0xff] }
 0x32f   : > { %v8143_v31 = vpop.permute.xlu0 %5611  ;;  %v3997_v5 = vpack.c.bf16 %v3964_v33, %v3963_v9  ;;  %v5639_v39 = vunpack.i.h.bf16 %v5637_v6  ;;  %v5638_v58 = vunpack.i.l.bf16 %v5637_v6  ;;  %v5950_v28 = vpack.i.bf16 %v2564_v45, %v2563_v38  ;;  %v2599_v9 = vld [vmem:[#allocation3 + $0xa6] sm:$0xff] }
 0x330   : > { %5906 = vrot.lane.b32.xlu1 %v5905_v62, %s6197_s21  ;;  %v5945_v42 = vpack.i.bf16 %v2530_v63, %v2529_v61  ;;  %v5960_v6 = vpack.i.bf16 %v2600_v0, %v2599_v9  ;;  %v2533_v61 = vld [vmem:[#allocation3 + $0xd4] sm:$0xff]  ;;  %v2534_v63 = vld [vmem:[#allocation3 + $0xdc] sm:$0xff] }
 0x331   : > { %5921 = vrot.lane.b32.xlu0 %v5920_v44, %s6193_s12  ;;  %4673 = vmatprep.mubr.msk.bf16.mxu1 %vm4056_vm1, %v3997_v5  ;;  %v3891_v15 = vsel %vm3884_vm14, %v3854_v25, %v5638_v58  ;;  %v3892_v48 = vsel %vm3884_vm14, %v3855_v47, %v5639_v39  ;;  %v5955_v44 = vpack.i.bf16 %v2566_v52, %v2565_v59  ;;  %v2531_v58 = vld [vmem:[#allocation3 + $0xc4] sm:$0xff]  ;;  %v2604_v9 = vld [vmem:[#allocation3 + $0xce] sm:$0xff] }
 0x332   : > { %v5642_v36 = vpop.permute.xlu1 %5641  ;;  %v5975_v39 = vpack.i.bf16 %v2496_v49, %v2495_v37  ;;  %v5995_v3 = vpack.i.bf16 %v2534_v63, %v2533_v61  ;;  %v2498_v37 = vld [vmem:[#allocation3 + $0xdb] sm:$0xff]  ;;  %v2499_v61 = vld [vmem:[#allocation3 + $0xe3] sm:$0xff]  ;;  %v2500_v63 = vld [vmem:[#allocation3 + $0xeb] sm:$0xff] }
 0x333   : > { %v8158_v11 = vpop.permute.xlu0 %5621  ;;  %v5644_v35 = vunpack.i.h.bf16 %v5642_v36  ;;  %v5643_v8 = vunpack.i.l.bf16 %v5642_v36 }
 0x334   : > { %5916 = vrot.lane.b32.xlu1 %v5915_v14, %s6198_s28  ;;  %v5965_v14 = vpack.i.bf16 %v2602_v40, %v2601_v34  ;;  %v2569_v34 = vld [vmem:[#allocation3 + $0xd5] sm:$0xff]  ;;  %v2570_v40 = vld [vmem:[#allocation3 + $0xdd] sm:$0xff] }
 0x335   : > { %5931 = vrot.lane.b32.xlu0 %v8112_v51, %s6195_s15  ;;  %v3928_v22 = vsel %vm3921_vm15, %v3891_v15, %v5643_v8  ;;  %v3929_v51 = vsel %vm3921_vm15, %v3892_v48, %v5644_v35  ;;  %v5990_v8 = vpack.i.bf16 %v2532_v7, %v2531_v58  ;;  %v2567_v15 = vld [vmem:[#allocation3 + $0xc5] sm:$0xff]  ;;  %v2381_v48 = vld [vmem:[#allocation3 + $0x90] sm:$0xff] }
 0x336   : > { %v5647_v54 = vpop.permute.xlu1 %5646  ;;  %v6000_v45 = vpack.i.bf16 %v2568_v41, %v2567_v15  ;;  %v2606_v41 = vld [vmem:[#allocation3 + $0xde] sm:$0xff] }
 0x337   : > { %v5649_v62 = vunpack.i.h.bf16 %v5647_v54  ;;  %v5648_v50 = vunpack.i.l.bf16 %v5647_v54  ;;  %v8169_v57 = vpop.permute.xlu0 %5626 }
 0x338   : > { %5926 = vrot.lane.b32.xlu1 %v5925_v18, %s6193_s12 }
 0x339   : > { %v3965_v20 = vsel %vm3958_vm0, %v3928_v22, %v5648_v50  ;;  %v3966_v10 = vsel %vm3958_vm0, %v3929_v51, %v5649_v62  ;;  %5941 = vrot.lane.b32.xlu0 %v5940_v19, %s6196_s20  ;;  %v2382_v62 = vld [vmem:[#allocation3 + $0x98] sm:$0xff] }
 0x33a   : > { %v8177_v4 = vpop.permute.xlu1 %5661  ;;  %v3998_v29 = vpack.c.bf16 %v3966_v10, %v3965_v20 }
 0x33b   : > { %v8179_v53 = vpop.permute.xlu0 %5651 }
 0x33c   : > { %5936 = vrot.lane.b32.xlu1 %v5940_v19, %s6195_s15  ;;  %4674 = vmatmul.mubr.msk.bf16.gmra.mrb[4].mxu1 %vm4056_vm1, %v3998_v29 }
 0x33d   : > { %5951 = vrot.lane.b32.xlu0 %v5950_v28, %s6197_s21 }
 0x33e   : > { %v8184_v60 = vpop.permute.xlu1 %5666 }
 0x33f   : > { %v8186_v33 = vpop.permute.xlu0 %5656 }
 0x340   : > { %5946 = vrot.lane.b32.xlu1 %v5945_v42, %s6196_s20 }
 0x341   : > { %5961 = vrot.lane.b32.xlu0 %v5960_v6, %s6198_s28 }
 0x342   : > { %v8190_v27 = vpop.permute.xlu1 %5671 }
 0x343   : > { %v8192_v5 = vpop.permute.xlu0 %5676 }
 0x344   : > { %5956 = vrot.lane.b32.xlu1 %v5955_v44, %s6197_s21 }
 0x345   : > { %5971 = vrot.lane.b32.xlu0 %v5970_v16, %s6193_s12  ;;  %v6010_v16 = vpack.i.bf16 %v2604_v9, %v2603_v23  ;;  %v2536_v9 = vld [vmem:[#allocation3 + $0xec] sm:$0xff] }
 0x346   : > { %v5682_v32 = vpop.permute.xlu1 %5681 }
 0x347   : > { %v5687_v55 = vpop.permute.xlu0 %5686  ;;  %v5684_v26 = vunpack.i.h.bf16 %v5682_v32  ;;  %v5683_v24 = vunpack.i.l.bf16 %v5682_v32 }
 0x348   : > { %5966 = vrot.lane.b32.xlu1 %v5965_v14, %s6198_s28  ;;  %v5689_v36 = vunpack.i.h.bf16 %v5687_v55  ;;  %v5688_v2 = vunpack.i.l.bf16 %v5687_v55  ;;  %v2497_v55 = vld [vmem:[#allocation3 + $0xd3] sm:$0xff] }
 0x349   : > { %5981 = vrot.lane.b32.xlu0 %v5945_v42, %s6195_s15  ;;  %v3722_v20 = vsel %vm226_vm2, %v2382_v62, %v5684_v26  ;;  %v3721_v10 = vsel %vm226_vm2, %v2381_v48, %v5683_v24 }
 0x34a   : > { %v5692_v30 = vpop.permute.xlu1 %5691  ;;  %v3724_v18 = vsel %vm226_vm2, %v2384_v17, %v5689_v36  ;;  %v3723_v19 = vsel %vm226_vm2, %v2383_v46, %v5688_v2  ;;  %v2385_v36 = vld [vmem:[#allocation3 + $0xb0] sm:$0xff] }
 0x34b   : > { %v5697_v35 = vpop.permute.xlu0 %5696  ;;  %v5694_v21 = vunpack.i.h.bf16 %v5692_v30  ;;  %v5693_v25 = vunpack.i.l.bf16 %v5692_v30  ;;  %v6005_v30 = vpack.i.bf16 %v2570_v40, %v2569_v34  ;;  %v6025_v40 = vpack.i.bf16 %v2500_v63, %v2499_v61 }
 0x34c   : > { %v5699_v47 = vunpack.i.h.bf16 %v5697_v35  ;;  %v5698_v54 = vunpack.i.l.bf16 %v5697_v35  ;;  %5976 = vrot.lane.b32.xlu1 %v5975_v39, %s6193_s12  ;;  %v2386_v39 = vld [vmem:[#allocation3 + $0xb8] sm:$0xff]  ;;  %v6020_v35 = vpack.i.bf16 %v2498_v37, %v2497_v55 }
 0x34d   : > { %5991 = vrot.lane.b32.xlu0 %v5990_v8, %s6196_s20  ;;  %v3757_v0 = vsel %vm1808_vm4, %v3721_v10, %v5693_v25  ;;  %v3758_v42 = vsel %vm1808_vm4, %v3722_v20, %v5694_v21  ;;  %v2387_v21 = vld [vmem:[#allocation3 + $0xc0] sm:$0xff]  ;;  %v2388_v25 = vld [vmem:[#allocation3 + $0xc8] sm:$0xff] }
 0x34e   : > { %v8203_v50 = vsel %vm1808_vm4, %v3723_v19, %v5698_v54  ;;  %v8206_v22 = vsel %vm1808_vm4, %v3724_v18, %v5699_v47  ;;  %v5707_v51 = vpop.permute.xlu1 %5706 }
 0x34f   : > { %v5709_v29 = vunpack.i.h.bf16 %v5707_v51  ;;  %v5708_v38 = vunpack.i.l.bf16 %v5707_v51  ;;  %v8210_v28 = vpop.permute.xlu0 %5701 }
 0x350   : > { %5986 = vrot.lane.b32.xlu1 %v5990_v8, %s6195_s15  ;;  %v2605_v8 = vld [vmem:[#allocation3 + $0xd6] sm:$0xff] }
 0x351   : > { %v8216_v6 = vsel %vm1882_vm6, %v3757_v0, %v5708_v38  ;;  %v8219_v59 = vsel %vm1882_vm6, %v3758_v42, %v5709_v29  ;;  %6001 = vrot.lane.b32.xlu0 %v6000_v45, %s6197_s21  ;;  %v6015_v20 = vpack.i.bf16 %v2606_v41, %v2605_v8  ;;  %v2538_v8 = vld [vmem:[#allocation3 + $0xfc] sm:$0xff] }
 0x352   : > { %v5712_v52 = vpop.permute.xlu1 %5711 }
 0x353   : > { %v5717_v44 = vpop.permute.xlu0 %5716  ;;  %v5714_v32 = vunpack.i.h.bf16 %v5712_v52  ;;  %v5713_v14 = vunpack.i.l.bf16 %v5712_v52 }
 0x354   : > { %5996 = vrot.lane.b32.xlu1 %v5995_v3, %s6196_s20  ;;  %v5719_v49 = vunpack.i.h.bf16 %v5717_v44  ;;  %v5718_v7 = vunpack.i.l.bf16 %v5717_v44 }
 0x355   : > { %6011 = vrot.lane.b32.xlu0 %v6010_v16, %s6198_s28  ;;  %v3726_v46 = vsel %vm226_vm2, %v2386_v39, %v5714_v32  ;;  %v3725_v17 = vsel %vm226_vm2, %v2385_v36, %v5713_v14  ;;  %v2535_v32 = vld [vmem:[#allocation3 + $0xe4] sm:$0xff]  ;;  %v2390_v39 = vld [vmem:[#allocation3 + $0xd8] sm:$0xff] }
 0x356   : > { %v5722_v2 = vpop.permute.xlu1 %5721  ;;  %v3728_v18 = vsel %vm226_vm2, %v2388_v25, %v5719_v49  ;;  %v3727_v19 = vsel %vm226_vm2, %v2387_v21, %v5718_v7  ;;  %v6040_v55 = vpack.i.bf16 %v2536_v9, %v2535_v32  ;;  %v2572_v7 = vld [vmem:[#allocation3 + $0xed] sm:$0xff]  ;;  %v2573_v9 = vld [vmem:[#allocation3 + $0xf5] sm:$0xff] }
 0x357   : > { %v5724_v58 = vunpack.i.h.bf16 %v5722_v2  ;;  %v5723_v26 = vunpack.i.l.bf16 %v5722_v2  ;;  %v5727_v24 = vpop.permute.xlu0 %5726  ;;  %v2392_v21 = vld [vmem:[#allocation3 + $0xe8] sm:$0xff] }
 0x358   : > { %v5729_v47 = vunpack.i.h.bf16 %v5727_v24  ;;  %v5728_v54 = vunpack.i.l.bf16 %v5727_v24  ;;  %6006 = vrot.lane.b32.xlu1 %v6005_v30, %s6197_s21  ;;  %v2571_v30 = vld [vmem:[#allocation3 + $0xe5] sm:$0xff] }
 0x359   : > { %v3761_v15 = vsel %vm1808_vm4, %v3725_v17, %v5723_v26  ;;  %v3762_v48 = vsel %vm1808_vm4, %v3726_v46, %v5724_v58  ;;  %6021 = vrot.lane.b32.xlu0 %v6020_v35, %s6193_s12  ;;  %v6050_v24 = vpack.i.bf16 %v2572_v7, %v2571_v30  ;;  %v2537_v35 = vld [vmem:[#allocation3 + $0xf4] sm:$0xff]  ;;  %v2391_v17 = vld [vmem:[#allocation3 + $0xe0] sm:$0xff] }
 0x35a   : > { %v8233_v62 = vsel %vm1808_vm4, %v3727_v19, %v5728_v54  ;;  %v8236_v51 = vsel %vm1808_vm4, %v3728_v18, %v5729_v47  ;;  %v5737_v45 = vpop.permute.xlu1 %5736  ;;  %v2608_v54 = vld [vmem:[#allocation3 + $0xee] sm:$0xff] }
 0x35b   : > { %v5739_v10 = vunpack.i.h.bf16 %v5737_v45  ;;  %v5738_v29 = vunpack.i.l.bf16 %v5737_v45  ;;  %v5732_v38 = vpop.permute.xlu0 %5731 }
 0x35c   : > { %v5734_v0 = vunpack.i.h.bf16 %v5732_v38  ;;  %v5733_v42 = vunpack.i.l.bf16 %v5732_v38  ;;  %6016 = vrot.lane.b32.xlu1 %v6015_v20, %s6198_s28  ;;  %v2607_v38 = vld [vmem:[#allocation3 + $0xe6] sm:$0xff] }
 0x35d   : > { %v8240_v52 = vsel %vm1882_vm6, %v3761_v15, %v5738_v29  ;;  %v8243_v23 = vsel %vm1882_vm6, %v3762_v48, %v5739_v10  ;;  %6031 = vrot.lane.b32.xlu0 %v5995_v3, %s6195_s15  ;;  %v6045_v29 = vpack.i.bf16 %v2538_v8, %v2537_v35  ;;  %v2504_v8 = vld [vmem:[#allocation3 + $0x10b] sm:$0xff] }
 0x35e   : > { %v8248_v44 = vsel %vm1882_vm6, %v8203_v50, %v5733_v42  ;;  %v8252_v16 = vsel %vm1882_vm6, %v8206_v22, %v5734_v0  ;;  %v5742_v34 = vpop.permute.xlu1 %5741  ;;  %v2389_v50 = vld [vmem:[#allocation3 + $0xd0] sm:$0xff]  ;;  %v6060_v42 = vpack.i.bf16 %v2608_v54, %v2607_v38 }
 0x35f   : > { %v5747_v14 = vpop.permute.xlu0 %5746  ;;  %v5744_v37 = vunpack.i.h.bf16 %v5742_v34  ;;  %v5743_v49 = vunpack.i.l.bf16 %v5742_v34  ;;  %v2574_v34 = vld [vmem:[#allocation3 + $0xfd] sm:$0xff] }
 0x360   : > { %6026 = vrot.lane.b32.xlu1 %v6025_v40, %s6193_s12  ;;  %v5749_v36 = vunpack.i.h.bf16 %v5747_v14  ;;  %v5748_v3 = vunpack.i.l.bf16 %v5747_v14  ;;  %v2502_v14 = vld [vmem:[#allocation3 + $0xfb] sm:$0xff] }
 0x361   : > { %6041 = vrot.lane.b32.xlu0 %v6040_v55, %s6196_s20  ;;  %v3730_v41 = vsel %vm226_vm2, %v2390_v39, %v5744_v37  ;;  %v3729_v46 = vsel %vm226_vm2, %v2389_v50, %v5743_v49  ;;  %v2501_v50 = vld [vmem:[#allocation3 + $0xf3] sm:$0xff] }
 0x362   : > { %v5752_v2 = vpop.permute.xlu1 %5751  ;;  %v3732_v18 = vsel %vm226_vm2, %v2392_v21, %v5749_v36  ;;  %v3731_v19 = vsel %vm226_vm2, %v2391_v17, %v5748_v3  ;;  %v6055_v3 = vpack.i.bf16 %v2574_v34, %v2573_v9  ;;  %v6070_v30 = vpack.i.bf16 %v2502_v14, %v2501_v50  ;;  %v2609_v39 = vld [vmem:[#allocation3 + $0xf6] sm:$0xff] }
 0x363   : > { %v5754_v22 = vunpack.i.h.bf16 %v5752_v2  ;;  %v5753_v58 = vunpack.i.l.bf16 %v5752_v2  ;;  %v5757_v26 = vpop.permute.xlu0 %5756  ;;  %v2393_v9 = vld [vmem:[#allocation3 + $0xf0] sm:$0xff]  ;;  %v2394_v34 = vld [vmem:[#allocation3 + $0xf8] sm:$0xff] }
 0x364   : > { %v5759_v25 = vunpack.i.h.bf16 %v5757_v26  ;;  %v5758_v47 = vunpack.i.l.bf16 %v5757_v26  ;;  %6036 = vrot.lane.b32.xlu1 %v6040_v55, %s6195_s15 }
 0x365   : > { %v3765_v15 = vsel %vm1808_vm4, %v3729_v46, %v5753_v58  ;;  %v3766_v48 = vsel %vm1808_vm4, %v3730_v41, %v5754_v22  ;;  %6051 = vrot.lane.b32.xlu0 %v6050_v24, %s6197_s21  ;;  %v2610_v22 = vld [vmem:[#allocation3 + $0xfe] sm:$0xff]  ;;  %v2540_v41 = vld [vmem:[#allocation3 + $0x10c] sm:$0xff] }
 0x366   : > { %v8265_v45 = vsel %vm1808_vm4, %v3731_v19, %v5758_v47  ;;  %v8268_v20 = vsel %vm1808_vm4, %v3732_v18, %v5759_v25  ;;  %v5767_v10 = vpop.permute.xlu1 %5766  ;;  %v2396_v46 = vld [vmem:[#allocation3 + $0x108] sm:$0xff] }
 0x367   : > { %v5769_v61 = vunpack.i.h.bf16 %v5767_v10  ;;  %v5768_v63 = vunpack.i.l.bf16 %v5767_v10  ;;  %v5762_v0 = vpop.permute.xlu0 %5761  ;;  %v2503_v19 = vld [vmem:[#allocation3 + $0x103] sm:$0xff] }
 0x368   : > { %v5764_v40 = vunpack.i.h.bf16 %v5762_v0  ;;  %v5763_v32 = vunpack.i.l.bf16 %v5762_v0  ;;  %6046 = vrot.lane.b32.xlu1 %v6045_v29, %s6196_s20 }
 0x369   : > { %v8272_v55 = vsel %vm1882_vm6, %v3765_v15, %v5768_v63  ;;  %v8275_v37 = vsel %vm1882_vm6, %v3766_v48, %v5769_v61  ;;  %6061 = vrot.lane.b32.xlu0 %v6060_v42, %s6198_s28  ;;  %v2539_v15 = vld [vmem:[#allocation3 + $0x104] sm:$0xff]  ;;  %v6075_v61 = vpack.i.bf16 %v2504_v8, %v2503_v19 }
 0x36a   : > { %v8280_v49 = vsel %vm1882_vm6, %v8233_v62, %v5763_v32  ;;  %v8284_v7 = vsel %vm1882_vm6, %v8236_v51, %v5764_v40  ;;  %v5782_v36 = vpop.permute.xlu1 %5781  ;;  %v6065_v62 = vpack.i.bf16 %v2610_v22, %v2609_v39  ;;  %v2395_v51 = vld [vmem:[#allocation3 + $0x100] sm:$0xff]  ;;  %v6090_v63 = vpack.i.bf16 %v2540_v41, %v2539_v15 }
 0x36b   : > { %v5772_v2 = vpop.permute.xlu0 %5771  ;;  %v5784_v0 = vunpack.i.h.bf16 %v5782_v36  ;;  %v5783_v42 = vunpack.i.l.bf16 %v5782_v36 }
 0x36c   : > { %6056 = vrot.lane.b32.xlu1 %v6055_v3, %s6197_s21  ;;  %v5774_v58 = vunpack.i.h.bf16 %v5772_v2  ;;  %v5773_v26 = vunpack.i.l.bf16 %v5772_v2 }
 0x36d   : > { %6071 = vrot.lane.b32.xlu0 %v6070_v30, %s6193_s12  ;;  %v2576_v30 = vld [vmem:[#allocation3 + $0x10d] sm:$0xff] }
 0x36e   : > { %v5787_v24 = vpop.permute.xlu1 %5786  ;;  %v3736_v54 = vsel %vm226_vm2, %v2396_v46, %v5774_v58  ;;  %v3735_v18 = vsel %vm226_vm2, %v2395_v51, %v5773_v26  ;;  %v2541_v51 = vld [vmem:[#allocation3 + $0x114] sm:$0xff]  ;;  %v2542_v46 = vld [vmem:[#allocation3 + $0x11c] sm:$0xff] }
 0x36f   : > { %v5777_v35 = vpop.permute.xlu0 %5776  ;;  %v5789_v17 = vunpack.i.h.bf16 %v5787_v24  ;;  %v5788_v21 = vunpack.i.l.bf16 %v5787_v24  ;;  %v2575_v24 = vld [vmem:[#allocation3 + $0x105] sm:$0xff] }
 0x370   : > { %v5779_v25 = vunpack.i.h.bf16 %v5777_v35  ;;  %v5778_v47 = vunpack.i.l.bf16 %v5777_v35  ;;  %6066 = vrot.lane.b32.xlu1 %v6065_v62, %s6198_s28  ;;  %v6100_v41 = vpack.i.bf16 %v2576_v30, %v2575_v24  ;;  %v2505_v30 = vld [vmem:[#allocation3 + $0x113] sm:$0xff] }
 0x371   : > { %6081 = vrot.lane.b32.xlu0 %v6045_v29, %s6195_s15  ;;  %v3734_v3 = vsel %vm226_vm2, %v2394_v34, %v5789_v17  ;;  %v3733_v29 = vsel %vm226_vm2, %v2393_v9, %v5788_v21  ;;  %v8322_v17 = vpack.i.bf16 %v2542_v46, %v2541_v51  ;;  %v2611_v21 = vld [vmem:[#allocation3 + $0x106] sm:$0xff] }
 0x372   : > { %v3771_v48 = vsel %vm1808_vm4, %v3735_v18, %v5778_v47  ;;  %v3772_v10 = vsel %vm1808_vm4, %v3736_v54, %v5779_v25  ;;  %v5792_v38 = vpop.permute.xlu1 %5791  ;;  %v2577_v25 = vld [vmem:[#allocation3 + $0x115] sm:$0xff]  ;;  %v2578_v47 = vld [vmem:[#allocation3 + $0x11d] sm:$0xff]  ;;  %v8329_v34 = vld [vmem:[#allocation3 + $0x12b] sm:$0xff] }
 0x373   : > { %v5794_v40 = vunpack.i.h.bf16 %v5792_v38  ;;  %v5793_v32 = vunpack.i.l.bf16 %v5792_v38  ;;  %v5797_v14 = vpop.permute.xlu0 %5796  ;;  %v2506_v38 = vld [vmem:[#allocation3 + $0x11b] sm:$0xff]  ;;  %v6105_v9 = vpack.i.bf16 %v2578_v47, %v2577_v25  ;;  %v2507_v51 = vld [vmem:[#allocation3 + $0x123] sm:$0xff] }
 0x374   : > { %v5799_v50 = vunpack.i.h.bf16 %v5797_v14  ;;  %v5798_v2 = vunpack.i.l.bf16 %v5797_v14  ;;  %6076 = vrot.lane.b32.xlu1 %v6075_v61, %s6193_s12  ;;  %v2613_v61 = vld [vmem:[#allocation3 + $0x116] sm:$0xff]  ;;  %v5549_v14 = vunpack.i.h.bf16 %v8026_v12  ;;  %v6120_v24 = vpack.i.bf16 %v2506_v38, %v2505_v30  ;;  %v8345_v46 = vld [vmem:[#allocation3 + $0x126] sm:$0xff] }
 0x375   : > { %v3769_v39 = vsel %vm1808_vm4, %v3733_v29, %v5793_v32  ;;  %v3770_v22 = vsel %vm1808_vm4, %v3734_v3, %v5794_v40  ;;  %6091 = vrot.lane.b32.xlu0 %v6090_v63, %s6196_s20  ;;  %v2543_v40 = vld [vmem:[#allocation3 + $0x124] sm:$0xff]  ;;  %v2544_v32 = vld [vmem:[#allocation3 + $0x12c] sm:$0xff]  ;;  %v5548_v3 = vunpack.i.l.bf16 %v8026_v12  ;;  %v6125_v25 = vpack.i.bf16 %v8329_v34, %v2507_v51 }
 0x376   : > { %v8302_v36 = vsel %vm1882_vm6, %v8265_v45, %v5798_v2  ;;  %v8306_v58 = vsel %vm1882_vm6, %v8268_v20, %v5799_v50  ;;  %v8308_v26 = vpop.permute.xlu1 %5806  ;;  %v8311_v62 = vsel %vm1882_vm6, %v3769_v39, %v5783_v42  ;;  %v8314_v35 = vsel %vm1882_vm6, %v3770_v22, %v5784_v0  ;;  %v2612_v45 = vld [vmem:[#allocation3 + $0x10e] sm:$0xff] }
 0x377   : > { %v8316_v8 = vpop.permute.xlu0 %5801  ;;  %v6110_v18 = vpack.i.bf16 %v2612_v45, %v2611_v21  ;;  %v5539_v0 = vunpack.i.h.bf16 %v8020_v56  ;;  %v5538_v42 = vunpack.i.l.bf16 %v8020_v56  ;;  %v8339_v56 = vld [vmem:[#allocation3 + $0x125] sm:$0xff]  ;;  %v8341_v39 = vld [vmem:[#allocation3 + $0x12d] sm:$0xff]  ;;  %v8351_v47 = vpack.i.bf16 %v2544_v32, %v2543_v40  ;;  %v2398_v40 = vld [vmem:[#allocation3 + $0x118] sm:$0xff] }
 0x378   : > { %6086 = vrot.lane.b32.xlu1 %v6090_v63, %s6195_s15  ;;  %v2614_v63 = vld [vmem:[#allocation3 + $0x11e] sm:$0xff]  ;;  %v8347_v12 = vld [vmem:[#allocation3 + $0x12e] sm:$0xff]  ;;  %v5608_v34 = vunpack.i.l.bf16 %v8098_v43 }
 0x379   : > { %6101 = vrot.lane.b32.xlu0 %v6100_v41, %s6197_s21  ;;  %v6115_v41 = vpack.i.bf16 %v2614_v63, %v2613_v61  ;;  %v2372_v45 = vld [vmem:[#allocation3 + $0x48] sm:$0xff]  ;;  %v5609_v61 = vunpack.i.h.bf16 %v8098_v43  ;;  %v8372_v43 = vld [vmem:[#allocation3 + $0x13c] sm:$0xff] }
 0x37a   : > { %v8320_v20 = vpop.permute.xlu1 %5811 }
 0x37b   : > { %v5827_v54 = vpop.permute.xlu0 %5826 }
 0x37c   : > { %v5829_v19 = vunpack.i.h.bf16 %v5827_v54  ;;  %v5828_v15 = vunpack.i.l.bf16 %v5827_v54  ;;  %6096 = vrot.lane.b32.xlu1 %v8322_v17, %s6196_s20  ;;  %v3712_v54 = vsel %vm226_vm2, %v2372_v45, %v5539_v0  ;;  %v5618_v0 = vunpack.i.l.bf16 %v8110_v1  ;;  %v8374_v45 = vld [vmem:[#allocation3 + $0x135] sm:$0xff] }
 0x37d   : > { %6111 = vrot.lane.b32.xlu0 %v6110_v18, %s6198_s28  ;;  %v3748_v38 = vsel %vm1808_vm4, %v3712_v54, %v5549_v14  ;;  %v5813_v14 = vunpack.i.l.bf16 %v8320_v20  ;;  %v8376_v54 = vld [vmem:[#allocation3 + $0x13d] sm:$0xff] }
 0x37e   : > { %v8334_v29 = vsel %vm1882_vm6, %v3771_v48, %v5828_v15  ;;  %v8337_v50 = vsel %vm1882_vm6, %v3772_v10, %v5829_v19  ;;  %v5817_v2 = vpop.permute.xlu1 %5816  ;;  %v2371_v48 = vld [vmem:[#allocation3 + $0x40] sm:$0xff]  ;;  %v2374_v19 = vld [vmem:[#allocation3 + $0x58] sm:$0xff] }
 0x37f   : > { %v8343_v22 = vpop.permute.xlu0 %5831  ;;  %v5819_v21 = vunpack.i.h.bf16 %v5817_v2  ;;  %v5818_v10 = vunpack.i.l.bf16 %v5817_v2  ;;  %v3711_v18 = vsel %vm226_vm2, %v2371_v48, %v5538_v42  ;;  %v2397_v42 = vld [vmem:[#allocation3 + $0x110] sm:$0xff] }
 0x380   : > { %6106 = vrot.lane.b32.xlu1 %v6105_v9, %s6197_s21  ;;  %v3747_v15 = vsel %vm1808_vm4, %v3711_v18, %v5548_v3  ;;  %v5814_v3 = vunpack.i.h.bf16 %v8320_v20  ;;  %v5629_v18 = vunpack.i.h.bf16 %v8169_v57 }
 0x381   : > { %6121 = vrot.lane.b32.xlu0 %v6120_v24, %s6193_s12  ;;  %v8365_v24 = vld [vmem:[#allocation3 + $0x134] sm:$0xff]  ;;  %v3738_v51 = vsel %vm226_vm2, %v2398_v40, %v5819_v21  ;;  %v3737_v48 = vsel %vm226_vm2, %v2397_v42, %v5818_v10  ;;  %v5804_v21 = vunpack.i.h.bf16 %v8316_v8 }
 0x382   : > { %v5822_v63 = vpop.permute.xlu1 %5821 }
 0x383   : > { %v5824_v32 = vunpack.i.h.bf16 %v5822_v63  ;;  %v5823_v2 = vunpack.i.l.bf16 %v5822_v63  ;;  %v5842_v30 = vpop.permute.xlu0 %5841  ;;  %v5628_v63 = vunpack.i.l.bf16 %v8169_v57  ;;  %v2373_v57 = vld [vmem:[#allocation3 + $0x50] sm:$0xff] }
 0x384   : > { %6116 = vrot.lane.b32.xlu1 %v6115_v41, %s6198_s28  ;;  %v5803_v41 = vunpack.i.l.bf16 %v8316_v8  ;;  %v6155_v8 = vpack.i.bf16 %v8376_v54, %v8374_v45  ;;  %v5679_v54 = vunpack.i.h.bf16 %v8192_v5 }
 0x385   : > { %v3773_v9 = vsel %vm1808_vm4, %v3737_v48, %v5823_v2  ;;  %v3774_v20 = vsel %vm1808_vm4, %v3738_v51, %v5824_v32  ;;  %6131 = vrot.lane.b32.xlu0 %v8322_v17, %s6195_s15  ;;  %v5834_v2 = vunpack.i.h.bf16 %v8343_v22  ;;  %v5833_v32 = vunpack.i.l.bf16 %v8343_v22 }
 0x386   : > { %v8386_v10 = vpop.permute.xlu1 %5836  ;;  %v8389_v42 = vsel %vm1882_vm6, %v3773_v9, %v5813_v14  ;;  %v8392_v40 = vsel %vm1882_vm6, %v3774_v20, %v5814_v3  ;;  %v6145_v17 = vpack.i.bf16 %v8372_v43, %v8365_v24  ;;  %v3714_v48 = vsel %vm226_vm2, %v2374_v19, %v5609_v61 }
 0x387   : > { %9030 = vst [vmem:[#allocation24_spill] sm:$0xff] %v8389_v42  ;;  %9031 = vst [vmem:[#allocation25_spill] sm:$0xff] %v8392_v40  ;;  %v5852_v51 = vpop.permute.xlu0 %5851  ;;  %v3713_v9 = vsel %vm226_vm2, %v2373_v57, %v5608_v34  ;;  %v5844_v14 = vunpack.i.h.bf16 %v5842_v30  ;;  %v5843_v3 = vunpack.i.l.bf16 %v5842_v30  ;;  %v3783_v20 = vsel %vm1882_vm6, %v3747_v15, %v5628_v63 }
 0x388   : > { %6126 = vrot.lane.b32.xlu1 %v6125_v25, %s6193_s12  ;;  %v3784_v40 = vsel %vm1882_vm6, %v3748_v38, %v5629_v18  ;;  %v5854_v22 = vunpack.i.h.bf16 %v5852_v51  ;;  %v5853_v42 = vunpack.i.l.bf16 %v5852_v51  ;;  %v5619_v24 = vunpack.i.h.bf16 %v8110_v1 }
 0x389   : > { %6141 = vrot.lane.b32.xlu0 %v8351_v47, %s6196_s20  ;;  %v3749_v43 = vsel %vm1808_vm4, %v3713_v9, %v5618_v0  ;;  %v3819_v19 = vsel %vm1956_vm8, %v3783_v20, %v5803_v41  ;;  %v3820_v61 = vsel %vm1956_vm8, %v3784_v40, %v5804_v21  ;;  %v5634_v25 = vunpack.i.h.bf16 %v8124_v13 }
 0x38a   : > { %v5847_v34 = vpop.permute.xlu1 %5846  ;;  %v5633_v15 = vunpack.i.l.bf16 %v8124_v13  ;;  %v3856_v38 = vsel %vm3847_vm13, %v3819_v19, %v5833_v32  ;;  %v3857_v30 = vsel %vm3847_vm13, %v3820_v61, %v5834_v2  ;;  %v5809_v21 = vunpack.i.h.bf16 %v8308_v26  ;;  %v2617_v19 = vld [vmem:[#allocation3 + $0x136] sm:$0xff]  ;;  %v2618_v61 = vld [vmem:[#allocation3 + $0x13e] sm:$0xff] }
 0x38b   : > { %v5862_v18 = vpop.permute.xlu0 %5861  ;;  %v3893_v63 = vsel %vm3884_vm14, %v3856_v38, %v5843_v3  ;;  %v3894_v1 = vsel %vm3884_vm14, %v3857_v30, %v5844_v14  ;;  %v5808_v41 = vunpack.i.l.bf16 %v8308_v26  ;;  %v9032_v2 = vpack.i.bf16 %v8341_v39, %v8339_v56 }
 0x38c   : > { %v5864_v57 = vunpack.i.h.bf16 %v5862_v18  ;;  %v5863_v0 = vunpack.i.l.bf16 %v5862_v18  ;;  %6136 = vrot.lane.b32.xlu1 %v8351_v47, %s6195_s15  ;;  %v3930_v13 = vsel %vm3921_vm15, %v3893_v63, %v5853_v42  ;;  %v3931_v40 = vsel %vm3921_vm15, %v3894_v1, %v5854_v22 }
 0x38d   : > { %6151 = vrot.lane.b32.xlu0 %v9032_v2, %s6197_s21  ;;  %v5839_v32 = vunpack.i.h.bf16 %v8386_v10  ;;  %v5838_v51 = vunpack.i.l.bf16 %v8386_v10  ;;  %v3750_v26 = vsel %vm1808_vm4, %v3714_v48, %v5619_v24  ;;  %v5849_v3 = vunpack.i.h.bf16 %v5847_v34 }
 0x38e   : > { %v3967_v9 = vsel %vm3958_vm0, %v3930_v13, %v5863_v0  ;;  %v3968_v47 = vsel %vm3958_vm0, %v3931_v40, %v5864_v57  ;;  %v5857_v14 = vpop.permute.xlu1 %5856  ;;  %v5848_v42 = vunpack.i.l.bf16 %v5847_v34  ;;  %v3785_v56 = vsel %vm1882_vm6, %v3749_v43, %v5633_v15 }
 0x38f   : > { %v3999_v20 = vpack.c.bf16 %v3968_v47, %v3967_v9  ;;  %v8432_v22 = vpop.permute.xlu0 %5871  ;;  %v3786_v39 = vsel %vm1882_vm6, %v3750_v26, %v5634_v25  ;;  %v5859_v38 = vunpack.i.h.bf16 %v5857_v14  ;;  %v5858_v10 = vunpack.i.l.bf16 %v5857_v14  ;;  %v2376_v9 = vld [vmem:[#allocation3 + $0x68] sm:$0xff] }
 0x390   : > { %6146 = vrot.lane.b32.xlu1 %v6145_v17, %s6196_s20  ;;  %v3821_v30 = vsel %vm1956_vm8, %v3785_v56, %v5808_v41  ;;  %v3822_v18 = vsel %vm1956_vm8, %v3786_v39, %v5809_v21  ;;  %v9033_v48 = vpack.i.bf16 %v8347_v12, %v8345_v46  ;;  %v6165_v25 = vpack.i.bf16 %v2618_v61, %v2617_v19 }
 0x391   : > { %4677 = vmatprep.mubr.msk.bf16.mxu1 %vm4056_vm1, %v3999_v20  ;;  %v3858_v24 = vsel %vm3847_vm13, %v3821_v30, %v5838_v51  ;;  %v3859_v43 = vsel %vm3847_vm13, %v3822_v18, %v5839_v32  ;;  %v5614_v0 = vunpack.i.h.bf16 %v8143_v31  ;;  %v5613_v46 = vunpack.i.l.bf16 %v8143_v31  ;;  %v2375_v31 = vld [vmem:[#allocation3 + $0x60] sm:$0xff] }
 0x392   : > { %6161 = vrot.lane.b32.xlu0 %v9033_v48, %s6198_s28  ;;  %v5867_v34 = vpop.permute.xlu1 %5866  ;;  %v3895_v15 = vsel %vm3884_vm14, %v3858_v24, %v5848_v42  ;;  %v3896_v17 = vsel %vm3884_vm14, %v3859_v43, %v5849_v3  ;;  %v5624_v41 = vunpack.i.h.bf16 %v8158_v11  ;;  %v5623_v13 = vunpack.i.l.bf16 %v8158_v11  ;;  %v2377_v43 = vld [vmem:[#allocation3 + $0x70] sm:$0xff] }
 0x393   : > { %v5869_v63 = vunpack.i.h.bf16 %v5867_v34  ;;  %v5868_v1 = vunpack.i.l.bf16 %v5867_v34  ;;  %v5882_v57 = vpop.permute.xlu0 %5881  ;;  %v3932_v12 = vsel %vm3921_vm15, %v3895_v15, %v5858_v10  ;;  %v3933_v21 = vsel %vm3921_vm15, %v3896_v17, %v5859_v38 }
 0x394   : > { %6156 = vrot.lane.b32.xlu1 %v6155_v8, %s6197_s21  ;;  %v3716_v14 = vsel %vm226_vm2, %v2376_v9, %v5614_v0  ;;  %v3715_v26 = vsel %vm226_vm2, %v2375_v31, %v5613_v46  ;;  %v5678_v8 = vunpack.i.l.bf16 %v8192_v5  ;;  %v5669_v3 = vunpack.i.h.bf16 %v8184_v60 }
 0x395   : > { %v3969_v40 = vsel %vm3958_vm0, %v3932_v12, %v5868_v1  ;;  %v3970_v2 = vsel %vm3958_vm0, %v3933_v21, %v5869_v63  ;;  %v3751_v11 = vsel %vm1808_vm4, %v3715_v26, %v5623_v13  ;;  %v3752_v45 = vsel %vm1808_vm4, %v3716_v14, %v5624_v41 }
 0x396   : > { %v4000_v32 = vpack.c.bf16 %v3970_v2, %v3969_v40  ;;  %v8460_v51 = vpop.permute.xlu1 %5876  ;;  %v5668_v42 = vunpack.i.l.bf16 %v8184_v60  ;;  %v5874_v20 = vunpack.i.h.bf16 %v8432_v22  ;;  %v5873_v19 = vunpack.i.l.bf16 %v8432_v22  ;;  %v2378_v60 = vld [vmem:[#allocation3 + $0x78] sm:$0xff] }
 0x397   : > { %v5892_v47 = vpop.permute.xlu0 %5891  ;;  %v5674_v56 = vunpack.i.h.bf16 %v8190_v27  ;;  %v5673_v39 = vunpack.i.l.bf16 %v8190_v27  ;;  %v5884_v38 = vunpack.i.h.bf16 %v5882_v57  ;;  %v5883_v10 = vunpack.i.l.bf16 %v5882_v57 }
 0x398   : > { %6166 = vrot.lane.b32.xlu1 %v6165_v25, %s6198_s28  ;;  %4678 = vmatmul.mubr.msk.bf16.gmra.mrb[8].mxu1 %vm4056_vm1, %v4000_v32  ;;  %v5664_v18 = vunpack.i.h.bf16 %v8177_v4  ;;  %v5663_v5 = vunpack.i.l.bf16 %v8177_v4  ;;  %v5894_v48 = vunpack.i.h.bf16 %v5892_v47  ;;  %v5893_v24 = vunpack.i.l.bf16 %v5892_v47 }
 0x399   : > { %v3787_v34 = vsel %vm1882_vm6, %v3751_v11, %v5678_v8  ;;  %v3788_v22 = vsel %vm1882_vm6, %v3752_v45, %v5679_v54  ;;  %v3718_v17 = vsel %vm226_vm2, %v2378_v60, %v5669_v3  ;;  %v3717_v27 = vsel %vm226_vm2, %v2377_v43, %v5668_v42 }
 0x39a   : > { %v5887_v61 = vpop.permute.xlu1 %5886  ;;  %v3823_v63 = vsel %vm1956_vm8, %v3787_v34, %v5873_v19  ;;  %v3824_v1 = vsel %vm1956_vm8, %v3788_v22, %v5874_v20  ;;  %v3753_v4 = vsel %vm1808_vm4, %v3717_v27, %v5673_v39  ;;  %v3754_v0 = vsel %vm1808_vm4, %v3718_v17, %v5674_v56 }
 0x39b   : > { %v5902_v30 = vpop.permute.xlu0 %5901  ;;  %v3860_v46 = vsel %vm3847_vm13, %v3823_v63, %v5883_v10  ;;  %v3861_v12 = vsel %vm3847_vm13, %v3824_v1, %v5884_v38  ;;  %v5879_v32 = vunpack.i.h.bf16 %v8460_v51  ;;  %v5878_v31 = vunpack.i.l.bf16 %v8460_v51 }
 0x39c   : > { %v5904_v25 = vunpack.i.h.bf16 %v5902_v30  ;;  %v5903_v15 = vunpack.i.l.bf16 %v5902_v30  ;;  %v3897_v41 = vsel %vm3884_vm14, %v3860_v46, %v5893_v24  ;;  %v3898_v13 = vsel %vm3884_vm14, %v3861_v12, %v5894_v48 }
 0x39d   : > { %v5889_v14 = vunpack.i.h.bf16 %v5887_v61  ;;  %v5888_v26 = vunpack.i.l.bf16 %v5887_v61  ;;  %v3789_v19 = vsel %vm1882_vm6, %v3753_v4, %v5663_v5  ;;  %v3790_v56 = vsel %vm1882_vm6, %v3754_v0, %v5664_v18 }
 0x39e   : > { %v5897_v57 = vpop.permute.xlu1 %5896  ;;  %v3934_v9 = vsel %vm3921_vm15, %v3897_v41, %v5903_v15  ;;  %v3935_v47 = vsel %vm3921_vm15, %v3898_v13, %v5904_v25  ;;  %v3825_v38 = vsel %vm1956_vm8, %v3789_v19, %v5878_v31  ;;  %v3826_v10 = vsel %vm1956_vm8, %v3790_v56, %v5879_v32  ;;  %v2380_v41 = vld [vmem:[#allocation3 + $0x88] sm:$0xff] }
 0x39f   : > { %v5912_v21 = vpop.permute.xlu0 %5911  ;;  %v5899_v8 = vunpack.i.h.bf16 %v5897_v57  ;;  %v5898_v3 = vunpack.i.l.bf16 %v5897_v57  ;;  %v3862_v61 = vsel %vm3847_vm13, %v3825_v38, %v5888_v26  ;;  %v3863_v30 = vsel %vm3847_vm13, %v3826_v10, %v5889_v14 }
 0x3a0   : > { %v5914_v40 = vunpack.i.h.bf16 %v5912_v21  ;;  %v5913_v2 = vunpack.i.l.bf16 %v5912_v21  ;;  %v5654_v63 = vunpack.i.h.bf16 %v8179_v53  ;;  %v5653_v1 = vunpack.i.l.bf16 %v8179_v53  ;;  %v2379_v21 = vld [vmem:[#allocation3 + $0x80] sm:$0xff] }
 0x3a1   : > { %v3899_v24 = vsel %vm3884_vm14, %v3862_v61, %v5898_v3  ;;  %v3900_v43 = vsel %vm3884_vm14, %v3863_v30, %v5899_v8  ;;  %v5659_v4 = vunpack.i.h.bf16 %v8186_v33  ;;  %v5658_v0 = vunpack.i.l.bf16 %v8186_v33 }
 0x3a2   : > { %v3971_v11 = vsel %vm3958_vm0, %v3934_v9, %v5913_v2  ;;  %v3972_v45 = vsel %vm3958_vm0, %v3935_v47, %v5914_v40  ;;  %v5907_v54 = vpop.permute.xlu1 %5906  ;;  %v5704_v46 = vunpack.i.h.bf16 %v8210_v28  ;;  %v5703_v12 = vunpack.i.l.bf16 %v8210_v28 }
 0x3a3   : > { %v4001_v42 = vpack.c.bf16 %v3972_v45, %v3971_v11  ;;  %v5922_v20 = vpop.permute.xlu0 %5921  ;;  %v5909_v51 = vunpack.i.h.bf16 %v5907_v54  ;;  %v5908_v39 = vunpack.i.l.bf16 %v5907_v54  ;;  %v3720_v32 = vsel %vm226_vm2, %v2380_v41, %v5654_v63 }
 0x3a4   : > { %v5924_v13 = vunpack.i.h.bf16 %v5922_v20  ;;  %v5923_v40 = vunpack.i.l.bf16 %v5922_v20  ;;  %v3719_v53 = vsel %vm226_vm2, %v2379_v21, %v5653_v1  ;;  %v3756_v14 = vsel %vm1808_vm4, %v3720_v32, %v5659_v4 }
 0x3a5   : > { %4681 = vmatprep.mubr.msk.bf16.mxu1 %vm4056_vm1, %v4001_v42  ;;  %v3936_v34 = vsel %vm3921_vm15, %v3899_v24, %v5908_v39  ;;  %v3937_v22 = vsel %vm3921_vm15, %v3900_v43, %v5909_v51  ;;  %v3755_v33 = vsel %vm1808_vm4, %v3719_v53, %v5658_v0  ;;  %v3792_v45 = vsel %vm1882_vm6, %v3756_v14, %v5704_v46 }
 0x3a6   : > { %v5917_v48 = vpop.permute.xlu1 %5916  ;;  %v3791_v28 = vsel %vm1882_vm6, %v3755_v33, %v5703_v12  ;;  %v3828_v42 = vsel %vm1956_vm8, %v3792_v45, %v5924_v13 }
 0x3a7   : > { %v5919_v5 = vunpack.i.h.bf16 %v5917_v48  ;;  %v5918_v60 = vunpack.i.l.bf16 %v5917_v48  ;;  %v5932_v18 = vpop.permute.xlu0 %5931  ;;  %v3827_v3 = vsel %vm1956_vm8, %v3791_v28, %v5923_v40 }
 0x3a8   : > { %v5934_v31 = vunpack.i.h.bf16 %v5932_v18  ;;  %v5933_v9 = vunpack.i.l.bf16 %v5932_v18 }
 0x3a9   : > { %v3973_v25 = vsel %vm3958_vm0, %v3936_v34, %v5918_v60  ;;  %v3974_v15 = vsel %vm3958_vm0, %v3937_v22, %v5919_v5 }
 0x3aa   : > { %v4002_v17 = vpack.c.bf16 %v3974_v15, %v3973_v25  ;;  %v5927_v27 = vpop.permute.xlu1 %5926  ;;  %v3864_v19 = vsel %vm3847_vm13, %v3827_v3, %v5933_v9  ;;  %v3865_v56 = vsel %vm3847_vm13, %v3828_v42, %v5934_v31 }
 0x3ab   : > { %v5942_v57 = vpop.permute.xlu0 %5941  ;;  %v5929_v30 = vunpack.i.h.bf16 %v5927_v27  ;;  %v5928_v48 = vunpack.i.l.bf16 %v5927_v27 }
 0x3ac   : > { %4682 = vmatmul.mubr.msk.bf16.gmra.mrb[12].mxu1 %vm4056_vm1, %v4002_v17  ;;  %v5944_v26 = vunpack.i.h.bf16 %v5942_v57  ;;  %v5943_v11 = vunpack.i.l.bf16 %v5942_v57 }
 0x3ad   : > { %v3829_v27 = vsel %vm1956_vm8, %v8216_v6, %v5928_v48  ;;  %v3830_v4 = vsel %vm1956_vm8, %v8219_v59, %v5929_v30 }
 0x3ae   : > { %v5937_v2 = vpop.permute.xlu1 %5936  ;;  %v3901_v39 = vsel %vm3884_vm14, %v3864_v19, %v5943_v11  ;;  %v3902_v38 = vsel %vm3884_vm14, %v3865_v56, %v5944_v26 }
 0x3af   : > { %v5952_v47 = vpop.permute.xlu0 %5951  ;;  %v5939_v5 = vunpack.i.h.bf16 %v5937_v2  ;;  %v5938_v60 = vunpack.i.l.bf16 %v5937_v2 }
 0x3b0   : > { %v5954_v54 = vunpack.i.h.bf16 %v5952_v47  ;;  %v5953_v8 = vunpack.i.l.bf16 %v5952_v47 }
 0x3b1   : > { %v3866_v0 = vsel %vm3847_vm13, %v3829_v27, %v5938_v60  ;;  %v3867_v46 = vsel %vm3847_vm13, %v3830_v4, %v5939_v5 }
 0x3b2   : > { %v5947_v20 = vpop.permute.xlu1 %5946  ;;  %v3938_v24 = vsel %vm3921_vm15, %v3901_v39, %v5953_v8  ;;  %v3939_v43 = vsel %vm3921_vm15, %v3902_v38, %v5954_v54 }
 0x3b3   : > { %v5962_v51 = vpop.permute.xlu0 %5961  ;;  %v5949_v25 = vunpack.i.h.bf16 %v5947_v20  ;;  %v5948_v15 = vunpack.i.l.bf16 %v5947_v20 }
 0x3b4   : > { %v5964_v10 = vunpack.i.h.bf16 %v5962_v51  ;;  %v5963_v61 = vunpack.i.l.bf16 %v5962_v51 }
 0x3b5   : > { %v3903_v21 = vsel %vm3884_vm14, %v3866_v0, %v5948_v15  ;;  %v3904_v41 = vsel %vm3884_vm14, %v3867_v46, %v5949_v25 }
 0x3b6   : > { %v3975_v18 = vsel %vm3958_vm0, %v3938_v24, %v5963_v61  ;;  %v3976_v34 = vsel %vm3958_vm0, %v3939_v43, %v5964_v10  ;;  %v5957_v22 = vpop.permute.xlu1 %5956 }
 0x3b7   : > { %v4003_v17 = vpack.c.bf16 %v3976_v34, %v3975_v18  ;;  %v5972_v63 = vpop.permute.xlu0 %5971  ;;  %v5959_v1 = vunpack.i.h.bf16 %v5957_v22  ;;  %v5958_v57 = vunpack.i.l.bf16 %v5957_v22 }
 0x3b8   : > { %v5974_v33 = vunpack.i.h.bf16 %v5972_v63  ;;  %v5973_v14 = vunpack.i.l.bf16 %v5972_v63 }
 0x3b9   : > { %4685 = vmatprep.mubr.msk.bf16.mxu1 %vm4056_vm1, %v4003_v17  ;;  %v3940_v32 = vsel %vm3921_vm15, %v3903_v21, %v5958_v57  ;;  %v3941_v6 = vsel %vm3921_vm15, %v3904_v41, %v5959_v1 }
 0x3ba   : > { %v5967_v12 = vpop.permute.xlu1 %5966  ;;  %v3831_v20 = vsel %vm1956_vm8, %v8248_v44, %v5973_v14  ;;  %v3832_v19 = vsel %vm1956_vm8, %v8252_v16, %v5974_v33 }
 0x3bb   : > { %v5969_v13 = vunpack.i.h.bf16 %v5967_v12  ;;  %v5968_v40 = vunpack.i.l.bf16 %v5967_v12  ;;  %v5982_v2 = vpop.permute.xlu0 %5981 }
 0x3bc   : > { %v5984_v11 = vunpack.i.h.bf16 %v5982_v2  ;;  %v5983_v28 = vunpack.i.l.bf16 %v5982_v2 }
 0x3bd   : > { %v3977_v59 = vsel %vm3958_vm0, %v3940_v32, %v5968_v40  ;;  %v3978_v53 = vsel %vm3958_vm0, %v3941_v6, %v5969_v13 }
 0x3be   : > { %v4004_v31 = vpack.c.bf16 %v3978_v53, %v3977_v59  ;;  %v5977_v9 = vpop.permute.xlu1 %5976  ;;  %v3868_v51 = vsel %vm3847_vm13, %v3831_v20, %v5983_v28  ;;  %v3869_v39 = vsel %vm3847_vm13, %v3832_v19, %v5984_v11 }
 0x3bf   : > { %v5992_v47 = vpop.permute.xlu0 %5991  ;;  %v5979_v24 = vunpack.i.h.bf16 %v5977_v9  ;;  %v5978_v43 = vunpack.i.l.bf16 %v5977_v9 }
 0x3c0   : > { %4686 = vmatmul.mubr.msk.bf16.gmra.mrb[16].mxu1 %vm4056_vm1, %v4004_v31  ;;  %v5994_v54 = vunpack.i.h.bf16 %v5992_v47  ;;  %v5993_v8 = vunpack.i.l.bf16 %v5992_v47 }
 0x3c1   : > { %v3833_v27 = vsel %vm1956_vm8, %v8240_v52, %v5978_v43  ;;  %v3834_v4 = vsel %vm1956_vm8, %v8243_v23, %v5979_v24 }
 0x3c2   : > { %v5987_v26 = vpop.permute.xlu1 %5986  ;;  %v3905_v10 = vsel %vm3884_vm14, %v3868_v51, %v5993_v8  ;;  %v3906_v61 = vsel %vm3884_vm14, %v3869_v39, %v5994_v54 }
 0x3c3   : > { %v6002_v45 = vpop.permute.xlu0 %6001  ;;  %v5989_v60 = vunpack.i.h.bf16 %v5987_v26  ;;  %v5988_v16 = vunpack.i.l.bf16 %v5987_v26 }
 0x3c4   : > { %v6004_v3 = vunpack.i.h.bf16 %v6002_v45  ;;  %v6003_v42 = vunpack.i.l.bf16 %v6002_v45 }
 0x3c5   : > { %v3870_v0 = vsel %vm3847_vm13, %v3833_v27, %v5988_v16  ;;  %v3871_v46 = vsel %vm3847_vm13, %v3834_v4, %v5989_v60 }
 0x3c6   : > { %v5997_v56 = vpop.permute.xlu1 %5996  ;;  %v3942_v5 = vsel %vm3921_vm15, %v3905_v10, %v6003_v42  ;;  %v3943_v44 = vsel %vm3921_vm15, %v3906_v61, %v6004_v3 }
 0x3c7   : > { %v6012_v38 = vpop.permute.xlu0 %6011  ;;  %v5999_v25 = vunpack.i.h.bf16 %v5997_v56  ;;  %v5998_v15 = vunpack.i.l.bf16 %v5997_v56 }
 0x3c8   : > { %v6014_v30 = vunpack.i.h.bf16 %v6012_v38  ;;  %v6013_v48 = vunpack.i.l.bf16 %v6012_v38 }
 0x3c9   : > { %v3907_v21 = vsel %vm3884_vm14, %v3870_v0, %v5998_v15  ;;  %v3908_v41 = vsel %vm3884_vm14, %v3871_v46, %v5999_v25 }
 0x3ca   : > { %v3979_v18 = vsel %vm3958_vm0, %v3942_v5, %v6013_v48  ;;  %v3980_v34 = vsel %vm3958_vm0, %v3943_v44, %v6014_v30  ;;  %v6007_v22 = vpop.permute.xlu1 %6006 }
 0x3cb   : > { %v4005_v17 = vpack.c.bf16 %v3980_v34, %v3979_v18  ;;  %v6022_v63 = vpop.permute.xlu0 %6021  ;;  %v6009_v1 = vunpack.i.h.bf16 %v6007_v22  ;;  %v6008_v57 = vunpack.i.l.bf16 %v6007_v22 }
 0x3cc   : > { %v6024_v9 = vunpack.i.h.bf16 %v6022_v63  ;;  %v6023_v47 = vunpack.i.l.bf16 %v6022_v63 }
 0x3cd   : > { %4689 = vmatprep.mubr.msk.bf16.mxu1 %vm4056_vm1, %v4005_v17  ;;  %v3944_v32 = vsel %vm3921_vm15, %v3907_v21, %v6008_v57  ;;  %v3945_v52 = vsel %vm3921_vm15, %v3908_v41, %v6009_v1 }
 0x3ce   : > { %v6017_v12 = vpop.permute.xlu1 %6016  ;;  %v3835_v3 = vsel %vm1956_vm8, %v8280_v49, %v6023_v47  ;;  %v3836_v42 = vsel %vm1956_vm8, %v8284_v7, %v6024_v9 }
 0x3cf   : > { %v6019_v13 = vunpack.i.h.bf16 %v6017_v12  ;;  %v6018_v40 = vunpack.i.l.bf16 %v6017_v12  ;;  %v6032_v2 = vpop.permute.xlu0 %6031 }
 0x3d0   : > { %v6034_v14 = vunpack.i.h.bf16 %v6032_v2  ;;  %v6033_v26 = vunpack.i.l.bf16 %v6032_v2 }
 0x3d1   : > { %v3981_v23 = vsel %vm3958_vm0, %v3944_v32, %v6018_v40  ;;  %v3982_v6 = vsel %vm3958_vm0, %v3945_v52, %v6019_v13 }
 0x3d2   : > { %v4006_v59 = vpack.c.bf16 %v3982_v6, %v3981_v23  ;;  %v6027_v53 = vpop.permute.xlu1 %6026  ;;  %v3872_v19 = vsel %vm3847_vm13, %v3835_v3, %v6033_v26  ;;  %v3873_v56 = vsel %vm3847_vm13, %v3836_v42, %v6034_v14 }
 0x3d3   : > { %v6042_v31 = vpop.permute.xlu0 %6041  ;;  %v6029_v30 = vunpack.i.h.bf16 %v6027_v53  ;;  %v6028_v48 = vunpack.i.l.bf16 %v6027_v53 }
 0x3d4   : > { %4690 = vmatmul.mubr.msk.bf16.gmra.mrb[20].mxu1 %vm4056_vm1, %v4006_v59  ;;  %v6044_v28 = vunpack.i.h.bf16 %v6042_v31  ;;  %v6043_v45 = vunpack.i.l.bf16 %v6042_v31 }
 0x3d5   : > { %v3837_v17 = vsel %vm1956_vm8, %v8272_v55, %v6028_v48  ;;  %v3838_v63 = vsel %vm1956_vm8, %v8275_v37, %v6029_v30 }
 0x3d6   : > { %v6037_v33 = vpop.permute.xlu1 %6036  ;;  %v3909_v39 = vsel %vm3884_vm14, %v3872_v19, %v6043_v45  ;;  %v3910_v38 = vsel %vm3884_vm14, %v3873_v56, %v6044_v28 }
 0x3d7   : > { %v6052_v11 = vpop.permute.xlu0 %6051  ;;  %v6039_v43 = vunpack.i.h.bf16 %v6037_v33  ;;  %v6038_v7 = vunpack.i.l.bf16 %v6037_v33 }
 0x3d8   : > { %v6054_v54 = vunpack.i.h.bf16 %v6052_v11  ;;  %v6053_v8 = vunpack.i.l.bf16 %v6052_v11 }
 0x3d9   : > { %v3874_v1 = vsel %vm3847_vm13, %v3837_v17, %v6038_v7  ;;  %v3875_v57 = vsel %vm3847_vm13, %v3838_v63, %v6039_v43 }
 0x3da   : > { %v6047_v20 = vpop.permute.xlu1 %6046  ;;  %v3946_v24 = vsel %vm3921_vm15, %v3909_v39, %v6053_v8  ;;  %v3947_v49 = vsel %vm3921_vm15, %v3910_v38, %v6054_v54 }
 0x3db   : > { %v6062_v51 = vpop.permute.xlu0 %6061  ;;  %v6049_v16 = vunpack.i.h.bf16 %v6047_v20  ;;  %v6048_v18 = vunpack.i.l.bf16 %v6047_v20 }
 0x3dc   : > { %v6064_v10 = vunpack.i.h.bf16 %v6062_v51  ;;  %v6063_v61 = vunpack.i.l.bf16 %v6062_v51 }
 0x3dd   : > { %v3911_v4 = vsel %vm3884_vm14, %v3874_v1, %v6048_v18  ;;  %v3912_v0 = vsel %vm3884_vm14, %v3875_v57, %v6049_v16 }
 0x3de   : > { %v3983_v5 = vsel %vm3958_vm0, %v3946_v24, %v6063_v61  ;;  %v3984_v44 = vsel %vm3958_vm0, %v3947_v49, %v6064_v10  ;;  %v6057_v60 = vpop.permute.xlu1 %6056  ;;  %v8614_v49 = vld [vmem:[%s8776_s4] ss:$0 sm:$0xff] }
 0x3df   : > { %v4007_v34 = vpack.c.bf16 %v3984_v44, %v3983_v5  ;;  %v6072_v22 = vpop.permute.xlu0 %6071  ;;  %v6059_v25 = vunpack.i.h.bf16 %v6057_v60  ;;  %v6058_v15 = vunpack.i.l.bf16 %v6057_v60 }
 0x3e0   : > { %v6074_v52 = vunpack.i.h.bf16 %v6072_v22  ;;  %v6073_v23 = vunpack.i.l.bf16 %v6072_v22 }
 0x3e1   : > { %4693 = vmatprep.mubr.msk.bf16.mxu1 %vm4056_vm1, %v4007_v34  ;;  %v3948_v41 = vsel %vm3921_vm15, %v3911_v4, %v6058_v15  ;;  %v3949_v55 = vsel %vm3921_vm15, %v3912_v0, %v6059_v25 }
 0x3e2   : > { %v6067_v27 = vpop.permute.xlu1 %6066  ;;  %v3839_v26 = vsel %vm1956_vm8, %v8302_v36, %v6073_v23  ;;  %v3840_v11 = vsel %vm1956_vm8, %v8306_v58, %v6074_v52 }
 0x3e3   : > { %v6069_v46 = vunpack.i.h.bf16 %v6067_v27  ;;  %v6068_v12 = vunpack.i.l.bf16 %v6067_v27  ;;  %v6082_v21 = vpop.permute.xlu0 %6081 }
 0x3e4   : > { %v6084_v59 = vunpack.i.h.bf16 %v6082_v21  ;;  %v6083_v53 = vunpack.i.l.bf16 %v6082_v21 }
 0x3e5   : > { %v3985_v37 = vsel %vm3958_vm0, %v3948_v41, %v6068_v12  ;;  %v3986_v13 = vsel %vm3958_vm0, %v3949_v55, %v6069_v46 }
 0x3e6   : > { %v4008_v40 = vpack.c.bf16 %v3986_v13, %v3985_v37  ;;  %v6077_v2 = vpop.permute.xlu1 %6076  ;;  %v3876_v45 = vsel %vm3847_vm13, %v3839_v26, %v6083_v53  ;;  %v3877_v54 = vsel %vm3847_vm13, %v3840_v11, %v6084_v59 }
 0x3e7   : > { %v6092_v32 = vpop.permute.xlu0 %6091  ;;  %v6079_v8 = vunpack.i.h.bf16 %v6077_v2  ;;  %v6078_v3 = vunpack.i.l.bf16 %v6077_v2 }
 0x3e8   : > { %4694 = vmatmul.mubr.msk.bf16.gmra.mrb[24].mxu1 %vm4056_vm1, %v4008_v40  ;;  %v6094_v9 = vunpack.i.h.bf16 %v6092_v32  ;;  %v6093_v47 = vunpack.i.l.bf16 %v6092_v32 }
 0x3e9   : > { %v3841_v5 = vsel %vm1956_vm8, %v8311_v62, %v6078_v3  ;;  %v3842_v44 = vsel %vm1956_vm8, %v8314_v35, %v6079_v8 }
 0x3ea   : > { %v6087_v6 = vpop.permute.xlu1 %6086  ;;  %v3913_v20 = vsel %vm3884_vm14, %v3876_v45, %v6093_v47  ;;  %v3914_v19 = vsel %vm3884_vm14, %v3877_v54, %v6094_v9 }
 0x3eb   : > { %v6102_v31 = vpop.permute.xlu0 %6101  ;;  %v6089_v39 = vunpack.i.h.bf16 %v6087_v6  ;;  %v6088_v36 = vunpack.i.l.bf16 %v6087_v6 }
 0x3ec   : > { %v6104_v33 = vunpack.i.h.bf16 %v6102_v31  ;;  %v6103_v14 = vunpack.i.l.bf16 %v6102_v31 }
 0x3ed   : > { %v3878_v34 = vsel %vm3847_vm13, %v3841_v5, %v6088_v36  ;;  %v3879_v22 = vsel %vm3847_vm13, %v3842_v44, %v6089_v39 }
 0x3ee   : > { %v6097_v28 = vpop.permute.xlu1 %6096  ;;  %v3950_v38 = vsel %vm3921_vm15, %v3913_v20, %v6103_v14  ;;  %v3951_v58 = vsel %vm3921_vm15, %v3914_v19, %v6104_v33 }
 0x3ef   : > { %v6112_v42 = vpop.permute.xlu0 %6111  ;;  %v6099_v10 = vunpack.i.h.bf16 %v6097_v28  ;;  %v6098_v61 = vunpack.i.l.bf16 %v6097_v28 }
 0x3f0   : > { %v6114_v56 = vunpack.i.h.bf16 %v6112_v42  ;;  %v6113_v51 = vunpack.i.l.bf16 %v6112_v42 }
 0x3f1   : > { %v3915_v62 = vsel %vm3884_vm14, %v3878_v34, %v6098_v61  ;;  %v3916_v35 = vsel %vm3884_vm14, %v3879_v22, %v6099_v10 }
 0x3f2   : > { %v3987_v30 = vsel %vm3958_vm0, %v3950_v38, %v6113_v51  ;;  %v3988_v48 = vsel %vm3958_vm0, %v3951_v58, %v6114_v56  ;;  %v6107_v24 = vpop.permute.xlu1 %6106 }
 0x3f3   : > { %v4009_v43 = vpack.c.bf16 %v3988_v48, %v3987_v30  ;;  %v6122_v7 = vpop.permute.xlu0 %6121  ;;  %v6109_v60 = vunpack.i.h.bf16 %v6107_v24  ;;  %v6108_v16 = vunpack.i.l.bf16 %v6107_v24 }
 0x3f4   : > { %v4671_v18 = vpop.f32.mrb[0].mxu1  ;;  %v6124_v59 = vunpack.i.h.bf16 %v6122_v7  ;;  %v6123_v53 = vunpack.i.l.bf16 %v6122_v7 }
 0x3f5   : > { %v4158_v25 = vadd.f32 %v4671_v18, %v8614_v49  ;;  %v4149_v15 = vpop.f32.mrb[1].mxu1  ;;  %4697 = vmatprep.mubr.msk.bf16.mxu1 %vm4056_vm1, %v4009_v43  ;;  %v3952_v21 = vsel %vm3921_vm15, %v3915_v62, %v6108_v16  ;;  %v3953_v41 = vsel %vm3921_vm15, %v3916_v35, %v6109_v60  ;;  %v9034_v60 = vld [vmem:[#allocation24_spill] sm:$0xff]  ;;  %v9035_v18 = vld [vmem:[#allocation25_spill] sm:$0xff] }
 0x3f6   : > { %v4150_v17 = vadd.f32 %v8614_v49, %v4149_v15  ;;  %v6117_v63 = vpop.permute.xlu1 %6116  ;;  %v4672_v1 = vpop.f32.mrb[2].mxu1  ;;  %v3843_v45 = vsel %vm1956_vm8, %v8334_v29, %v6123_v53  ;;  %v3844_v54 = vsel %vm1956_vm8, %v8337_v50, %v6124_v59 }
 0x3f7   : > { %v4294_v57 = vmax.f32 %v4158_v25, 0.0  ;;  %v6119_v27 = vunpack.i.h.bf16 %v6117_v63  ;;  %v6118_v4 = vunpack.i.l.bf16 %v6117_v63  ;;  %v4161_v0 = vadd.f32 %v4672_v1, %v8614_v49  ;;  %v6132_v46 = vpop.permute.xlu0 %6131  ;;  %v4152_v12 = vpop.f32.mrb[3].mxu1 }
 0x3f8   : > { %v4292_v55 = vmax.f32 %v4150_v17, 0.0  ;;  %v4153_v37 = vadd.f32 %v8614_v49, %v4152_v12  ;;  %v6134_v9 = vunpack.i.h.bf16 %v6132_v46  ;;  %v6133_v47 = vunpack.i.l.bf16 %v6132_v46 }
 0x3f9   : > { %4330 = vst.msk [vmem:[%s8627_s10 + $0x10] sm:$0xff] %vm226_vm2, %v4294_v57  ;;  %v3989_v13 = vsel %vm3958_vm0, %v3952_v21, %v6118_v4  ;;  %v3990_v40 = vsel %vm3958_vm0, %v3953_v41, %v6119_v27  ;;  %v4295_v2 = vmax.f32 %v4161_v0, 0.0 }
 0x3fa   : > { %4328 = vst.msk [vmem:[%s8627_s10] sm:$0xff] %vm226_vm2, %v4292_v55  ;;  %v4010_v32 = vpack.c.bf16 %v3990_v40, %v3989_v13  ;;  %v4293_v52 = vmax.f32 %v4153_v37, 0.0  ;;  %v6127_v23 = vpop.permute.xlu1 %6126  ;;  %v3880_v3 = vsel %vm3847_vm13, %v3843_v45, %v6133_v47  ;;  %v3881_v42 = vsel %vm3847_vm13, %v3844_v54, %v6134_v9 }
 0x3fb   : > { %4331 = vst.msk [vmem:[%s8627_s10 + $0x18] sm:$0xff] %vm226_vm2, %v4295_v2  ;;  %v6142_v6 = vpop.permute.xlu0 %6141  ;;  %v6129_v36 = vunpack.i.h.bf16 %v6127_v23  ;;  %v6128_v38 = vunpack.i.l.bf16 %v6127_v23 }
 0x3fc   : > { %4329 = vst.msk [vmem:[%s8627_s10 + $0x8] sm:$0xff] %vm226_vm2, %v4293_v52  ;;  %4698 = vmatmul.mubr.msk.bf16.gmra.mrb[28].mxu1 %vm4056_vm1, %v4010_v32  ;;  %v6144_v14 = vunpack.i.h.bf16 %v6142_v6  ;;  %v6143_v26 = vunpack.i.l.bf16 %v6142_v6 }
 0x3fd   : > { %v3845_v16 = vsel %vm1956_vm8, %v9034_v60, %v6128_v38  ;;  %v3846_v34 = vsel %vm1956_vm8, %v9035_v18, %v6129_v36 }
 0x3fe   : > { %v6137_v31 = vpop.permute.xlu1 %6136  ;;  %v3917_v19 = vsel %vm3884_vm14, %v3880_v3, %v6143_v26  ;;  %v3918_v56 = vsel %vm3884_vm14, %v3881_v42, %v6144_v14 }
 0x3ff   : > { %v6152_v33 = vpop.permute.xlu0 %6151  ;;  %v6139_v10 = vunpack.i.h.bf16 %v6137_v31  ;;  %v6138_v50 = vunpack.i.l.bf16 %v6137_v31 }
 0x400   : > { %v6154_v11 = vunpack.i.h.bf16 %v6152_v33  ;;  %v6153_v28 = vunpack.i.l.bf16 %v6152_v33 }
 0x401   : > { %v3882_v22 = vsel %vm3847_vm13, %v3845_v16, %v6138_v50  ;;  %v3883_v25 = vsel %vm3847_vm13, %v3846_v34, %v6139_v10 }
 0x402   : > { %v6147_v8 = vpop.permute.xlu1 %6146  ;;  %v3954_v58 = vsel %vm3921_vm15, %v3917_v19, %v6153_v28  ;;  %v3955_v29 = vsel %vm3921_vm15, %v3918_v56, %v6154_v11 }
 0x403   : > { %v6149_v24 = vunpack.i.h.bf16 %v6147_v8  ;;  %v6148_v43 = vunpack.i.l.bf16 %v6147_v8 }
 0x404   : > { %v6162_v20 = vpop.permute.xlu0 %6161 }
 0x405   : > { %v6164_v51 = vunpack.i.h.bf16 %v6162_v20  ;;  %v6163_v39 = vunpack.i.l.bf16 %v6162_v20  ;;  %v3919_v62 = vsel %vm3884_vm14, %v3882_v22, %v6148_v43  ;;  %v3920_v35 = vsel %vm3884_vm14, %v3883_v25, %v6149_v24 }
 0x406   : > { %v6157_v48 = vpop.permute.xlu1 %6156 }
 0x407   : > { %v3991_v61 = vsel %vm3958_vm0, %v3954_v58, %v6163_v39  ;;  %v3992_v30 = vsel %vm3958_vm0, %v3955_v29, %v6164_v51  ;;  %v6159_v5 = vunpack.i.h.bf16 %v6157_v48  ;;  %v6158_v44 = vunpack.i.l.bf16 %v6157_v48 }
 0x408   : > { %v4011_v7 = vpack.c.bf16 %v3992_v30, %v3991_v61 }
 0x409   : > { %v3956_v1 = vsel %vm3921_vm15, %v3919_v62, %v6158_v44  ;;  %v3957_v57 = vsel %vm3921_vm15, %v3920_v35, %v6159_v5 }
 0x40a   : > { %4701 = vmatprep.mubr.msk.bf16.mxu1 %vm4056_vm1, %v4011_v7  ;;  %v6167_v15 = vpop.permute.xlu1 %6166 }
 0x40b   : > { %v6169_v17 = vunpack.i.h.bf16 %v6167_v15  ;;  %v6168_v63 = vunpack.i.l.bf16 %v6167_v15 }
 0x40d   : > { %v3993_v27 = vsel %vm3958_vm0, %v3956_v1, %v6168_v63  ;;  %v3994_v4 = vsel %vm3958_vm0, %v3957_v57, %v6169_v17 }
 0x40e   : > { %v4012_v0 = vpack.c.bf16 %v3994_v4, %v3993_v27 }
 0x40f   : > { %v4675_v46 = vpop.f32.mrb[4].mxu1 }
 0x410   : > { %v4174_v12 = vadd.f32 %v4675_v46, %v8614_v49  ;;  %v4165_v21 = vpop.f32.mrb[5].mxu1  ;;  %4702 = vmatmul.mubr.msk.bf16.gmra.mrb[32].mxu1 %vm4056_vm1, %v4012_v0 }
 0x411   : > { %v4166_v41 = vadd.f32 %v8614_v49, %v4165_v21  ;;  %v4676_v55 = vpop.f32.mrb[6].mxu1 }
 0x412   : > { %v4298_v37 = vmax.f32 %v4174_v12, 0.0  ;;  %v4177_v13 = vadd.f32 %v4676_v55, %v8614_v49  ;;  %v4168_v40 = vpop.f32.mrb[7].mxu1 }
 0x413   : > { %v4296_v2 = vmax.f32 %v4166_v41, 0.0  ;;  %v4169_v32 = vadd.f32 %v8614_v49, %v4168_v40 }
 0x414   : > { %4334 = vst.msk [vmem:[%s8627_s10 + $0x30] sm:$0xff] %vm226_vm2, %v4298_v37  ;;  %v4299_v52 = vmax.f32 %v4177_v13, 0.0 }
 0x415   : > { %4332 = vst.msk [vmem:[%s8627_s10 + $0x20] sm:$0xff] %vm226_vm2, %v4296_v2  ;;  %v4297_v23 = vmax.f32 %v4169_v32, 0.0 }
 0x416   : > { %4335 = vst.msk [vmem:[%s8627_s10 + $0x38] sm:$0xff] %vm226_vm2, %v4299_v52 }
 0x417   : > { %4333 = vst.msk [vmem:[%s8627_s10 + $0x28] sm:$0xff] %vm226_vm2, %v4297_v23 }
 0x46b   : > { %v4679_v6 = vpop.f32.mrb[8].mxu1 }
 0x46c   : > { %v4190_v59 = vadd.f32 %v4679_v6, %v8614_v49  ;;  %v4181_v53 = vpop.f32.mrb[9].mxu1 }
 0x46d   : > { %v4182_v31 = vadd.f32 %v8614_v49, %v4181_v53  ;;  %v4680_v9 = vpop.f32.mrb[10].mxu1 }
 0x46e   : > { %v4302_v47 = vmax.f32 %v4190_v59, 0.0  ;;  %v4193_v33 = vadd.f32 %v4680_v9, %v8614_v49  ;;  %v4184_v14 = vpop.f32.mrb[11].mxu1 }
 0x46f   : > { %v4300_v26 = vmax.f32 %v4182_v31, 0.0  ;;  %v4185_v11 = vadd.f32 %v8614_v49, %v4184_v14 }
 0x470   : > { %4338 = vst.msk [vmem:[%s8627_s10 + $0x50] sm:$0xff] %vm226_vm2, %v4302_v47  ;;  %v4303_v28 = vmax.f32 %v4193_v33, 0.0 }
 0x471   : > { %4336 = vst.msk [vmem:[%s8627_s10 + $0x40] sm:$0xff] %vm226_vm2, %v4300_v26  ;;  %v4301_v45 = vmax.f32 %v4185_v11, 0.0 }
 0x472   : > { %4339 = vst.msk [vmem:[%s8627_s10 + $0x58] sm:$0xff] %vm226_vm2, %v4303_v28 }
 0x473   : > { %4337 = vst.msk [vmem:[%s8627_s10 + $0x48] sm:$0xff] %vm226_vm2, %v4301_v45 }
 0x47f   : > { %v4683_v54 = vpop.f32.mrb[12].mxu1 }
 0x480   : > { %v4206_v8 = vadd.f32 %v4683_v54, %v8614_v49  ;;  %v4197_v3 = vpop.f32.mrb[13].mxu1 }
 0x481   : > { %v4198_v42 = vadd.f32 %v8614_v49, %v4197_v3  ;;  %v4684_v20 = vpop.f32.mrb[14].mxu1 }
 0x482   : > { %v4306_v19 = vmax.f32 %v4206_v8, 0.0  ;;  %v4209_v56 = vadd.f32 %v4684_v20, %v8614_v49  ;;  %v4200_v51 = vpop.f32.mrb[15].mxu1 }
 0x483   : > { %v4304_v39 = vmax.f32 %v4198_v42, 0.0  ;;  %v4201_v36 = vadd.f32 %v8614_v49, %v4200_v51 }
 0x484   : > { %4342 = vst.msk [vmem:[%s8627_s10 + $0x70] sm:$0xff] %vm226_vm2, %v4306_v19  ;;  %v4307_v38 = vmax.f32 %v4209_v56, 0.0 }
 0x485   : > { %4340 = vst.msk [vmem:[%s8627_s10 + $0x60] sm:$0xff] %vm226_vm2, %v4304_v39  ;;  %v4305_v58 = vmax.f32 %v4201_v36, 0.0 }
 0x486   : > { %4343 = vst.msk [vmem:[%s8627_s10 + $0x78] sm:$0xff] %vm226_vm2, %v4307_v38 }
 0x487   : > { %4341 = vst.msk [vmem:[%s8627_s10 + $0x68] sm:$0xff] %vm226_vm2, %v4305_v58 }
 0x493   : > { %v4687_v29 = vpop.f32.mrb[16].mxu1 }
 0x494   : > { %v4222_v10 = vadd.f32 %v4687_v29, %v8614_v49  ;;  %v4213_v50 = vpop.f32.mrb[17].mxu1 }
 0x495   : > { %v4214_v61 = vadd.f32 %v8614_v49, %v4213_v50  ;;  %v4688_v30 = vpop.f32.mrb[18].mxu1 }
 0x496   : > { %v4310_v48 = vmax.f32 %v4222_v10, 0.0  ;;  %v4225_v24 = vadd.f32 %v4688_v30, %v8614_v49  ;;  %v4216_v43 = vpop.f32.mrb[19].mxu1 }
 0x497   : > { %v4308_v7 = vmax.f32 %v4214_v61, 0.0  ;;  %v4217_v5 = vadd.f32 %v8614_v49, %v4216_v43 }
 0x498   : > { %4346 = vst.msk [vmem:[%s8627_s10 + $0x90] sm:$0xff] %vm226_vm2, %v4310_v48  ;;  %v4311_v44 = vmax.f32 %v4225_v24, 0.0 }
 0x499   : > { %4344 = vst.msk [vmem:[%s8627_s10 + $0x80] sm:$0xff] %vm226_vm2, %v4308_v7  ;;  %v4309_v60 = vmax.f32 %v4217_v5, 0.0 }
 0x49a   : > { %4347 = vst.msk [vmem:[%s8627_s10 + $0x98] sm:$0xff] %vm226_vm2, %v4311_v44 }
 0x49b   : > { %4345 = vst.msk [vmem:[%s8627_s10 + $0x88] sm:$0xff] %vm226_vm2, %v4309_v60 }
 0x4a7   : > { %v4691_v16 = vpop.f32.mrb[20].mxu1 }
 0x4a8   : > { %v4238_v18 = vadd.f32 %v4691_v16, %v8614_v49  ;;  %v4229_v34 = vpop.f32.mrb[21].mxu1 }
 0x4a9   : > { %v4230_v22 = vadd.f32 %v8614_v49, %v4229_v34  ;;  %v4692_v25 = vpop.f32.mrb[22].mxu1 }
 0x4aa   : > { %v4314_v15 = vmax.f32 %v4238_v18, 0.0  ;;  %v4241_v62 = vadd.f32 %v4692_v25, %v8614_v49  ;;  %v4232_v35 = vpop.f32.mrb[23].mxu1 }
 0x4ab   : > { %v4312_v17 = vmax.f32 %v4230_v22, 0.0  ;;  %v4233_v63 = vadd.f32 %v8614_v49, %v4232_v35 }
 0x4ac   : > { %4350 = vst.msk [vmem:[%s8627_s10 + $0xb0] sm:$0xff] %vm226_vm2, %v4314_v15  ;;  %v4315_v1 = vmax.f32 %v4241_v62, 0.0 }
 0x4ad   : > { %4348 = vst.msk [vmem:[%s8627_s10 + $0xa0] sm:$0xff] %vm226_vm2, %v4312_v17  ;;  %v4313_v57 = vmax.f32 %v4233_v63, 0.0 }
 0x4ae   : > { %4351 = vst.msk [vmem:[%s8627_s10 + $0xb8] sm:$0xff] %vm226_vm2, %v4315_v1 }
 0x4af   : > { %4349 = vst.msk [vmem:[%s8627_s10 + $0xa8] sm:$0xff] %vm226_vm2, %v4313_v57 }
 0x4bb   : > { %v4695_v27 = vpop.f32.mrb[24].mxu1 }
 0x4bc   : > { %v4254_v4 = vadd.f32 %v4695_v27, %v8614_v49  ;;  %v4245_v0 = vpop.f32.mrb[25].mxu1 }
 0x4bd   : > { %v4246_v46 = vadd.f32 %v8614_v49, %v4245_v0  ;;  %v4696_v12 = vpop.f32.mrb[26].mxu1 }
 0x4be   : > { %v4318_v21 = vmax.f32 %v4254_v4, 0.0  ;;  %v4257_v41 = vadd.f32 %v4696_v12, %v8614_v49  ;;  %v4248_v55 = vpop.f32.mrb[27].mxu1 }
 0x4bf   : > { %v4316_v37 = vmax.f32 %v4246_v46, 0.0  ;;  %v4249_v13 = vadd.f32 %v8614_v49, %v4248_v55 }
 0x4c0   : > { %4354 = vst.msk [vmem:[%s8627_s10 + $0xd0] sm:$0xff] %vm226_vm2, %v4318_v21  ;;  %v4319_v40 = vmax.f32 %v4257_v41, 0.0 }
 0x4c1   : > { %4352 = vst.msk [vmem:[%s8627_s10 + $0xc0] sm:$0xff] %vm226_vm2, %v4316_v37  ;;  %v4317_v2 = vmax.f32 %v4249_v13, 0.0 }
 0x4c2   : > { %4355 = vst.msk [vmem:[%s8627_s10 + $0xd8] sm:$0xff] %vm226_vm2, %v4319_v40 }
 0x4c3   : > { %4353 = vst.msk [vmem:[%s8627_s10 + $0xc8] sm:$0xff] %vm226_vm2, %v4317_v2 }
 0x4cf   : > { %v4699_v32 = vpop.f32.mrb[28].mxu1 }
 0x4d0   : > { %v4270_v52 = vadd.f32 %v4699_v32, %v8614_v49  ;;  %v4261_v23 = vpop.f32.mrb[29].mxu1 }
 0x4d1   : > { %v4262_v6 = vadd.f32 %v8614_v49, %v4261_v23  ;;  %v4700_v59 = vpop.f32.mrb[30].mxu1 }
 0x4d2   : > { %v4322_v53 = vmax.f32 %v4270_v52, 0.0  ;;  %v4273_v31 = vadd.f32 %v4700_v59, %v8614_v49  ;;  %v4264_v9 = vpop.f32.mrb[31].mxu1 }
 0x4d3   : > { %v4320_v47 = vmax.f32 %v4262_v6, 0.0  ;;  %v4265_v33 = vadd.f32 %v8614_v49, %v4264_v9 }
 0x4d4   : > { %4358 = vst.msk [vmem:[%s8627_s10 + $0xf0] sm:$0xff] %vm226_vm2, %v4322_v53  ;;  %v4323_v14 = vmax.f32 %v4273_v31, 0.0 }
 0x4d5   : > { %4356 = vst.msk [vmem:[%s8627_s10 + $0xe0] sm:$0xff] %vm226_vm2, %v4320_v47  ;;  %v4321_v26 = vmax.f32 %v4265_v33, 0.0 }
 0x4d6   : > { %4359 = vst.msk [vmem:[%s8627_s10 + $0xf8] sm:$0xff] %vm226_vm2, %v4323_v14 }
 0x4d7   : > { %4357 = vst.msk [vmem:[%s8627_s10 + $0xe8] sm:$0xff] %vm226_vm2, %v4321_v26 }
 0x4e3   : > { %v4703_v11 = vpop.f32.mrb[32].mxu1 }
 0x4e4   : > { %v4286_v28 = vadd.f32 %v4703_v11, %v8614_v49  ;;  %v4277_v45 = vpop.f32.mrb[33].mxu1 }
 0x4e5   : > { %v4278_v54 = vadd.f32 %v8614_v49, %v4277_v45  ;;  %v4704_v8 = vpop.f32.mrb[34].mxu1 }
 0x4e6   : > { %v4326_v3 = vmax.f32 %v4286_v28, 0.0  ;;  %v4289_v42 = vadd.f32 %v4704_v8, %v8614_v49  ;;  %v4280_v20 = vpop.f32.mrb[35].mxu1 }
 0x4e7   : > { %v4324_v19 = vmax.f32 %v4278_v54, 0.0  ;;  %v4281_v56 = vadd.f32 %v8614_v49, %v4280_v20 }
 0x4e8   : > { %4362 = vst.msk [vmem:[%s8627_s10 + $0x110] sm:$0xff] %vm226_vm2, %v4326_v3  ;;  %v4327_v51 = vmax.f32 %v4289_v42, 0.0 }
 0x4e9   : > { %4360 = vst.msk [vmem:[%s8627_s10 + $0x100] sm:$0xff] %vm226_vm2, %v4324_v19  ;;  %v4325_v39 = vmax.f32 %v4281_v56, 0.0 }
 0x4ea   : > { %4363 = vst.msk [vmem:[%s8627_s10 + $0x118] sm:$0xff] %vm226_vm2, %v4327_v51 }
 0x4eb   : > { %4361 = vst.msk [vmem:[%s8627_s10 + $0x108] sm:$0xff] %vm226_vm2, %v4325_v39 }
 0x4ec PF: > { %s15_s18 = sadd.s32 1, %s6184_s18  }
 0x4ed   : > { %p12_p4 = scmp.ge.s32.totalorder %s15_s18, 4  }
 0x4ef   :  { %14 = sbr.rel (!%p12_p4) target bundleno = 1 (0x1), region = 70 }

</bundles_post_ra>
